<compile_context>
chip_gen: v7x
topology: tpu7x:2x2x1
jax: 0.10.0
libtpu: 0.0.40
codegen_flags: <defaults>
</compile_context>

<pallas_src>
import functools

import jax
import jax.numpy as jnp
from jax import lax
from jax.experimental import pallas as pl
from jax.experimental.pallas import tpu as pltpu


def _planner_kernel(act_ref, s0_ref, wbd_ref, wa_ref, wr_ref, br_ref,
                    returns_ref, *, ensemble_size, state_size, plan_horizon,
                    use_reward, use_exploration, expl_scale):
    E, S = ensemble_size, state_size
    ES = E * S
    NT = returns_ref.shape[-1]          # candidate tile (lane axis)

    # Loop-invariant weights: load once, keep live across the unrolled loop.
    wbd = wbd_ref[...]                  # (2*ES, ES)   bf16  block-diag state weights^T
    wa = wa_ref[...]                    # (2*ES, A+1)  bf16  concat action weights^T | bias
    wr = wr_ref[...]                    # (1, ES)      bf16  reward row (1/E folded in)
    br = br_ref[0]                      # scalar f32

    # state.unsqueeze(0).unsqueeze(0).repeat(E, N, 1)  ->  flattened (E*S, N_tile)
    state0 = jnp.broadcast_to(s0_ref[...], (ES, NT)).astype(jnp.float32)
    returns0 = jnp.zeros((1, NT), jnp.float32)

    def step(t, carry):
        state, returns = carry                                   # (ES, NT) f32, (1, NT)
        a_t = act_ref[t]                                         # (A+1, NT) bf16

        # One fused block-diagonal dynamics matmul + one fused action matmul:
        # columns [:ES] -> pre_mean, columns [ES:] -> pre_var (per ensemble block).
        pre = (jnp.dot(wbd, state.astype(jnp.bfloat16),
                       preferred_element_type=jnp.float32)
               + jnp.dot(wa, a_t, preferred_element_type=jnp.float32))  # (2*ES, NT)

        delta_mean = jnp.tanh(pre[:ES, :])                       # (ES, NT)
        delta_var = jax.nn.softplus(pre[ES:, :])                 # (ES, NT)
        new_state = state + delta_mean

        if use_exploration:
            # TODO(synk): the original planner uses a pluggable InformationGain
            # measure(delta_means, delta_vars); approximated here by total predictive
            # variance = ensemble disagreement (unbiased /(E-1), matching torch.var
            # default) + mean aleatoric variance, summed over state dims.
            dm = delta_mean.reshape(E, S, NT)
            mu = jnp.mean(dm, axis=0, keepdims=True)             # (1, S, NT)
            epistemic = jnp.sum((dm - mu) ** 2, axis=(0, 1)) * (1.0 / (E - 1))  # (NT,)
            aleatoric = jnp.sum(delta_var, axis=0) * (1.0 / E)                  # (NT,)
            returns = returns + expl_scale * (epistemic + aleatoric)[None, :]

        if use_reward:
            # linear reward on post-update states, ensemble mean folded into wr row:
            # rewards.view(T, E, N).mean(1).sum(0)
            r = jnp.dot(wr, new_state.astype(jnp.bfloat16),
                        preferred_element_type=jnp.float32) + br  # (1, NT)
            returns = returns + r

        return new_state, returns

    # plan_horizon is static -> fully unroll so the LLO scheduler can interleave
    # MXU pushes / EUP transcendentals / VPU adds across adjacent steps.
    _, returns = lax.fori_loop(0, plan_horizon, step, (state0, returns0),
                               unroll=True)

    # discount_factor == 1  =>  no discount matrix multiply (matches reference).
    returns = jnp.where(jnp.isnan(returns), jnp.zeros_like(returns), returns)
    returns_ref[...] = returns                                   # lane-dense (1, NT)


def random_shooting_plan(current_state, actions, params, *, ensemble_size,
                         n_candidates, plan_horizon, use_reward=True,
                         use_exploration=True, expl_scale=1.0):
    """Returns (best_action (1, A), returns (1, N))."""
    S = current_state.shape[0]
    T, N, A = actions.shape
    E = ensemble_size
    ES = E * S
    NT = 128                                     # candidate tile on the lane axis
    assert N == n_candidates and N % NT == 0, "n_candidates must be a multiple of 128"

    wms, wma, bm, wvs, wva, bv, wr, br = params

    # --- one-time fused weight prep (layout plumbing, plain XLA) ---------------
    # Block-diagonal transposed state weights: rows = [mean feats | var feats].
    wbd = jnp.zeros((2 * ES, ES), jnp.float32)
    for e in range(E):
        wbd = wbd.at[e * S:(e + 1) * S, e * S:(e + 1) * S].set(wms[e].T)
        wbd = wbd.at[ES + e * S:ES + (e + 1) * S, e * S:(e + 1) * S].set(wvs[e].T)
    # Concatenated transposed action weights (2*ES, A), plus bias column -> (2*ES, A+1).
    wa = jnp.concatenate([wma[e].T for e in range(E)]
                         + [wva[e].T for e in range(E)], axis=0)          # (2*ES, A)
    bias = jnp.concatenate([bm.reshape(ES, 1), bv.reshape(ES, 1)], axis=0)  # (2*ES, 1)
    wa_aug = jnp.concatenate([wa, bias], axis=1).astype(jnp.bfloat16)       # (2*ES, A+1)
    # Reward row with the 1/E ensemble mean folded in.
    wr_row = (jnp.tile(wr.reshape(1, S), (1, E)) / E).astype(jnp.bfloat16)  # (1, ES)
    br_s = br.reshape(1).astype(jnp.float32)
    # Initial state column (same for every ensemble member / candidate).
    s0 = jnp.tile(current_state.reshape(S, 1).astype(jnp.float32), (E, 1))  # (ES, 1)
    # Actions re-laid out candidate-on-lanes, ones-row appended for the bias.
    acts_aug = jnp.concatenate(
        [jnp.transpose(actions, (0, 2, 1)),
         jnp.ones((T, 1, N), actions.dtype)], axis=1).astype(jnp.bfloat16)  # (T, A+1, N)
    wbd_bf = wbd.astype(jnp.bfloat16)
    A1 = A + 1

    kernel = functools.partial(_planner_kernel,
                               ensemble_size=E,
                               state_size=S,
                               plan_horizon=T,
                               use_reward=use_reward,
                               use_exploration=use_exploration,
                               expl_scale=expl_scale)

    grid_spec = pltpu.PrefetchScalarGridSpec(
        num_scalar_prefetch=0,
        grid=(N // NT,),
        in_specs=[
            pl.BlockSpec((T, A1, NT), lambda i: (0, 0, i)),        # actions (tiled on N)
            pl.BlockSpec((ES, 1), lambda i: (0, 0)),               # initial state column
            pl.BlockSpec((2 * ES, ES), lambda i: (0, 0)),          # block-diag weights
            pl.BlockSpec((2 * ES, A1), lambda i: (0, 0)),          # action weights | bias
            pl.BlockSpec((1, ES), lambda i: (0, 0)),               # reward row
            pl.BlockSpec(memory_space=pltpu.MemorySpace.SMEM),     # reward bias scalar
        ],
        out_specs=pl.BlockSpec((1, NT), lambda i: (0, i)),
    )

    returns = pl.pallas_call(
        kernel,
        grid_spec=grid_spec,
        out_shape=jax.ShapeDtypeStruct((1, N), jnp.float32),
        compiler_params=pltpu.CompilerParams(
            dimension_semantics=("parallel",)),                    # candidates are independent
    )(acts_aug, s0, wbd_bf, wa_aug, wr_row, br_s)

    # top-1 candidate (first index on ties, like torch.topk) + gather best t=0 action.
    best_idx = jnp.argmax(returns[0])
    best_action = lax.dynamic_index_in_dim(actions[0], best_idx, axis=0,
                                           keepdims=True)          # (1, A)
    return best_action, returns


if __name__ == "__main__":
    # Small shapes consistent with the module's forward.
    S, A = 16, 4            # state_size, action_size
    E = 4                   # ensemble_size
    N = 128                 # n_candidates / N_samples
    T = 8                   # plan_horizon
    SIGMA = 0.5             # action_noise_sigma

    key = jax.random.PRNGKey(0)
    ks = jax.random.split(key, 10)

    current_state = jax.random.normal(ks[0], (S,), jnp.float32)
    # actions ~ N(action_mean=0, action_std=1) * sigma, sampled once (random shooting)
    actions = SIGMA * jax.random.normal(ks[1], (T, N, A), jnp.float32)

    # Deterministic synthetic model parameters.
    wms = 0.1 * jax.random.normal(ks[2], (E, S, S), jnp.float32)
    wma = 0.1 * jax.random.normal(ks[3], (E, A, S), jnp.float32)
    bm = 0.1 * jax.random.normal(ks[4], (E, 1, S), jnp.float32)
    wvs = 0.1 * jax.random.normal(ks[5], (E, S, S), jnp.float32)
    wva = 0.1 * jax.random.normal(ks[6], (E, A, S), jnp.float32)
    bv = 0.1 * jax.random.normal(ks[7], (E, 1, S), jnp.float32)
    wr = 0.1 * jax.random.normal(ks[8], (1, S), jnp.float32)   # linear reward weights
    br = 0.1 * jax.random.normal(ks[9], (1, 1), jnp.float32)
    params = (wms, wma, bm, wvs, wva, bv, wr, br)

    best_action, returns = random_shooting_plan(
        current_state, actions, params,
        ensemble_size=E, n_candidates=N, plan_horizon=T,
        use_reward=True, use_exploration=True, expl_scale=1.0)

    jax.block_until_ready((best_action, returns))
    assert best_action.shape == (1, A)
    assert returns.shape == (1, N)
    print("KERNEL_OK")
</pallas_src>

<mosaic_0001>
module attributes {stable_mosaic.version = 11 : i64} {
  func.func @_planner_kernel(%arg0: i32, %arg1: memref<8x5x128xbf16, #tpu.memory_space<vmem>>, %arg2: memref<64x1xf32, #tpu.memory_space<vmem>>, %arg3: memref<128x64xbf16, #tpu.memory_space<vmem>>, %arg4: memref<128x5xbf16, #tpu.memory_space<vmem>>, %arg5: memref<1x64xbf16, #tpu.memory_space<vmem>>, %arg6: memref<1xf32, #tpu.memory_space<smem>>, %arg7: memref<1x128xf32, #tpu.memory_space<vmem>>) attributes {dimension_semantics = [#tpu.dimension_semantics<parallel>], iteration_bounds = array<i64: 1>, scalar_prefetch = 0 : i64, scratch_operands = 0 : i64, tpu.core_type = #tpu.core_type<tc>, window_params = [{transform_indices = @transform_0, window_bounds = array<i64: 8, 5, 128>}, {pipeline_mode = #tpu.pipeline_mode<synchronous>, transform_indices = @transform_1, window_bounds = array<i64: 64, 1>}, {pipeline_mode = #tpu.pipeline_mode<synchronous>, transform_indices = @transform_2, window_bounds = array<i64: 128, 64>}, {pipeline_mode = #tpu.pipeline_mode<synchronous>, transform_indices = @transform_3, window_bounds = array<i64: 128, 5>}, {pipeline_mode = #tpu.pipeline_mode<synchronous>, transform_indices = @transform_4, window_bounds = array<i64: 1, 64>}, {transform_indices = @transform_5, window_bounds = array<i64: 1>}, {transform_indices = @transform_6, window_bounds = array<i64: 1, 128>}]} {
    %c0 = arith.constant 0 : index
    %c0_0 = arith.constant 0 : index
    %0 = vector.load %arg3[%c0, %c0_0] : memref<128x64xbf16, #tpu.memory_space<vmem>>, vector<128x64xbf16>
    %c0_1 = arith.constant 0 : index
    %c0_2 = arith.constant 0 : index
    %1 = vector.load %arg4[%c0_1, %c0_2] : memref<128x5xbf16, #tpu.memory_space<vmem>>, vector<128x5xbf16>
    %c0_3 = arith.constant 0 : index
    %c0_4 = arith.constant 0 : index
    %2 = vector.load %arg5[%c0_3, %c0_4] : memref<1x64xbf16, #tpu.memory_space<vmem>>, vector<1x64xbf16>
    %c0_5 = arith.constant 0 : index
    %3 = memref.load %arg6[%c0_5] : memref<1xf32, #tpu.memory_space<smem>>
    %c0_6 = arith.constant 0 : index
    %c0_7 = arith.constant 0 : index
    %4 = vector.load %arg2[%c0_6, %c0_7] : memref<64x1xf32, #tpu.memory_space<vmem>>, vector<64x1xf32>
    %5 = vector.shape_cast %4 : vector<64x1xf32> to vector<64x1xf32>
    %6 = vector.broadcast %5 : vector<64x1xf32> to vector<64x128xf32>
    %cst = arith.constant 0.000000e+00 : f32
    %7 = vector.broadcast %cst : f32 to vector<1x128xf32>
    %c0_i32 = arith.constant 0 : i32
    %8 = arith.index_cast %c0_i32 : i32 to index
    %c0_8 = arith.constant 0 : index
    %c0_9 = arith.constant 0 : index
    %9 = vector.load %arg1[%8, %c0_8, %c0_9] : memref<8x5x128xbf16, #tpu.memory_space<vmem>>, vector<1x5x128xbf16>
    %10 = vector.shape_cast %9 : vector<1x5x128xbf16> to vector<5x128xbf16>
    %11 = arith.truncf %6 : vector<64x128xf32> to vector<64x128xbf16>
    %cst_10 = arith.constant dense<0.000000e+00> : vector<128x128xf32>
    %12 = tpu.matmul %0, %11, %cst_10 {dimension_numbers = #tpu.dot_dimension_numbers<[1], [0], [0], [1], [0, 0, 1, 1], [], []>} : vector<128x64xbf16>, vector<64x128xbf16>, vector<128x128xf32> -> vector<128x128xf32>
    %cst_11 = arith.constant dense<0.000000e+00> : vector<128x128xf32>
    %13 = tpu.matmul %1, %10, %cst_11 {dimension_numbers = #tpu.dot_dimension_numbers<[1], [0], [0], [1], [0, 0, 1, 1], [], []>} : vector<128x5xbf16>, vector<5x128xbf16>, vector<128x128xf32> -> vector<128x128xf32>
    %14 = arith.addf %12, %13 : vector<128x128xf32>
    %15 = vector.extract_strided_slice %14 {offsets = [0, 0], sizes = [64, 128], strides = [1, 1]} : vector<128x128xf32> to vector<64x128xf32>
    %16 = math.tanh %15 : vector<64x128xf32>
    %17 = vector.extract_strided_slice %14 {offsets = [64, 0], sizes = [64, 128], strides = [1, 1]} : vector<128x128xf32> to vector<64x128xf32>
    %cst_12 = arith.constant 0.000000e+00 : f32
    %18 = vector.broadcast %cst_12 : f32 to vector<64x128xf32>
    %19 = arith.maximumf %17, %18 : vector<64x128xf32>
    %20 = vector.broadcast %cst_12 : f32 to vector<64x128xf32>
    %21 = arith.subf %17, %20 : vector<64x128xf32>
    %22 = arith.cmpf one, %21, %21 : vector<64x128xf32>
    %23 = vector.broadcast %cst_12 : f32 to vector<64x128xf32>
    %24 = arith.addf %17, %23 : vector<64x128xf32>
    %25 = math.absf %21 : vector<64x128xf32>
    %cst_13 = arith.constant 0.000000e+00 : f32
    %26 = vector.broadcast %cst_13 : f32 to vector<64x128xf32>
    %27 = arith.subf %26, %25 : vector<64x128xf32>
    %28 = math.exp %27 : vector<64x128xf32>
    %29 = math.log1p %28 : vector<64x128xf32>
    %30 = arith.addf %19, %29 : vector<64x128xf32>
    %31 = arith.select %22, %24, %30 : vector<64x128xi1>, vector<64x128xf32>
    %32 = arith.addf %6, %16 : vector<64x128xf32>
    %33 = vector.shape_cast %16 : vector<64x128xf32> to vector<4x16x128xf32>
    %cst_14 = arith.constant dense<0.000000e+00> : vector<16x128xf32>
    %34 = vector.multi_reduction <add>, %33, %cst_14 [0] : vector<4x16x128xf32> to vector<16x128xf32>
    %35 = vector.shape_cast %34 : vector<16x128xf32> to vector<1x16x128xf32>
    %cst_15 = arith.constant 4.000000e+00 : f32
    %36 = vector.broadcast %cst_15 : f32 to vector<1x16x128xf32>
    %37 = arith.divf %35, %36 : vector<1x16x128xf32>
    %38 = vector.broadcast %37 : vector<1x16x128xf32> to vector<4x16x128xf32>
    %39 = arith.subf %33, %38 : vector<4x16x128xf32>
    %40 = arith.mulf %39, %39 : vector<4x16x128xf32>
    %cst_16 = arith.constant dense<0.000000e+00> : vector<128xf32>
    %41 = vector.multi_reduction <add>, %40, %cst_16 [0, 1] : vector<4x16x128xf32> to vector<128xf32>
    %cst_17 = arith.constant 0.333333343 : f32
    %42 = vector.broadcast %cst_17 : f32 to vector<128xf32>
    %43 = arith.mulf %41, %42 : vector<128xf32>
    %cst_18 = arith.constant dense<0.000000e+00> : vector<128xf32>
    %44 = vector.multi_reduction <add>, %31, %cst_18 [0] : vector<64x128xf32> to vector<128xf32>
    %cst_19 = arith.constant 2.500000e-01 : f32
    %45 = vector.broadcast %cst_19 : f32 to vector<128xf32>
    %46 = arith.mulf %44, %45 : vector<128xf32>
    %47 = arith.addf %43, %46 : vector<128xf32>
    %48 = vector.shape_cast %47 : vector<128xf32> to vector<1x128xf32>
    %cst_20 = arith.constant 1.000000e+00 : f32
    %49 = vector.broadcast %cst_20 : f32 to vector<1x128xf32>
    %50 = arith.mulf %49, %48 : vector<1x128xf32>
    %51 = arith.addf %7, %50 : vector<1x128xf32>
    %52 = arith.truncf %32 : vector<64x128xf32> to vector<64x128xbf16>
    %cst_21 = arith.constant dense<0.000000e+00> : vector<1x128xf32>
    %53 = tpu.matmul %2, %52, %cst_21 {dimension_numbers = #tpu.dot_dimension_numbers<[1], [0], [0], [1], [0, 0, 1, 1], [], []>} : vector<1x64xbf16>, vector<64x128xbf16>, vector<1x128xf32> -> vector<1x128xf32>
    %54 = vector.broadcast %3 : f32 to vector<1x128xf32>
    %55 = arith.addf %53, %54 : vector<1x128xf32>
    %56 = arith.addf %51, %55 : vector<1x128xf32>
    %c1_i32 = arith.constant 1 : i32
    %57 = arith.index_cast %c1_i32 : i32 to index
    %c0_22 = arith.constant 0 : index
    %c0_23 = arith.constant 0 : index
    %58 = vector.load %arg1[%57, %c0_22, %c0_23] : memref<8x5x128xbf16, #tpu.memory_space<vmem>>, vector<1x5x128xbf16>
    %59 = vector.shape_cast %58 : vector<1x5x128xbf16> to vector<5x128xbf16>
    %60 = arith.truncf %32 : vector<64x128xf32> to vector<64x128xbf16>
    %cst_24 = arith.constant dense<0.000000e+00> : vector<128x128xf32>
    %61 = tpu.matmul %0, %60, %cst_24 {dimension_numbers = #tpu.dot_dimension_numbers<[1], [0], [0], [1], [0, 0, 1, 1], [], []>} : vector<128x64xbf16>, vector<64x128xbf16>, vector<128x128xf32> -> vector<128x128xf32>
    %cst_25 = arith.constant dense<0.000000e+00> : vector<128x128xf32>
    %62 = tpu.matmul %1, %59, %cst_25 {dimension_numbers = #tpu.dot_dimension_numbers<[1], [0], [0], [1], [0, 0, 1, 1], [], []>} : vector<128x5xbf16>, vector<5x128xbf16>, vector<128x128xf32> -> vector<128x128xf32>
    %63 = arith.addf %61, %62 : vector<128x128xf32>
    %64 = vector.extract_strided_slice %63 {offsets = [0, 0], sizes = [64, 128], strides = [1, 1]} : vector<128x128xf32> to vector<64x128xf32>
    %65 = math.tanh %64 : vector<64x128xf32>
    %66 = vector.extract_strided_slice %63 {offsets = [64, 0], sizes = [64, 128], strides = [1, 1]} : vector<128x128xf32> to vector<64x128xf32>
    %cst_26 = arith.constant 0.000000e+00 : f32
    %67 = vector.broadcast %cst_26 : f32 to vector<64x128xf32>
    %68 = arith.maximumf %66, %67 : vector<64x128xf32>
    %69 = vector.broadcast %cst_26 : f32 to vector<64x128xf32>
    %70 = arith.subf %66, %69 : vector<64x128xf32>
    %71 = arith.cmpf one, %70, %70 : vector<64x128xf32>
    %72 = vector.broadcast %cst_26 : f32 to vector<64x128xf32>
    %73 = arith.addf %66, %72 : vector<64x128xf32>
    %74 = math.absf %70 : vector<64x128xf32>
    %cst_27 = arith.constant 0.000000e+00 : f32
    %75 = vector.broadcast %cst_27 : f32 to vector<64x128xf32>
    %76 = arith.subf %75, %74 : vector<64x128xf32>
    %77 = math.exp %76 : vector<64x128xf32>
    %78 = math.log1p %77 : vector<64x128xf32>
    %79 = arith.addf %68, %78 : vector<64x128xf32>
    %80 = arith.select %71, %73, %79 : vector<64x128xi1>, vector<64x128xf32>
    %81 = arith.addf %32, %65 : vector<64x128xf32>
    %82 = vector.shape_cast %65 : vector<64x128xf32> to vector<4x16x128xf32>
    %cst_28 = arith.constant dense<0.000000e+00> : vector<16x128xf32>
    %83 = vector.multi_reduction <add>, %82, %cst_28 [0] : vector<4x16x128xf32> to vector<16x128xf32>
    %84 = vector.shape_cast %83 : vector<16x128xf32> to vector<1x16x128xf32>
    %cst_29 = arith.constant 4.000000e+00 : f32
    %85 = vector.broadcast %cst_29 : f32 to vector<1x16x128xf32>
    %86 = arith.divf %84, %85 : vector<1x16x128xf32>
    %87 = vector.broadcast %86 : vector<1x16x128xf32> to vector<4x16x128xf32>
    %88 = arith.subf %82, %87 : vector<4x16x128xf32>
    %89 = arith.mulf %88, %88 : vector<4x16x128xf32>
    %cst_30 = arith.constant dense<0.000000e+00> : vector<128xf32>
    %90 = vector.multi_reduction <add>, %89, %cst_30 [0, 1] : vector<4x16x128xf32> to vector<128xf32>
    %cst_31 = arith.constant 0.333333343 : f32
    %91 = vector.broadcast %cst_31 : f32 to vector<128xf32>
    %92 = arith.mulf %90, %91 : vector<128xf32>
    %cst_32 = arith.constant dense<0.000000e+00> : vector<128xf32>
    %93 = vector.multi_reduction <add>, %80, %cst_32 [0] : vector<64x128xf32> to vector<128xf32>
    %cst_33 = arith.constant 2.500000e-01 : f32
    %94 = vector.broadcast %cst_33 : f32 to vector<128xf32>
    %95 = arith.mulf %93, %94 : vector<128xf32>
    %96 = arith.addf %92, %95 : vector<128xf32>
    %97 = vector.shape_cast %96 : vector<128xf32> to vector<1x128xf32>
    %cst_34 = arith.constant 1.000000e+00 : f32
    %98 = vector.broadcast %cst_34 : f32 to vector<1x128xf32>
    %99 = arith.mulf %98, %97 : vector<1x128xf32>
    %100 = arith.addf %56, %99 : vector<1x128xf32>
    %101 = arith.truncf %81 : vector<64x128xf32> to vector<64x128xbf16>
    %cst_35 = arith.constant dense<0.000000e+00> : vector<1x128xf32>
    %102 = tpu.matmul %2, %101, %cst_35 {dimension_numbers = #tpu.dot_dimension_numbers<[1], [0], [0], [1], [0, 0, 1, 1], [], []>} : vector<1x64xbf16>, vector<64x128xbf16>, vector<1x128xf32> -> vector<1x128xf32>
    %103 = vector.broadcast %3 : f32 to vector<1x128xf32>
    %104 = arith.addf %102, %103 : vector<1x128xf32>
    %105 = arith.addf %100, %104 : vector<1x128xf32>
    %c2_i32 = arith.constant 2 : i32
    %106 = arith.index_cast %c2_i32 : i32 to index
    %c0_36 = arith.constant 0 : index
    %c0_37 = arith.constant 0 : index
    %107 = vector.load %arg1[%106, %c0_36, %c0_37] : memref<8x5x128xbf16, #tpu.memory_space<vmem>>, vector<1x5x128xbf16>
    %108 = vector.shape_cast %107 : vector<1x5x128xbf16> to vector<5x128xbf16>
    %109 = arith.truncf %81 : vector<64x128xf32> to vector<64x128xbf16>
    %cst_38 = arith.constant dense<0.000000e+00> : vector<128x128xf32>
    %110 = tpu.matmul %0, %109, %cst_38 {dimension_numbers = #tpu.dot_dimension_numbers<[1], [0], [0], [1], [0, 0, 1, 1], [], []>} : vector<128x64xbf16>, vector<64x128xbf16>, vector<128x128xf32> -> vector<128x128xf32>
    %cst_39 = arith.constant dense<0.000000e+00> : vector<128x128xf32>
    %111 = tpu.matmul %1, %108, %cst_39 {dimension_numbers = #tpu.dot_dimension_numbers<[1], [0], [0], [1], [0, 0, 1, 1], [], []>} : vector<128x5xbf16>, vector<5x128xbf16>, vector<128x128xf32> -> vector<128x128xf32>
    %112 = arith.addf %110, %111 : vector<128x128xf32>
    %113 = vector.extract_strided_slice %112 {offsets = [0, 0], sizes = [64, 128], strides = [1, 1]} : vector<128x128xf32> to vector<64x128xf32>
    %114 = math.tanh %113 : vector<64x128xf32>
    %115 = vector.extract_strided_slice %112 {offsets = [64, 0], sizes = [64, 128], strides = [1, 1]} : vector<128x128xf32> to vector<64x128xf32>
    %cst_40 = arith.constant 0.000000e+00 : f32
    %116 = vector.broadcast %cst_40 : f32 to vector<64x128xf32>
    %117 = arith.maximumf %115, %116 : vector<64x128xf32>
    %118 = vector.broadcast %cst_40 : f32 to vector<64x128xf32>
    %119 = arith.subf %115, %118 : vector<64x128xf32>
    %120 = arith.cmpf one, %119, %119 : vector<64x128xf32>
    %121 = vector.broadcast %cst_40 : f32 to vector<64x128xf32>
    %122 = arith.addf %115, %121 : vector<64x128xf32>
    %123 = math.absf %119 : vector<64x128xf32>
    %cst_41 = arith.constant 0.000000e+00 : f32
    %124 = vector.broadcast %cst_41 : f32 to vector<64x128xf32>
    %125 = arith.subf %124, %123 : vector<64x128xf32>
    %126 = math.exp %125 : vector<64x128xf32>
    %127 = math.log1p %126 : vector<64x128xf32>
    %128 = arith.addf %117, %127 : vector<64x128xf32>
    %129 = arith.select %120, %122, %128 : vector<64x128xi1>, vector<64x128xf32>
    %130 = arith.addf %81, %114 : vector<64x128xf32>
    %131 = vector.shape_cast %114 : vector<64x128xf32> to vector<4x16x128xf32>
    %cst_42 = arith.constant dense<0.000000e+00> : vector<16x128xf32>
    %132 = vector.multi_reduction <add>, %131, %cst_42 [0] : vector<4x16x128xf32> to vector<16x128xf32>
    %133 = vector.shape_cast %132 : vector<16x128xf32> to vector<1x16x128xf32>
    %cst_43 = arith.constant 4.000000e+00 : f32
    %134 = vector.broadcast %cst_43 : f32 to vector<1x16x128xf32>
    %135 = arith.divf %133, %134 : vector<1x16x128xf32>
    %136 = vector.broadcast %135 : vector<1x16x128xf32> to vector<4x16x128xf32>
    %137 = arith.subf %131, %136 : vector<4x16x128xf32>
    %138 = arith.mulf %137, %137 : vector<4x16x128xf32>
    %cst_44 = arith.constant dense<0.000000e+00> : vector<128xf32>
    %139 = vector.multi_reduction <add>, %138, %cst_44 [0, 1] : vector<4x16x128xf32> to vector<128xf32>
    %cst_45 = arith.constant 0.333333343 : f32
    %140 = vector.broadcast %cst_45 : f32 to vector<128xf32>
    %141 = arith.mulf %139, %140 : vector<128xf32>
    %cst_46 = arith.constant dense<0.000000e+00> : vector<128xf32>
    %142 = vector.multi_reduction <add>, %129, %cst_46 [0] : vector<64x128xf32> to vector<128xf32>
    %cst_47 = arith.constant 2.500000e-01 : f32
    %143 = vector.broadcast %cst_47 : f32 to vector<128xf32>
    %144 = arith.mulf %142, %143 : vector<128xf32>
    %145 = arith.addf %141, %144 : vector<128xf32>
    %146 = vector.shape_cast %145 : vector<128xf32> to vector<1x128xf32>
    %cst_48 = arith.constant 1.000000e+00 : f32
    %147 = vector.broadcast %cst_48 : f32 to vector<1x128xf32>
    %148 = arith.mulf %147, %146 : vector<1x128xf32>
    %149 = arith.addf %105, %148 : vector<1x128xf32>
    %150 = arith.truncf %130 : vector<64x128xf32> to vector<64x128xbf16>
    %cst_49 = arith.constant dense<0.000000e+00> : vector<1x128xf32>
    %151 = tpu.matmul %2, %150, %cst_49 {dimension_numbers = #tpu.dot_dimension_numbers<[1], [0], [0], [1], [0, 0, 1, 1], [], []>} : vector<1x64xbf16>, vector<64x128xbf16>, vector<1x128xf32> -> vector<1x128xf32>
    %152 = vector.broadcast %3 : f32 to vector<1x128xf32>
    %153 = arith.addf %151, %152 : vector<1x128xf32>
    %154 = arith.addf %149, %153 : vector<1x128xf32>
    %c3_i32 = arith.constant 3 : i32
    %155 = arith.index_cast %c3_i32 : i32 to index
    %c0_50 = arith.constant 0 : index
    %c0_51 = arith.constant 0 : index
    %156 = vector.load %arg1[%155, %c0_50, %c0_51] : memref<8x5x128xbf16, #tpu.memory_space<vmem>>, vector<1x5x128xbf16>
    %157 = vector.shape_cast %156 : vector<1x5x128xbf16> to vector<5x128xbf16>
    %158 = arith.truncf %130 : vector<64x128xf32> to vector<64x128xbf16>
    %cst_52 = arith.constant dense<0.000000e+00> : vector<128x128xf32>
    %159 = tpu.matmul %0, %158, %cst_52 {dimension_numbers = #tpu.dot_dimension_numbers<[1], [0], [0], [1], [0, 0, 1, 1], [], []>} : vector<128x64xbf16>, vector<64x128xbf16>, vector<128x128xf32> -> vector<128x128xf32>
    %cst_53 = arith.constant dense<0.000000e+00> : vector<128x128xf32>
    %160 = tpu.matmul %1, %157, %cst_53 {dimension_numbers = #tpu.dot_dimension_numbers<[1], [0], [0], [1], [0, 0, 1, 1], [], []>} : vector<128x5xbf16>, vector<5x128xbf16>, vector<128x128xf32> -> vector<128x128xf32>
    %161 = arith.addf %159, %160 : vector<128x128xf32>
    %162 = vector.extract_strided_slice %161 {offsets = [0, 0], sizes = [64, 128], strides = [1, 1]} : vector<128x128xf32> to vector<64x128xf32>
    %163 = math.tanh %162 : vector<64x128xf32>
    %164 = vector.extract_strided_slice %161 {offsets = [64, 0], sizes = [64, 128], strides = [1, 1]} : vector<128x128xf32> to vector<64x128xf32>
    %cst_54 = arith.constant 0.000000e+00 : f32
    %165 = vector.broadcast %cst_54 : f32 to vector<64x128xf32>
    %166 = arith.maximumf %164, %165 : vector<64x128xf32>
    %167 = vector.broadcast %cst_54 : f32 to vector<64x128xf32>
    %168 = arith.subf %164, %167 : vector<64x128xf32>
    %169 = arith.cmpf one, %168, %168 : vector<64x128xf32>
    %170 = vector.broadcast %cst_54 : f32 to vector<64x128xf32>
    %171 = arith.addf %164, %170 : vector<64x128xf32>
    %172 = math.absf %168 : vector<64x128xf32>
    %cst_55 = arith.constant 0.000000e+00 : f32
    %173 = vector.broadcast %cst_55 : f32 to vector<64x128xf32>
    %174 = arith.subf %173, %172 : vector<64x128xf32>
    %175 = math.exp %174 : vector<64x128xf32>
    %176 = math.log1p %175 : vector<64x128xf32>
    %177 = arith.addf %166, %176 : vector<64x128xf32>
    %178 = arith.select %169, %171, %177 : vector<64x128xi1>, vector<64x128xf32>
    %179 = arith.addf %130, %163 : vector<64x128xf32>
    %180 = vector.shape_cast %163 : vector<64x128xf32> to vector<4x16x128xf32>
    %cst_56 = arith.constant dense<0.000000e+00> : vector<16x128xf32>
    %181 = vector.multi_reduction <add>, %180, %cst_56 [0] : vector<4x16x128xf32> to vector<16x128xf32>
    %182 = vector.shape_cast %181 : vector<16x128xf32> to vector<1x16x128xf32>
    %cst_57 = arith.constant 4.000000e+00 : f32
    %183 = vector.broadcast %cst_57 : f32 to vector<1x16x128xf32>
    %184 = arith.divf %182, %183 : vector<1x16x128xf32>
    %185 = vector.broadcast %184 : vector<1x16x128xf32> to vector<4x16x128xf32>
    %186 = arith.subf %180, %185 : vector<4x16x128xf32>
    %187 = arith.mulf %186, %186 : vector<4x16x128xf32>
    %cst_58 = arith.constant dense<0.000000e+00> : vector<128xf32>
    %188 = vector.multi_reduction <add>, %187, %cst_58 [0, 1] : vector<4x16x128xf32> to vector<128xf32>
    %cst_59 = arith.constant 0.333333343 : f32
    %189 = vector.broadcast %cst_59 : f32 to vector<128xf32>
    %190 = arith.mulf %188, %189 : vector<128xf32>
    %cst_60 = arith.constant dense<0.000000e+00> : vector<128xf32>
    %191 = vector.multi_reduction <add>, %178, %cst_60 [0] : vector<64x128xf32> to vector<128xf32>
    %cst_61 = arith.constant 2.500000e-01 : f32
    %192 = vector.broadcast %cst_61 : f32 to vector<128xf32>
    %193 = arith.mulf %191, %192 : vector<128xf32>
    %194 = arith.addf %190, %193 : vector<128xf32>
    %195 = vector.shape_cast %194 : vector<128xf32> to vector<1x128xf32>
    %cst_62 = arith.constant 1.000000e+00 : f32
    %196 = vector.broadcast %cst_62 : f32 to vector<1x128xf32>
    %197 = arith.mulf %196, %195 : vector<1x128xf32>
    %198 = arith.addf %154, %197 : vector<1x128xf32>
    %199 = arith.truncf %179 : vector<64x128xf32> to vector<64x128xbf16>
    %cst_63 = arith.constant dense<0.000000e+00> : vector<1x128xf32>
    %200 = tpu.matmul %2, %199, %cst_63 {dimension_numbers = #tpu.dot_dimension_numbers<[1], [0], [0], [1], [0, 0, 1, 1], [], []>} : vector<1x64xbf16>, vector<64x128xbf16>, vector<1x128xf32> -> vector<1x128xf32>
    %201 = vector.broadcast %3 : f32 to vector<1x128xf32>
    %202 = arith.addf %200, %201 : vector<1x128xf32>
    %203 = arith.addf %198, %202 : vector<1x128xf32>
    %c4_i32 = arith.constant 4 : i32
    %204 = arith.index_cast %c4_i32 : i32 to index
    %c0_64 = arith.constant 0 : index
    %c0_65 = arith.constant 0 : index
    %205 = vector.load %arg1[%204, %c0_64, %c0_65] : memref<8x5x128xbf16, #tpu.memory_space<vmem>>, vector<1x5x128xbf16>
    %206 = vector.shape_cast %205 : vector<1x5x128xbf16> to vector<5x128xbf16>
    %207 = arith.truncf %179 : vector<64x128xf32> to vector<64x128xbf16>
    %cst_66 = arith.constant dense<0.000000e+00> : vector<128x128xf32>
    %208 = tpu.matmul %0, %207, %cst_66 {dimension_numbers = #tpu.dot_dimension_numbers<[1], [0], [0], [1], [0, 0, 1, 1], [], []>} : vector<128x64xbf16>, vector<64x128xbf16>, vector<128x128xf32> -> vector<128x128xf32>
    %cst_67 = arith.constant dense<0.000000e+00> : vector<128x128xf32>
    %209 = tpu.matmul %1, %206, %cst_67 {dimension_numbers = #tpu.dot_dimension_numbers<[1], [0], [0], [1], [0, 0, 1, 1], [], []>} : vector<128x5xbf16>, vector<5x128xbf16>, vector<128x128xf32> -> vector<128x128xf32>
    %210 = arith.addf %208, %209 : vector<128x128xf32>
    %211 = vector.extract_strided_slice %210 {offsets = [0, 0], sizes = [64, 128], strides = [1, 1]} : vector<128x128xf32> to vector<64x128xf32>
    %212 = math.tanh %211 : vector<64x128xf32>
    %213 = vector.extract_strided_slice %210 {offsets = [64, 0], sizes = [64, 128], strides = [1, 1]} : vector<128x128xf32> to vector<64x128xf32>
    %cst_68 = arith.constant 0.000000e+00 : f32
    %214 = vector.broadcast %cst_68 : f32 to vector<64x128xf32>
    %215 = arith.maximumf %213, %214 : vector<64x128xf32>
    %216 = vector.broadcast %cst_68 : f32 to vector<64x128xf32>
    %217 = arith.subf %213, %216 : vector<64x128xf32>
    %218 = arith.cmpf one, %217, %217 : vector<64x128xf32>
    %219 = vector.broadcast %cst_68 : f32 to vector<64x128xf32>
    %220 = arith.addf %213, %219 : vector<64x128xf32>
    %221 = math.absf %217 : vector<64x128xf32>
    %cst_69 = arith.constant 0.000000e+00 : f32
    %222 = vector.broadcast %cst_69 : f32 to vector<64x128xf32>
    %223 = arith.subf %222, %221 : vector<64x128xf32>
    %224 = math.exp %223 : vector<64x128xf32>
    %225 = math.log1p %224 : vector<64x128xf32>
    %226 = arith.addf %215, %225 : vector<64x128xf32>
    %227 = arith.select %218, %220, %226 : vector<64x128xi1>, vector<64x128xf32>
    %228 = arith.addf %179, %212 : vector<64x128xf32>
    %229 = vector.shape_cast %212 : vector<64x128xf32> to vector<4x16x128xf32>
    %cst_70 = arith.constant dense<0.000000e+00> : vector<16x128xf32>
    %230 = vector.multi_reduction <add>, %229, %cst_70 [0] : vector<4x16x128xf32> to vector<16x128xf32>
    %231 = vector.shape_cast %230 : vector<16x128xf32> to vector<1x16x128xf32>
    %cst_71 = arith.constant 4.000000e+00 : f32
    %232 = vector.broadcast %cst_71 : f32 to vector<1x16x128xf32>
    %233 = arith.divf %231, %232 : vector<1x16x128xf32>
    %234 = vector.broadcast %233 : vector<1x16x128xf32> to vector<4x16x128xf32>
    %235 = arith.subf %229, %234 : vector<4x16x128xf32>
    %236 = arith.mulf %235, %235 : vector<4x16x128xf32>
    %cst_72 = arith.constant dense<0.000000e+00> : vector<128xf32>
    %237 = vector.multi_reduction <add>, %236, %cst_72 [0, 1] : vector<4x16x128xf32> to vector<128xf32>
    %cst_73 = arith.constant 0.333333343 : f32
    %238 = vector.broadcast %cst_73 : f32 to vector<128xf32>
    %239 = arith.mulf %237, %238 : vector<128xf32>
    %cst_74 = arith.constant dense<0.000000e+00> : vector<128xf32>
    %240 = vector.multi_reduction <add>, %227, %cst_74 [0] : vector<64x128xf32> to vector<128xf32>
    %cst_75 = arith.constant 2.500000e-01 : f32
    %241 = vector.broadcast %cst_75 : f32 to vector<128xf32>
    %242 = arith.mulf %240, %241 : vector<128xf32>
    %243 = arith.addf %239, %242 : vector<128xf32>
    %244 = vector.shape_cast %243 : vector<128xf32> to vector<1x128xf32>
    %cst_76 = arith.constant 1.000000e+00 : f32
    %245 = vector.broadcast %cst_76 : f32 to vector<1x128xf32>
    %246 = arith.mulf %245, %244 : vector<1x128xf32>
    %247 = arith.addf %203, %246 : vector<1x128xf32>
    %248 = arith.truncf %228 : vector<64x128xf32> to vector<64x128xbf16>
    %cst_77 = arith.constant dense<0.000000e+00> : vector<1x128xf32>
    %249 = tpu.matmul %2, %248, %cst_77 {dimension_numbers = #tpu.dot_dimension_numbers<[1], [0], [0], [1], [0, 0, 1, 1], [], []>} : vector<1x64xbf16>, vector<64x128xbf16>, vector<1x128xf32> -> vector<1x128xf32>
    %250 = vector.broadcast %3 : f32 to vector<1x128xf32>
    %251 = arith.addf %249, %250 : vector<1x128xf32>
    %252 = arith.addf %247, %251 : vector<1x128xf32>
    %c5_i32 = arith.constant 5 : i32
    %253 = arith.index_cast %c5_i32 : i32 to index
    %c0_78 = arith.constant 0 : index
    %c0_79 = arith.constant 0 : index
    %254 = vector.load %arg1[%253, %c0_78, %c0_79] : memref<8x5x128xbf16, #tpu.memory_space<vmem>>, vector<1x5x128xbf16>
    %255 = vector.shape_cast %254 : vector<1x5x128xbf16> to vector<5x128xbf16>
    %256 = arith.truncf %228 : vector<64x128xf32> to vector<64x128xbf16>
    %cst_80 = arith.constant dense<0.000000e+00> : vector<128x128xf32>
    %257 = tpu.matmul %0, %256, %cst_80 {dimension_numbers = #tpu.dot_dimension_numbers<[1], [0], [0], [1], [0, 0, 1, 1], [], []>} : vector<128x64xbf16>, vector<64x128xbf16>, vector<128x128xf32> -> vector<128x128xf32>
    %cst_81 = arith.constant dense<0.000000e+00> : vector<128x128xf32>
    %258 = tpu.matmul %1, %255, %cst_81 {dimension_numbers = #tpu.dot_dimension_numbers<[1], [0], [0], [1], [0, 0, 1, 1], [], []>} : vector<128x5xbf16>, vector<5x128xbf16>, vector<128x128xf32> -> vector<128x128xf32>
    %259 = arith.addf %257, %258 : vector<128x128xf32>
    %260 = vector.extract_strided_slice %259 {offsets = [0, 0], sizes = [64, 128], strides = [1, 1]} : vector<128x128xf32> to vector<64x128xf32>
    %261 = math.tanh %260 : vector<64x128xf32>
    %262 = vector.extract_strided_slice %259 {offsets = [64, 0], sizes = [64, 128], strides = [1, 1]} : vector<128x128xf32> to vector<64x128xf32>
    %cst_82 = arith.constant 0.000000e+00 : f32
    %263 = vector.broadcast %cst_82 : f32 to vector<64x128xf32>
    %264 = arith.maximumf %262, %263 : vector<64x128xf32>
    %265 = vector.broadcast %cst_82 : f32 to vector<64x128xf32>
    %266 = arith.subf %262, %265 : vector<64x128xf32>
    %267 = arith.cmpf one, %266, %266 : vector<64x128xf32>
    %268 = vector.broadcast %cst_82 : f32 to vector<64x128xf32>
    %269 = arith.addf %262, %268 : vector<64x128xf32>
    %270 = math.absf %266 : vector<64x128xf32>
    %cst_83 = arith.constant 0.000000e+00 : f32
    %271 = vector.broadcast %cst_83 : f32 to vector<64x128xf32>
    %272 = arith.subf %271, %270 : vector<64x128xf32>
    %273 = math.exp %272 : vector<64x128xf32>
    %274 = math.log1p %273 : vector<64x128xf32>
    %275 = arith.addf %264, %274 : vector<64x128xf32>
    %276 = arith.select %267, %269, %275 : vector<64x128xi1>, vector<64x128xf32>
    %277 = arith.addf %228, %261 : vector<64x128xf32>
    %278 = vector.shape_cast %261 : vector<64x128xf32> to vector<4x16x128xf32>
    %cst_84 = arith.constant dense<0.000000e+00> : vector<16x128xf32>
    %279 = vector.multi_reduction <add>, %278, %cst_84 [0] : vector<4x16x128xf32> to vector<16x128xf32>
    %280 = vector.shape_cast %279 : vector<16x128xf32> to vector<1x16x128xf32>
    %cst_85 = arith.constant 4.000000e+00 : f32
    %281 = vector.broadcast %cst_85 : f32 to vector<1x16x128xf32>
    %282 = arith.divf %280, %281 : vector<1x16x128xf32>
    %283 = vector.broadcast %282 : vector<1x16x128xf32> to vector<4x16x128xf32>
    %284 = arith.subf %278, %283 : vector<4x16x128xf32>
    %285 = arith.mulf %284, %284 : vector<4x16x128xf32>
    %cst_86 = arith.constant dense<0.000000e+00> : vector<128xf32>
    %286 = vector.multi_reduction <add>, %285, %cst_86 [0, 1] : vector<4x16x128xf32> to vector<128xf32>
    %cst_87 = arith.constant 0.333333343 : f32
    %287 = vector.broadcast %cst_87 : f32 to vector<128xf32>
    %288 = arith.mulf %286, %287 : vector<128xf32>
    %cst_88 = arith.constant dense<0.000000e+00> : vector<128xf32>
    %289 = vector.multi_reduction <add>, %276, %cst_88 [0] : vector<64x128xf32> to vector<128xf32>
    %cst_89 = arith.constant 2.500000e-01 : f32
    %290 = vector.broadcast %cst_89 : f32 to vector<128xf32>
    %291 = arith.mulf %289, %290 : vector<128xf32>
    %292 = arith.addf %288, %291 : vector<128xf32>
    %293 = vector.shape_cast %292 : vector<128xf32> to vector<1x128xf32>
    %cst_90 = arith.constant 1.000000e+00 : f32
    %294 = vector.broadcast %cst_90 : f32 to vector<1x128xf32>
    %295 = arith.mulf %294, %293 : vector<1x128xf32>
    %296 = arith.addf %252, %295 : vector<1x128xf32>
    %297 = arith.truncf %277 : vector<64x128xf32> to vector<64x128xbf16>
    %cst_91 = arith.constant dense<0.000000e+00> : vector<1x128xf32>
    %298 = tpu.matmul %2, %297, %cst_91 {dimension_numbers = #tpu.dot_dimension_numbers<[1], [0], [0], [1], [0, 0, 1, 1], [], []>} : vector<1x64xbf16>, vector<64x128xbf16>, vector<1x128xf32> -> vector<1x128xf32>
    %299 = vector.broadcast %3 : f32 to vector<1x128xf32>
    %300 = arith.addf %298, %299 : vector<1x128xf32>
    %301 = arith.addf %296, %300 : vector<1x128xf32>
    %c6_i32 = arith.constant 6 : i32
    %302 = arith.index_cast %c6_i32 : i32 to index
    %c0_92 = arith.constant 0 : index
    %c0_93 = arith.constant 0 : index
    %303 = vector.load %arg1[%302, %c0_92, %c0_93] : memref<8x5x128xbf16, #tpu.memory_space<vmem>>, vector<1x5x128xbf16>
    %304 = vector.shape_cast %303 : vector<1x5x128xbf16> to vector<5x128xbf16>
    %305 = arith.truncf %277 : vector<64x128xf32> to vector<64x128xbf16>
    %cst_94 = arith.constant dense<0.000000e+00> : vector<128x128xf32>
    %306 = tpu.matmul %0, %305, %cst_94 {dimension_numbers = #tpu.dot_dimension_numbers<[1], [0], [0], [1], [0, 0, 1, 1], [], []>} : vector<128x64xbf16>, vector<64x128xbf16>, vector<128x128xf32> -> vector<128x128xf32>
    %cst_95 = arith.constant dense<0.000000e+00> : vector<128x128xf32>
    %307 = tpu.matmul %1, %304, %cst_95 {dimension_numbers = #tpu.dot_dimension_numbers<[1], [0], [0], [1], [0, 0, 1, 1], [], []>} : vector<128x5xbf16>, vector<5x128xbf16>, vector<128x128xf32> -> vector<128x128xf32>
    %308 = arith.addf %306, %307 : vector<128x128xf32>
    %309 = vector.extract_strided_slice %308 {offsets = [0, 0], sizes = [64, 128], strides = [1, 1]} : vector<128x128xf32> to vector<64x128xf32>
    %310 = math.tanh %309 : vector<64x128xf32>
    %311 = vector.extract_strided_slice %308 {offsets = [64, 0], sizes = [64, 128], strides = [1, 1]} : vector<128x128xf32> to vector<64x128xf32>
    %cst_96 = arith.constant 0.000000e+00 : f32
    %312 = vector.broadcast %cst_96 : f32 to vector<64x128xf32>
    %313 = arith.maximumf %311, %312 : vector<64x128xf32>
    %314 = vector.broadcast %cst_96 : f32 to vector<64x128xf32>
    %315 = arith.subf %311, %314 : vector<64x128xf32>
    %316 = arith.cmpf one, %315, %315 : vector<64x128xf32>
    %317 = vector.broadcast %cst_96 : f32 to vector<64x128xf32>
    %318 = arith.addf %311, %317 : vector<64x128xf32>
    %319 = math.absf %315 : vector<64x128xf32>
    %cst_97 = arith.constant 0.000000e+00 : f32
    %320 = vector.broadcast %cst_97 : f32 to vector<64x128xf32>
    %321 = arith.subf %320, %319 : vector<64x128xf32>
    %322 = math.exp %321 : vector<64x128xf32>
    %323 = math.log1p %322 : vector<64x128xf32>
    %324 = arith.addf %313, %323 : vector<64x128xf32>
    %325 = arith.select %316, %318, %324 : vector<64x128xi1>, vector<64x128xf32>
    %326 = arith.addf %277, %310 : vector<64x128xf32>
    %327 = vector.shape_cast %310 : vector<64x128xf32> to vector<4x16x128xf32>
    %cst_98 = arith.constant dense<0.000000e+00> : vector<16x128xf32>
    %328 = vector.multi_reduction <add>, %327, %cst_98 [0] : vector<4x16x128xf32> to vector<16x128xf32>
    %329 = vector.shape_cast %328 : vector<16x128xf32> to vector<1x16x128xf32>
    %cst_99 = arith.constant 4.000000e+00 : f32
    %330 = vector.broadcast %cst_99 : f32 to vector<1x16x128xf32>
    %331 = arith.divf %329, %330 : vector<1x16x128xf32>
    %332 = vector.broadcast %331 : vector<1x16x128xf32> to vector<4x16x128xf32>
    %333 = arith.subf %327, %332 : vector<4x16x128xf32>
    %334 = arith.mulf %333, %333 : vector<4x16x128xf32>
    %cst_100 = arith.constant dense<0.000000e+00> : vector<128xf32>
    %335 = vector.multi_reduction <add>, %334, %cst_100 [0, 1] : vector<4x16x128xf32> to vector<128xf32>
    %cst_101 = arith.constant 0.333333343 : f32
    %336 = vector.broadcast %cst_101 : f32 to vector<128xf32>
    %337 = arith.mulf %335, %336 : vector<128xf32>
    %cst_102 = arith.constant dense<0.000000e+00> : vector<128xf32>
    %338 = vector.multi_reduction <add>, %325, %cst_102 [0] : vector<64x128xf32> to vector<128xf32>
    %cst_103 = arith.constant 2.500000e-01 : f32
    %339 = vector.broadcast %cst_103 : f32 to vector<128xf32>
    %340 = arith.mulf %338, %339 : vector<128xf32>
    %341 = arith.addf %337, %340 : vector<128xf32>
    %342 = vector.shape_cast %341 : vector<128xf32> to vector<1x128xf32>
    %cst_104 = arith.constant 1.000000e+00 : f32
    %343 = vector.broadcast %cst_104 : f32 to vector<1x128xf32>
    %344 = arith.mulf %343, %342 : vector<1x128xf32>
    %345 = arith.addf %301, %344 : vector<1x128xf32>
    %346 = arith.truncf %326 : vector<64x128xf32> to vector<64x128xbf16>
    %cst_105 = arith.constant dense<0.000000e+00> : vector<1x128xf32>
    %347 = tpu.matmul %2, %346, %cst_105 {dimension_numbers = #tpu.dot_dimension_numbers<[1], [0], [0], [1], [0, 0, 1, 1], [], []>} : vector<1x64xbf16>, vector<64x128xbf16>, vector<1x128xf32> -> vector<1x128xf32>
    %348 = vector.broadcast %3 : f32 to vector<1x128xf32>
    %349 = arith.addf %347, %348 : vector<1x128xf32>
    %350 = arith.addf %345, %349 : vector<1x128xf32>
    %c7_i32 = arith.constant 7 : i32
    %351 = arith.index_cast %c7_i32 : i32 to index
    %c0_106 = arith.constant 0 : index
    %c0_107 = arith.constant 0 : index
    %352 = vector.load %arg1[%351, %c0_106, %c0_107] : memref<8x5x128xbf16, #tpu.memory_space<vmem>>, vector<1x5x128xbf16>
    %353 = vector.shape_cast %352 : vector<1x5x128xbf16> to vector<5x128xbf16>
    %354 = arith.truncf %326 : vector<64x128xf32> to vector<64x128xbf16>
    %cst_108 = arith.constant dense<0.000000e+00> : vector<128x128xf32>
    %355 = tpu.matmul %0, %354, %cst_108 {dimension_numbers = #tpu.dot_dimension_numbers<[1], [0], [0], [1], [0, 0, 1, 1], [], []>} : vector<128x64xbf16>, vector<64x128xbf16>, vector<128x128xf32> -> vector<128x128xf32>
    %cst_109 = arith.constant dense<0.000000e+00> : vector<128x128xf32>
    %356 = tpu.matmul %1, %353, %cst_109 {dimension_numbers = #tpu.dot_dimension_numbers<[1], [0], [0], [1], [0, 0, 1, 1], [], []>} : vector<128x5xbf16>, vector<5x128xbf16>, vector<128x128xf32> -> vector<128x128xf32>
    %357 = arith.addf %355, %356 : vector<128x128xf32>
    %358 = vector.extract_strided_slice %357 {offsets = [0, 0], sizes = [64, 128], strides = [1, 1]} : vector<128x128xf32> to vector<64x128xf32>
    %359 = math.tanh %358 : vector<64x128xf32>
    %360 = vector.extract_strided_slice %357 {offsets = [64, 0], sizes = [64, 128], strides = [1, 1]} : vector<128x128xf32> to vector<64x128xf32>
    %cst_110 = arith.constant 0.000000e+00 : f32
    %361 = vector.broadcast %cst_110 : f32 to vector<64x128xf32>
    %362 = arith.maximumf %360, %361 : vector<64x128xf32>
    %363 = vector.broadcast %cst_110 : f32 to vector<64x128xf32>
    %364 = arith.subf %360, %363 : vector<64x128xf32>
    %365 = arith.cmpf one, %364, %364 : vector<64x128xf32>
    %366 = vector.broadcast %cst_110 : f32 to vector<64x128xf32>
    %367 = arith.addf %360, %366 : vector<64x128xf32>
    %368 = math.absf %364 : vector<64x128xf32>
    %cst_111 = arith.constant 0.000000e+00 : f32
    %369 = vector.broadcast %cst_111 : f32 to vector<64x128xf32>
    %370 = arith.subf %369, %368 : vector<64x128xf32>
    %371 = math.exp %370 : vector<64x128xf32>
    %372 = math.log1p %371 : vector<64x128xf32>
    %373 = arith.addf %362, %372 : vector<64x128xf32>
    %374 = arith.select %365, %367, %373 : vector<64x128xi1>, vector<64x128xf32>
    %375 = arith.addf %326, %359 : vector<64x128xf32>
    %376 = vector.shape_cast %359 : vector<64x128xf32> to vector<4x16x128xf32>
    %cst_112 = arith.constant dense<0.000000e+00> : vector<16x128xf32>
    %377 = vector.multi_reduction <add>, %376, %cst_112 [0] : vector<4x16x128xf32> to vector<16x128xf32>
    %378 = vector.shape_cast %377 : vector<16x128xf32> to vector<1x16x128xf32>
    %cst_113 = arith.constant 4.000000e+00 : f32
    %379 = vector.broadcast %cst_113 : f32 to vector<1x16x128xf32>
    %380 = arith.divf %378, %379 : vector<1x16x128xf32>
    %381 = vector.broadcast %380 : vector<1x16x128xf32> to vector<4x16x128xf32>
    %382 = arith.subf %376, %381 : vector<4x16x128xf32>
    %383 = arith.mulf %382, %382 : vector<4x16x128xf32>
    %cst_114 = arith.constant dense<0.000000e+00> : vector<128xf32>
    %384 = vector.multi_reduction <add>, %383, %cst_114 [0, 1] : vector<4x16x128xf32> to vector<128xf32>
    %cst_115 = arith.constant 0.333333343 : f32
    %385 = vector.broadcast %cst_115 : f32 to vector<128xf32>
    %386 = arith.mulf %384, %385 : vector<128xf32>
    %cst_116 = arith.constant dense<0.000000e+00> : vector<128xf32>
    %387 = vector.multi_reduction <add>, %374, %cst_116 [0] : vector<64x128xf32> to vector<128xf32>
    %cst_117 = arith.constant 2.500000e-01 : f32
    %388 = vector.broadcast %cst_117 : f32 to vector<128xf32>
    %389 = arith.mulf %387, %388 : vector<128xf32>
    %390 = arith.addf %386, %389 : vector<128xf32>
    %391 = vector.shape_cast %390 : vector<128xf32> to vector<1x128xf32>
    %cst_118 = arith.constant 1.000000e+00 : f32
    %392 = vector.broadcast %cst_118 : f32 to vector<1x128xf32>
    %393 = arith.mulf %392, %391 : vector<1x128xf32>
    %394 = arith.addf %350, %393 : vector<1x128xf32>
    %395 = arith.truncf %375 : vector<64x128xf32> to vector<64x128xbf16>
    %cst_119 = arith.constant dense<0.000000e+00> : vector<1x128xf32>
    %396 = tpu.matmul %2, %395, %cst_119 {dimension_numbers = #tpu.dot_dimension_numbers<[1], [0], [0], [1], [0, 0, 1, 1], [], []>} : vector<1x64xbf16>, vector<64x128xbf16>, vector<1x128xf32> -> vector<1x128xf32>
    %397 = vector.broadcast %3 : f32 to vector<1x128xf32>
    %398 = arith.addf %396, %397 : vector<1x128xf32>
    %399 = arith.addf %394, %398 : vector<1x128xf32>
    %c8_i32 = arith.constant 8 : i32
    %400 = arith.cmpf one, %399, %399 : vector<1x128xf32>
    %cst_120 = arith.constant 0.000000e+00 : f32
    %401 = vector.broadcast %cst_120 : f32 to vector<1x128xf32>
    %402 = arith.select %400, %401, %399 : vector<1x128xi1>, vector<1x128xf32>
    %c0_121 = arith.constant 0 : index
    %c0_122 = arith.constant 0 : index
    %403 = vector.load %arg7[%c0_121, %c0_122] : memref<1x128xf32, #tpu.memory_space<vmem>>, vector<1x128xf32>
    tpu.vector_store %arg7[%c0_121, %c0_122], %402 {strides = array<i32>} : memref<1x128xf32, #tpu.memory_space<vmem>>, vector<1x128xf32>,
    return
  }
  func.func @transform_0(%arg0: i32) -> (i32, i32, i32) {
    %c0_i32 = arith.constant 0 : i32
    %c0_i32_0 = arith.constant 0 : i32
    %c0_i32_1 = arith.constant 0 : i32
    return %c0_i32, %c0_i32_0, %arg0 : i32, i32, i32
  }
  func.func @transform_1(%arg0: i32) -> (i32, i32) {
    %c0_i32 = arith.constant 0 : i32
    %c0_i32_0 = arith.constant 0 : i32
    %c0_i32_1 = arith.constant 0 : i32
    return %c0_i32, %c0_i32_0 : i32, i32
  }
  func.func @transform_2(%arg0: i32) -> (i32, i32) {
    %c0_i32 = arith.constant 0 : i32
    %c0_i32_0 = arith.constant 0 : i32
    %c0_i32_1 = arith.constant 0 : i32
    return %c0_i32, %c0_i32_0 : i32, i32
  }
  func.func @transform_3(%arg0: i32) -> (i32, i32) {
    %c0_i32 = arith.constant 0 : i32
    %c0_i32_0 = arith.constant 0 : i32
    %c0_i32_1 = arith.constant 0 : i32
    return %c0_i32, %c0_i32_0 : i32, i32
  }
  func.func @transform_4(%arg0: i32) -> (i32, i32) {
    %c0_i32 = arith.constant 0 : i32
    %c0_i32_0 = arith.constant 0 : i32
    %c0_i32_1 = arith.constant 0 : i32
    return %c0_i32, %c0_i32_0 : i32, i32
  }
  func.func @transform_5(%arg0: i32) -> i32 {
    %c0_i32 = arith.constant 0 : i32
    %c0_i32_0 = arith.constant 0 : i32
    return %c0_i32 : i32
  }
  func.func @transform_6(%arg0: i32) -> (i32, i32) {
    %c0_i32 = arith.constant 0 : i32
    %c0_i32_0 = arith.constant 0 : i32
    return %c0_i32, %arg0 : i32, i32
  }
}

</mosaic_0001>

<bundles_post_ra>
// kernel: tpu_custom_call.1
= control target key start
LH: loop header
LB: loop body
LE: loop exit
PB: predicated region body
PF: predicated region fallthrough
CT: control target
= control target key end

     0   :  { %vm178_vm0 = vcmask 1041408   ;;  %vm179_vm1 = vcmask 1042432   ;;  %v5380_v2 = vmov 0   ;;  %v5381_v5 = vmov 65535   ;;  %s7890_s0 = inlined_call_operand.vmem [shape: bf16[8,5,128], index: 0, kind: input, shape index: {}]   ;;  %s7891_s1 = inlined_call_operand.vmem [shape: f32[64,1], index: 1, kind: input, shape index: {}]   ;;  %s7892_s2 = inlined_call_operand.vmem [shape: bf16[128,64], index: 2, kind: input, shape index: {}]   ;;  %s7893_s3 = inlined_call_operand.vmem [shape: bf16[128,5], index: 3, kind: input, shape index: {}]   ;;  %s7894_s4 = inlined_call_operand.vmem [shape: bf16[1,64], index: 4, kind: input, shape index: {}]   ;;  %s7895_s5 = inlined_call_operand.<no memory space> [shape: f32[1], index: 5, kind: input, shape index: {}]   ;;  %s7896_s6 = inlined_call_operand.hbm [shape: f32[1,128], index: 6, kind: output, shape index: {}]  }
   0x1   :  { %v62_v0 = vld [vmem:[%s7891_s1 + $0x10] sm:$0xff]  ;;  %v60_v1 = vld [vmem:[%s7891_s1] sm:$0xff]  ;;  %4910 = vset.pattern.permute.xlu1 %v5380_v2  ;;  %4909 = vset.pattern.permute.xlu0 %v5380_v2  ;;  %v63_v3 = vld [vmem:[%s7891_s1 + $0x18] sm:$0xff]  ;;  %v180_v6 = vsel %vm178_vm0, 4294967295, %v5381_v5  ;;  %vm153_vm2 = vcmask 39936  }
   0x2   :  { %80 = vperm.xlu1 %4910, %v62_v0   ;;  %70 = vperm.xlu0 %4909, %v60_v1   ;;  %v108_v4 = vld [vmem:[%s7890_s0] sm:$0x7]  ;;  %v61_v7 = vld [vmem:[%s7891_s1 + $0x8] sm:$0xff]  ;;  %v5435_v8 = vsel %vm179_vm1, %v180_v6, 0  ;;  %v67_v14 = vld [vmem:[%s7891_s1 + $0x38] sm:$0xff] }
   0x3   :  { %7921 = vst [vmem:[#allocation6_spill] sm:$0xff] %v5435_v8  ;;  %v183_v9 = vand.u32 %v5435_v8, %v108_v4  ;;  %v65_v10 = vld [vmem:[%s7891_s1 + $0x28] sm:$0xff]  ;;  %v64_v11 = vld [vmem:[%s7891_s1 + $0x20] sm:$0xff]  ;;  %v66_v15 = vld [vmem:[%s7891_s1 + $0x30] sm:$0xff] }
   0x4   :  { %v5447_v12 = vld [vmem:[%s7893_s3] sm:$0xff]   ;;  %v5452_v13 = vld [vmem:[%s7893_s3 + $0x8] sm:$0xff]   ;;  %v5467_v16 = vld [vmem:[%s7893_s3 + $0x10] sm:$0xff]  }
   0x5   :  { %4298 = vmatprep.subr.bf16.mxu0 %v183_v9  ;;  %4300 = vmatprep.mubr.msk.bf16.mxu0 %vm153_vm2, %v5447_v12  ;;  %v5474_v17 = vld [vmem:[%s7893_s3 + $0x18] sm:$0xff]  }
   0x6   :  { %85 = vperm.xlu1 %4910, %v63_v3   ;;  %75 = vperm.xlu0 %4909, %v61_v7  }
   0x7   :  { %4299 = vmatpush3.bf16.msra.mxu0 %v183_v9  ;;  %4730 = vmatprep.subr.bf16.mxu1 %v183_v9 }
   0x8   :  { %4731 = vmatpush3.bf16.msra.mxu1 %v183_v9 }
   0xa   :  { %95 = vperm.xlu1 %4910, %v65_v10   ;;  %90 = vperm.xlu0 %4909, %v64_v11  }
   0xb   :  { %4301 = vmatmul.mubr.msk.bf16.vlgmr.msra.gmra.mrb[0].mxu0 %vm153_vm2, %v5452_v13 }
   0xc   :  { %4304 = vmatprep.mubr.msk.bf16.mxu0 %vm153_vm2, %v5467_v16 }
   0xe   :  { %105 = vperm.xlu1 %4910, %v67_v14   ;;  %100 = vperm.xlu0 %4909, %v66_v15  }
   0xf   :  { %12 = vsyncpa [#allocation4], 0  ;;  %v5481_v18 = vld [vmem:[%s7892_s2] sm:$0xff]   ;;  %vm322_vm3 = vcmask 523264   ;;  %v5493_v20 = vld [vmem:[%s7893_s3 + $0x28] sm:$0xff]   ;;  %v7897_v45 = vmov 0.0  }
  0x10   :  { %v5488_v19 = vld [vmem:[%s7893_s3 + $0x20] sm:$0xff]   ;;  %v5502_v21 = vld [vmem:[%s7893_s3 + $0x30] sm:$0xff]   ;;  %v5507_v22 = vld [vmem:[%s7893_s3 + $0x38] sm:$0xff]   ;;  %4340 = vmatprep.subr.bf16.mxu1 %v7897_v45  ;;  %vm5383_vm4 = vmmov 0  }
  0x11   :  { %4308 = vmatprep.mubr.msk.bf16.mxu1 %vm153_vm2, %v5488_v19  ;;  %v5540_v35 = vld [vmem:[%s7892_s2 + $0x8] sm:$0xff]   ;;  %v5545_v36 = vld [vmem:[%s7892_s2 + $0x10] sm:$0xff]   ;;  %v5554_v37 = vld [vmem:[%s7892_s2 + $0x18] sm:$0xff]  }
  0x12   :  { %4309 = vmatmul.mubr.msk.bf16.vlgmr.msra.gmra.mrb[0].mxu1 %vm153_vm2, %v5493_v20  ;;  %v5559_v38 = vld [vmem:[%s7892_s2 + $0x20] sm:$0xff]   ;;  %v5568_v39 = vld [vmem:[%s7892_s2 + $0x28] sm:$0xff]   ;;  %v5573_v40 = vld [vmem:[%s7892_s2 + $0x30] sm:$0xff]  }
  0x13   :  { %4305 = vmatmul.mubr.msk.bf16.gmra.mrb[4].mxu0 %vm153_vm2, %v5474_v17  ;;  %4312 = vmatprep.mubr.msk.bf16.mxu1 %vm153_vm2, %v5502_v21  ;;  %v5582_v41 = vld [vmem:[%s7892_s2 + $0x38] sm:$0xff]   ;;  %v3982_v51 = vld [vmem:[%s7890_s0 + $0x8] sm:$0x7] }
  0x14   :  { %4324 = vmatprep.mubr.msk.bf16.mxu0 %vm322_vm3, %v5481_v18  ;;  %v1169_v52 = vand.u32 %v3982_v51, %v5435_v8 }
  0x1a   :  { %4313 = vmatmul.mubr.msk.bf16.gmra.mrb[4].mxu1 %vm153_vm2, %v5507_v22 }
  0x1b   :  { %4348 = vmatprep.mubr.msk.bf16.mxu1 %vm5383_vm4, %v7897_v45 }
  0x81   :  { %v5513_v23 = vpop.permute.xlu1 %80  ;;  %v5515_v24 = vpop.permute.xlu0 %70 }
  0x85   :  { %v5517_v25 = vpop.permute.xlu1 %85  ;;  %v5519_v26 = vpop.permute.xlu0 %75 }
  0x86   :  { %v109_v27 = vpack.c.bf16 %v5519_v26, %v5515_v24  ;;  %v110_v28 = vpack.c.bf16 %v5517_v25, %v5513_v23 }
  0x88   :  { %4316 = vmatprep.subr.bf16.mxu0 %v109_v27 }
  0x89   :  { %v5525_v29 = vpop.permute.xlu1 %95  ;;  %v5527_v30 = vpop.permute.xlu0 %90  ;;  %4317 = vmatpush3.bf16.msra.mxu0 %v109_v27 }
  0x8a   :  { %4318 = vmatprep.subr.bf16.mxu0 %v110_v28  ;;  %v111_v31 = vpack.c.bf16 %v5525_v29, %v5527_v30 }
  0x8d   :  { %v5531_v32 = vpop.permute.xlu1 %105  ;;  %v5533_v33 = vpop.permute.xlu0 %100  ;;  %4319 = vmatpush3.bf16.msra.mxu0 %v110_v28 }
  0x8e   :  { %4320 = vmatprep.subr.bf16.mxu0 %v111_v31  ;;  %v112_v34 = vpack.c.bf16 %v5531_v32, %v5533_v33 }
  0x91   :  { %4321 = vmatpush3.bf16.msra.mxu0 %v111_v31 }
  0x92   :  { %4322 = vmatprep.subr.bf16.mxu0 %v112_v34 }
  0x95   :  { %4323 = vmatpush3.bf16.msra.mxu0 %v112_v34 }
  0x96   :  { %4406 = vmatprep.subr.bf16.mxu0 %v1169_v52 }
  0x98   :  { %4325 = vmatmul.mubr.msk.bf16.vlgmr.msra.gmra.mrb[0].mxu0 %vm322_vm3, %v5540_v35 }
  0x99   :  { %4328 = vmatprep.mubr.msk.bf16.mxu0 %vm322_vm3, %v5545_v36  ;;  %4407 = vmatpush3.bf16.msra.mxu0 %v1169_v52 }
  0xa0   :  { %4329 = vmatmul.mubr.msk.bf16.gmra.mrb[4].mxu0 %vm322_vm3, %v5554_v37 }
  0xa1   :  { %4332 = vmatprep.mubr.msk.bf16.mxu0 %vm322_vm3, %v5559_v38 }
  0xa8   :  { %4333 = vmatmul.mubr.msk.bf16.gmra.mrb[8].mxu0 %vm322_vm3, %v5568_v39 }
  0xa9   :  { %4336 = vmatprep.mubr.msk.bf16.mxu0 %vm322_vm3, %v5573_v40 }
  0xb0   :  { %4337 = vmatmul.mubr.msk.bf16.gmra.mrb[12].mxu0 %vm322_vm3, %v5582_v41 }
  0xb1   :  { %4408 = vmatprep.mubr.msk.bf16.mxu0 %vm153_vm2, %v5447_v12 }
  0xb8   :  { %4409 = vmatmul.mubr.msk.bf16.vlgmr.msra.gmra.mrb[16].mxu0 %vm153_vm2, %v5452_v13 }
  0xb9   :  { %4412 = vmatprep.mubr.msk.bf16.mxu0 %vm153_vm2, %v5467_v16 }
  0xc0   :  { %4413 = vmatmul.mubr.msk.bf16.gmra.mrb[20].mxu0 %vm153_vm2, %v5474_v17 }
  0xc1   :  { %4416 = vmatprep.mubr.msk.bf16.mxu0 %vm153_vm2, %v5488_v19 }
  0xc8   :  { %4417 = vmatmul.mubr.msk.bf16.gmra.mrb[24].mxu0 %vm153_vm2, %v5493_v20 }
  0xc9   :  { %4420 = vmatprep.mubr.msk.bf16.mxu0 %vm153_vm2, %v5502_v21 }
  0xd0   :  { %4421 = vmatmul.mubr.msk.bf16.gmra.mrb[28].mxu0 %vm153_vm2, %v5507_v22 }
  0xd1   :  { %4432 = vmatprep.mubr.msk.bf16.mxu0 %vm322_vm3, %v5481_v18 }
  0xe5   :  { %v4310_v42 = vpop.f32.mrb[0].mxu1 }
  0xe6   :  { %v251_v43 = vpop.f32.mrb[1].mxu1 }
  0xe7   :  { %v4311_v44 = vpop.f32.mrb[2].mxu1 }
  0xe8   :  { %v254_v46 = vpop.f32.mrb[3].mxu1 }
  0xed   :  { %v5589_v47 = vpop.f32.mrb[4].mxu1 }
  0xee   :  { %v5591_v48 = vpop.f32.mrb[5].mxu1 }
  0xef   :  { %v5593_v49 = vpop.f32.mrb[6].mxu1 }
  0xf0   :  { %v5595_v50 = vpop.f32.mrb[7].mxu1 }
 0x16b   :  { %v4326_v53 = vpop.f32.mrb[0].mxu0 }
 0x16c   :  { %4927 = vtanh.f32 %v4326_v53  ;;  %v381_v54 = vpop.f32.mrb[1].mxu0 }
 0x16d   :  { %4929 = vtanh.f32 %v381_v54  ;;  %v4327_v55 = vpop.f32.mrb[2].mxu0 }
 0x16e   :  { %4931 = vtanh.f32 %v4327_v55  ;;  %v384_v56 = vpop.f32.mrb[3].mxu0 }
 0x16f   :  { %4933 = vtanh.f32 %v384_v56 }
 0x173   :  { %v4330_v57 = vpop.f32.mrb[4].mxu0 }
 0x174   :  { %v397_v58 = vpop.f32.mrb[5].mxu0 }
 0x175   :  { %4935 = vtanh.f32 %v397_v58  ;;  %v4331_v59 = vpop.f32.mrb[6].mxu0 }
 0x176   :  { %v4928_v60 = vpop.eup %4927  ;;  %4937 = vtanh.f32 %v4330_v57  ;;  %v400_v61 = vpop.f32.mrb[7].mxu0 }
 0x177   :  { %v4930_v62 = vpop.eup %4929  ;;  %4939 = vtanh.f32 %v400_v61  ;;  %v5637_v27 = vadd.f32 %v4928_v60, %v5513_v23 }
 0x178   :  { %v4932_v63 = vpop.eup %4931  ;;  %v604_v0 = vadd.f32 %v4930_v62, %v4928_v60  ;;  %4941 = vtanh.f32 %v4331_v59  ;;  %v5616_v3 = vadd.f32 %v4930_v62, %v5515_v24 }
 0x179   :  { %v4934_v1 = vpop.eup %4933  ;;  %v5628_v10 = vadd.f32 %v4932_v63, %v5517_v25  ;;  %7922 = vst [vmem:[#allocation7_spill] sm:$0xff] %v5637_v27 }
 0x17a   :  { %v607_v2 = vadd.f32 %v4934_v1, %v4932_v63  ;;  %v5619_v4 = vadd.f32 %v4934_v1, %v5519_v26 }
 0x17b   :  { %v4334_v5 = vpop.f32.mrb[8].mxu0 }
 0x17c   :  { %v5621_v6 = vadd.f32 %v4334_v5, %v4310_v42  ;;  %v413_v7 = vpop.f32.mrb[9].mxu0  ;;  %v5625_v9 = vpack.c.bf16 %v5619_v4, %v5616_v3 }
 0x17d   :  { %v5630_v11 = vadd.f32 %v413_v7, %v251_v43  ;;  %v4335_v14 = vpop.f32.mrb[10].mxu0 }
 0x17e   :  { %v478_v15 = vand.u32 2147483647, %v5621_v6  ;;  %v5633_v24 = vadd.f32 %v4335_v14, %v4311_v44  ;;  %v416_v26 = vpop.f32.mrb[11].mxu0  ;;  %4341 = vmatpush3.bf16.msra.mxu1 %v5625_v9  ;;  %v5649_v44 = vpack.c.bf16 %v5628_v10, %v5637_v27  ;;  %vm462_vm10 = vcmp.ne.f32.partialorder %v5621_v6, %v5621_v6 }
 0x17f   :  { %v4936_v28 = vpop.eup %4935  ;;  %v476_v31 = vand.u32 2147483647, %v5630_v11  ;;  %v5640_v34 = vadd.f32 %v416_v26, %v254_v46  ;;  %4342 = vmatprep.subr.bf16.mxu1 %v7897_v45  ;;  %vm460_vm9 = vcmp.ne.f32.partialorder %v5630_v11, %v5630_v11 }
 0x180   :  { %v5645_v25 = vpop.eup %4937  ;;  %v605_v42 = vadd.f32 %v4936_v28, %v604_v0  ;;  %v486_v43 = vsub.f32 0.0, %v478_v15  ;;  %v479_v46 = vand.u32 2147483647, %v5633_v24  ;;  %vm463_vm12 = vcmp.ne.f32.partialorder %v5633_v24, %v5633_v24 }
 0x181   :  { %v4940_v23 = vpop.eup %4939  ;;  %v484_v51 = vsub.f32 0.0, %v476_v31  ;;  %v477_v55 = vand.u32 2147483647, %v5640_v34  ;;  %vm461_vm11 = vcmp.ne.f32.partialorder %v5640_v34, %v5640_v34 }
 0x182   :  { %v606_v52 = vadd.f32 %v5645_v25, %v605_v42  ;;  %v608_v53 = vadd.f32 %v4940_v23, %v607_v2  ;;  %v496_v54 = vmul.f32 1.442695, %v486_v43  ;;  %4343 = vmatpush3.bf16.msra.mxu1 %v5649_v44  ;;  %v5657_v56 = vpop.eup %4941  ;;  %v487_v58 = vsub.f32 0.0, %v479_v46 }
 0x183   :  { %v492_v57 = vmul.f32 1.442695, %v484_v51  ;;  %v4338_v59 = vpop.f32.mrb[12].mxu0  ;;  %4344 = vmatprep.subr.bf16.mxu1 %v7897_v45  ;;  %v485_v5 = vsub.f32 0.0, %v477_v55 }
 0x184   :  { %v611_v61 = vmul.f32 0.25, %v606_v52  ;;  %v609_v0 = vadd.f32 %v5657_v56, %v608_v53  ;;  %4943 = vpow2.f32 %v496_v54  ;;  %v429_v7 = vpop.f32.mrb[13].mxu0  ;;  %v498_v2 = vmul.f32 1.442695, %v487_v58 }
 0x185   :  { %4945 = vpow2.f32 %v492_v57  ;;  %v5662_v14 = vadd.f32 %v4338_v59, %v5589_v47  ;;  %v5665_v15 = vadd.f32 %v429_v7, %v5591_v48  ;;  %v4339_v26 = vpop.f32.mrb[14].mxu0  ;;  %v494_v53 = vmul.f32 1.442695, %v485_v5 }
 0x186   :  { %v613_v31 = vsub.f32 %v4930_v62, %v611_v61  ;;  %v615_v42 = vsub.f32 %v4928_v60, %v611_v61  ;;  %v617_v43 = vsub.f32 %v4936_v28, %v611_v61  ;;  %v612_v51 = vmul.f32 0.25, %v609_v0  ;;  %v432_v46 = vpop.f32.mrb[15].mxu0 }
 0x187   :  { %v619_v52 = vsub.f32 %v5645_v25, %v611_v61  ;;  %4947 = vpow2.f32 %v498_v2  ;;  %v5669_v47 = vadd.f32 %v4940_v23, %v5525_v29  ;;  %v482_v62 = vand.u32 2147483647, %v5662_v14 }
 0x188   :  { %v614_v54 = vsub.f32 %v4934_v1, %v612_v51  ;;  %v616_v55 = vsub.f32 %v4932_v63, %v612_v51  ;;  %v618_v57 = vsub.f32 %v4940_v23, %v612_v51  ;;  %4949 = vpow2.f32 %v494_v53 }
 0x189   :  { %7923 = vst [vmem:[#allocation8_spill] sm:$0xff] %v5669_v47  ;;  %v621_v58 = vmul.f32 %v613_v31, %v613_v31  ;;  %v623_v59 = vmul.f32 %v615_v42, %v615_v42  ;;  %v5673_v60 = vadd.f32 %v4936_v28, %v5527_v30  ;;  %v480_v61 = vand.u32 2147483647, %v5665_v15 }
 0x18a   :  { %v622_v48 = vmul.f32 %v614_v54, %v614_v54  ;;  %v5677_v5 = vadd.f32 %v4339_v26, %v5593_v49  ;;  %v5680_v63 = vadd.f32 %v432_v46, %v5595_v50  ;;  %v620_v29 = vsub.f32 %v5657_v56, %v612_v51 }
 0x18b   :  { %7924 = vst [vmem:[#allocation9_spill] sm:$0xff] %v5673_v60  ;;  %v5685_v1 = vpack.c.bf16 %v5669_v47, %v5673_v60  ;;  %v624_v7 = vmul.f32 %v616_v55, %v616_v55  ;;  %v490_v31 = vsub.f32 0.0, %v482_v62  ;;  %v625_v42 = vmul.f32 %v617_v43, %v617_v43 }
 0x18c   :  { %v629_v0 = vadd.f32 %v622_v48, %v621_v58  ;;  %v488_v53 = vsub.f32 0.0, %v480_v61  ;;  %v626_v54 = vmul.f32 %v618_v57, %v618_v57  ;;  %v483_v55 = vand.u32 2147483647, %v5677_v5  ;;  %v3964_v48 = vld [vmem:[%s7890_s0 + $0x4] sm:$0x7] }
 0x18d   :  { %4345 = vmatpush3.bf16.msra.mxu1 %v5685_v1  ;;  %v627_v43 = vmul.f32 %v619_v52, %v619_v52  ;;  %v711_v57 = vand.u32 %v3964_v48, %v5435_v8  ;;  %v452_v47 = vmax.f32 %v5630_v11, 0.0  ;;  %v5697_v52 = vadd.f32 %v5645_v25, %v5533_v33 }
 0x18e   :  { %v4944_v23 = vpop.eup %4943  ;;  %v630_v2 = vadd.f32 %v629_v0, %v623_v59  ;;  %4346 = vmatprep.subr.bf16.mxu1 %v7897_v45  ;;  %v504_v0 = vmul.f32 1.442695, %v490_v31  ;;  %v500_v45 = vmul.f32 1.442695, %v488_v53  ;;  %vm464_vm15 = vcmp.ne.f32.partialorder %v5665_v15, %v5665_v15 }
 0x18f   :  { %v4946_v30 = vpop.eup %4945  ;;  %v526_v28 = vadd.f32 1.0, %v4944_v23  ;;  %v529_v51 = vmul.f32 -0.5, %v4944_v23 }
 0x190   :  { %v631_v49 = vadd.f32 %v630_v2, %v624_v7  ;;  %v508_v26 = vadd.f32 1.0, %v4946_v30  ;;  %v511_v46 = vmul.f32 -0.5, %v4946_v30  ;;  %v532_v7 = vand.u32 2147483647, %v4944_v23 }
 0x191   :  { %v4948_v50 = vpop.eup %4947  ;;  %4951 = vlog2.f32 %v526_v28  ;;  %v530_v28 = vadd.f32 1.0, %v529_v51  ;;  %v514_v53 = vand.u32 2147483647, %v4946_v30 }
 0x192   :  { %v632_v58 = vadd.f32 %v631_v49, %v625_v42  ;;  %4953 = vlog2.f32 %v508_v26  ;;  %v4950_v59 = vpop.eup %4949  ;;  %v535_v62 = vadd.f32 1.0, %v4948_v50  ;;  %v512_v60 = vadd.f32 1.0, %v511_v46 }
 0x193   :  { %v517_v2 = vadd.f32 1.0, %v4950_v59  ;;  %v538_v49 = vmul.f32 -0.5, %v4948_v50  ;;  %v491_v26 = vsub.f32 0.0, %v483_v55  ;;  %v520_v27 = vmul.f32 -0.5, %v4950_v59 }
 0x194   :  { %v633_v61 = vadd.f32 %v632_v58, %v626_v54  ;;  %4955 = vlog2.f32 %v535_v62  ;;  %vm5699_vm5 = vcmp.lt.f32.partialorder %v532_v7, 0.0004427343  ;;  %v531_v46 = vmul.f32 %v4944_v23, %v530_v28 }
 0x195   :  { %4957 = vlog2.f32 %v517_v2  ;;  %v506_v51 = vmul.f32 1.442695, %v491_v26  ;;  %v481_v54 = vand.u32 2147483647, %v5680_v63  ;;  %v628_v58 = vmul.f32 %v620_v29, %v620_v29 }
 0x196   :  { %v634_v42 = vadd.f32 %v633_v61, %v627_v43  ;;  %4959 = vpow2.f32 %v504_v0  ;;  %v5706_v55 = vadd.f32 %v5657_v56, %v5531_v32  ;;  %v513_v48 = vmul.f32 %v4946_v30, %v512_v60 }
 0x197   :  { %4961 = vpow2.f32 %v500_v45  ;;  %v539_v43 = vadd.f32 1.0, %v538_v49  ;;  %v541_v62 = vand.u32 2147483647, %v4948_v50  ;;  %v521_v25 = vadd.f32 1.0, %v520_v27  ;;  %v5722_v27 = vld [vmem:[%s7894_s4] sm:$0x1] }
 0x198   :  { %4963 = vpow2.f32 %v506_v51  ;;  %v489_v0 = vsub.f32 0.0, %v481_v54  ;;  %v5708_v61 = vadd.f32 %v634_v42, %v628_v58  ;;  %v5712_v45 = vpack.c.bf16 %v5706_v55, %v5697_v52 }
 0x199   :  { %vm5714_vm6 = vcmp.lt.f32.partialorder %v514_v53, 0.0004427343  ;;  %v523_v32 = vand.u32 2147483647, %v4950_v59  ;;  %v454_v30 = vmax.f32 %v5621_v6, 0.0  ;;  %v455_v2 = vmax.f32 %v5633_v24, 0.0 }
 0x19a   :  { %v502_v60 = vmul.f32 1.442695, %v489_v0  ;;  %4347 = vmatpush3.bf16.msra.mxu1 %v5712_v45  ;;  %v540_v28 = vmul.f32 %v4948_v50, %v539_v43  ;;  %vm5726_vm7 = vcmp.lt.f32.partialorder %v541_v62, 0.0004427343  ;;  %v522_v51 = vmul.f32 %v4950_v59, %v521_v25 }
 0x19b   :  { %v4952_v33 = vpop.eup %4951  ;;  %4352 = vmatprep.subr.bf16.mxu1 %v711_v57  ;;  %v453_v0 = vmax.f32 %v5640_v34, 0.0  ;;  %vm5735_vm8 = vcmp.lt.f32.partialorder %v523_v32, 0.0004427343 }
 0x19c   :  { %v4954_v23 = vpop.eup %4953  ;;  %v528_v7 = vmul.f32 0.6931472, %v4952_v33  ;;  %4965 = vpow2.f32 %v502_v60 }
 0x19d   :  { %v510_v56 = vmul.f32 0.6931472, %v4954_v23  ;;  %4349 = vmatmul.mubr.msk.bf16.vlgmr.msra.gmra.mrb[8].mxu1 %vm322_vm3, %v5722_v27 }
 0x19e   :  { %v4956_v49 = vpop.eup %4955  ;;  %v534_v26 = vsel %vm5699_vm5, %v531_v46, %v528_v7  ;;  %4353 = vmatpush3.bf16.msra.mxu1 %v711_v57  ;;  %4354 = vmatprep.mubr.msk.bf16.mxu1 %vm153_vm2, %v5447_v12  ;;  %vm466_vm5 = vcmp.ne.f32.partialorder %v5662_v14, %v5662_v14 }
 0x19f   :  { %v516_v53 = vsel %vm5714_vm6, %v513_v48, %v510_v56  ;;  %v4958_v54 = vpop.eup %4957  ;;  %v537_v33 = vmul.f32 0.6931472, %v4956_v49  ;;  %v582_v59 = vadd.f32 %v534_v26, %v454_v30  ;;  %4370 = vmatprep.subr.bf16.mxu1 %v5625_v9  ;;  %vm465_vm6 = vcmp.ne.f32.partialorder %v5680_v63, %v5680_v63 }
 0x1a0   :  { %v580_v58 = vadd.f32 %v516_v53, %v452_v47  ;;  %v4960_v43 = vpop.eup %4959  ;;  %v519_v31 = vmul.f32 0.6931472, %v4958_v54 }
 0x1a1   :  { %v4962_v47 = vpop.eup %4961  ;;  %v543_v46 = vsel %vm5726_vm7, %v540_v28, %v537_v33  ;;  %v562_v48 = vadd.f32 1.0, %v4960_v43  ;;  %v590_v29 = vsel %vm462_vm10, %v5621_v6, %v582_v59  ;;  %v565_v42 = vmul.f32 -0.5, %v4960_v43 }
 0x1a2   :  { %v525_v57 = vsel %vm5735_vm8, %v522_v51, %v519_v31  ;;  %v544_v62 = vadd.f32 1.0, %v4962_v47  ;;  %v4964_v25 = vpop.eup %4963  ;;  %v588_v12 = vsel %vm460_vm9, %v5630_v11, %v580_v58  ;;  %v583_v23 = vadd.f32 %v543_v46, %v455_v2 }
 0x1a3   :  { %v581_v7 = vadd.f32 %v525_v57, %v453_v0  ;;  %4967 = vlog2.f32 %v562_v48  ;;  %v547_v56 = vmul.f32 -0.5, %v4962_v47  ;;  %v571_v60 = vadd.f32 1.0, %v4964_v25 }
 0x1a4   :  { %4969 = vlog2.f32 %v544_v62  ;;  %v591_v28 = vsel %vm463_vm12, %v5633_v24, %v583_v23  ;;  %v574_v53 = vmul.f32 -0.5, %v4964_v25  ;;  %v566_v24 = vadd.f32 1.0, %v565_v42 }
 0x1a5   :  { %v589_v32 = vsel %vm461_vm11, %v5640_v34, %v581_v7  ;;  %4971 = vlog2.f32 %v571_v60  ;;  %4355 = vmatmul.mubr.msk.bf16.vlgmr.msra.gmra.mrb[12].mxu1 %vm153_vm2, %v5452_v13  ;;  %v548_v6 = vadd.f32 1.0, %v547_v56  ;;  %v550_v34 = vand.u32 2147483647, %v4962_v47 }
 0x1a6   :  { %v643_v30 = vadd.f32 %v589_v32, %v588_v12  ;;  %v4966_v11 = vpop.eup %4965  ;;  %4371 = vmatpush3.bf16.msra.mxu1 %v5625_v9  ;;  %4358 = vmatprep.mubr.msk.bf16.mxu1 %vm153_vm2, %v5467_v16  ;;  %v568_v54 = vand.u32 2147483647, %v4960_v43  ;;  %v456_v16 = vmax.f32 %v5665_v15, 0.0  ;;  %v575_v0 = vadd.f32 1.0, %v574_v53 }
 0x1a7   :  { %v553_v49 = vadd.f32 1.0, %v4966_v11  ;;  %4372 = vmatprep.subr.bf16.mxu1 %v5649_v44  ;;  %v556_v51 = vmul.f32 -0.5, %v4966_v11  ;;  %v549_v58 = vmul.f32 %v4962_v47, %v548_v6  ;;  %vm5769_vm13 = vcmp.lt.f32.partialorder %v550_v34, 0.0004427343 }
 0x1a8   :  { %v644_v2 = vadd.f32 %v643_v30, %v590_v29  ;;  %v577_v31 = vand.u32 2147483647, %v4964_v25  ;;  %vm5778_vm14 = vcmp.lt.f32.partialorder %v568_v54, 0.0004427343  ;;  %v458_v12 = vmax.f32 %v5662_v14, 0.0 }
 0x1a9   :  { %4973 = vlog2.f32 %v553_v49  ;;  %v557_v46 = vadd.f32 1.0, %v556_v51  ;;  %v459_v60 = vmax.f32 %v5677_v5, 0.0  ;;  %v7939_v30 = vmov 0.0  }
 0x1aa   :  { %v645_v26 = vadd.f32 %v644_v2, %v591_v28  ;;  %4373 = vmatpush3.bf16.msra.mxu1 %v5649_v44  ;;  %v567_v44 = vmul.f32 %v4960_v43, %v566_v24  ;;  %vm5788_vm0 = vcmp.lt.f32.partialorder %v577_v31, 0.0004427343  ;;  %v636_v42 = vrot.slane %v5708_v61, 4 }
 0x1ab   :  { %4374 = vmatprep.subr.bf16.mxu1 %v5685_v1  ;;  %v558_v29 = vmul.f32 %v4966_v11, %v557_v46  ;;  %vm467_vm7 = vcmp.ne.f32.partialorder %v5677_v5, %v5677_v5 }
 0x1ac   :  { %v637_v49 = vadd.f32 %v636_v42, %v5708_v61 }
 0x1ad   :  { %v4968_v13 = vpop.eup %4967  ;;  %4359 = vmatmul.mubr.msk.bf16.gmra.mrb[16].mxu1 %vm153_vm2, %v5474_v17  ;;  %v559_v17 = vand.u32 2147483647, %v4966_v11 }
 0x1ae   :  { %v4970_v9 = vpop.eup %4969  ;;  %v564_v59 = vmul.f32 0.6931472, %v4968_v13  ;;  %4375 = vmatpush3.bf16.msra.mxu1 %v5685_v1  ;;  %4362 = vmatprep.mubr.msk.bf16.mxu1 %vm153_vm2, %v5488_v19  ;;  %v576_v1 = vmul.f32 %v4964_v25, %v575_v0  ;;  %v457_v25 = vmax.f32 %v5680_v63, 0.0  ;;  %v638_v24 = vrot.slane %v637_v49, 2 }
 0x1af   :  { %v546_v50 = vmul.f32 0.6931472, %v4970_v9  ;;  %v4972_v47 = vpop.eup %4971  ;;  %4376 = vmatprep.subr.bf16.mxu1 %v5712_v45  ;;  %vm560_vm1 = vcmp.lt.f32.partialorder %v559_v17, 0.0004427343 }
 0x1b0   :  { %v573_v62 = vmul.f32 0.6931472, %v4972_v47  ;;  %v570_v23 = vsel %vm5778_vm14, %v567_v44, %v564_v59  ;;  %v639_v13 = vadd.f32 %v638_v24, %v637_v49 }
 0x1b1   :  { %v552_v57 = vsel %vm5769_vm13, %v549_v58, %v546_v50  ;;  %v586_v6 = vadd.f32 %v570_v23, %v458_v12  ;;  %v7940_v23 = vld [vmem:[#allocation7_spill] sm:$0xff] }
 0x1b2   :  { %v584_v43 = vadd.f32 %v552_v57, %v456_v16  ;;  %4377 = vmatpush3.bf16.msra.mxu1 %v5712_v45  ;;  %v579_v28 = vsel %vm5788_vm0, %v576_v1, %v573_v62  ;;  %v640_v61 = vrot.slane %v639_v13, 1 }
 0x1b3   :  { %v4974_v32 = vpop.eup %4973  ;;  %4394 = vmatprep.subr.bf16.mxu1 %v7939_v30  ;;  %v587_v45 = vadd.f32 %v579_v28, %v459_v60  ;;  %v594_v34 = vsel %vm466_vm5, %v5662_v14, %v586_v6 }
 0x1b4   :  { %v592_v7 = vsel %vm464_vm15, %v5665_v15, %v584_v43  ;;  %v555_v2 = vmul.f32 0.6931472, %v4974_v32 }
 0x1b5   :  { %v646_v56 = vadd.f32 %v645_v26, %v592_v7  ;;  %4363 = vmatmul.mubr.msk.bf16.gmra.mrb[20].mxu1 %vm153_vm2, %v5493_v20  ;;  %v595_v53 = vsel %vm467_vm7, %v5677_v5, %v587_v45  ;;  %v641_v5 = vadd.f32 %v640_v61, %v639_v13 }
 0x1b6   :  { %v561_v15 = vsel %vm560_vm1, %v558_v29, %v555_v2  ;;  %4366 = vmatprep.mubr.msk.bf16.mxu1 %vm153_vm2, %v5502_v21 }
 0x1b7   :  { %v585_v11 = vadd.f32 %v561_v15, %v457_v25 }
 0x1b9   :  { %v593_v20 = vsel %vm465_vm6, %v5680_v63, %v585_v11 }
 0x1ba   :  { %v647_v26 = vadd.f32 %v646_v56, %v593_v20 }
 0x1bc   :  { %v648_v51 = vadd.f32 %v647_v26, %v594_v34 }
 0x1bd   :  { %4367 = vmatmul.mubr.msk.bf16.gmra.mrb[24].mxu1 %vm153_vm2, %v5507_v22  ;;  %v642_v22 = vmul.f32 0.33333334, %v641_v5 }
 0x1be   :  { %v649_v21 = vadd.f32 %v648_v51, %v595_v53  ;;  %4378 = vmatprep.mubr.msk.bf16.mxu1 %vm322_vm3, %v5481_v18 }
 0x1c0   :  { %v650_v54 = vrot.slane %v649_v21, 4 }
 0x1c2   :  { %v651_v58 = vadd.f32 %v650_v54, %v649_v21 }
 0x1c4   :  { %v652_v9 = vrot.slane %v651_v58, 2 }
 0x1c5   :  { %4379 = vmatmul.mubr.msk.bf16.vlgmr.msra.gmra.mrb[12].mxu1 %vm322_vm3, %v5540_v35 }
 0x1c6   :  { %v653_v14 = vadd.f32 %v652_v9, %v651_v58  ;;  %4382 = vmatprep.mubr.msk.bf16.mxu1 %vm322_vm3, %v5545_v36 }
 0x1c8   :  { %v654_v63 = vrot.slane %v653_v14, 1 }
 0x1ca   :  { %v655_v16 = vadd.f32 %v654_v63, %v653_v14 }
 0x1cc   :  { %v656_v33 = vmul.f32 0.25, %v655_v16 }
 0x1cd   :  { %4383 = vmatmul.mubr.msk.bf16.gmra.mrb[16].mxu1 %vm322_vm3, %v5554_v37 }
 0x1ce   :  { %v5826_v18 = vadd.f32 %v656_v33, %v642_v22  ;;  %4386 = vmatprep.mubr.msk.bf16.mxu1 %vm322_vm3, %v5559_v38 }
 0x1d5   :  { %4387 = vmatmul.mubr.msk.bf16.gmra.mrb[20].mxu1 %vm322_vm3, %v5568_v39 }
 0x1d6   :  { %4390 = vmatprep.mubr.msk.bf16.mxu1 %vm322_vm3, %v5573_v40 }
 0x1dd   :  { %4391 = vmatmul.mubr.msk.bf16.gmra.mrb[24].mxu1 %vm322_vm3, %v5582_v41 }
 0x1de   :  { %4402 = vmatprep.mubr.msk.bf16.mxu1 %vm5383_vm4, %v7939_v30 }
 0x298   :  { %v4380_v36 = vpop.f32.mrb[12].mxu1 }
 0x299   :  { %4975 = vtanh.f32 %v4380_v36  ;;  %v844_v37 = vpop.f32.mrb[13].mxu1 }
 0x29a   :  { %4977 = vtanh.f32 %v844_v37  ;;  %v4381_v0 = vpop.f32.mrb[14].mxu1 }
 0x29b   :  { %4979 = vtanh.f32 %v4381_v0  ;;  %v847_v50 = vpop.f32.mrb[15].mxu1 }
 0x29c   :  { %4981 = vtanh.f32 %v847_v50 }
 0x2a0   :  { %v4384_v38 = vpop.f32.mrb[16].mxu1 }
 0x2a1   :  { %v860_v31 = vpop.f32.mrb[17].mxu1 }
 0x2a2   :  { %4983 = vtanh.f32 %v860_v31  ;;  %v4385_v39 = vpop.f32.mrb[18].mxu1 }
 0x2a3   :  { %v4976_v59 = vpop.eup %4975  ;;  %4985 = vtanh.f32 %v4384_v38  ;;  %v863_v40 = vpop.f32.mrb[19].mxu1 }
 0x2a4   :  { %v4978_v44 = vpop.eup %4977  ;;  %4987 = vtanh.f32 %v863_v40  ;;  %v5855_v7 = vadd.f32 %v4976_v59, %v7940_v23 }
 0x2a5   :  { %v4980_v41 = vpop.eup %4979  ;;  %v1067_v46 = vadd.f32 %v4978_v44, %v4976_v59  ;;  %4989 = vtanh.f32 %v4385_v39  ;;  %v5839_v57 = vadd.f32 %v4978_v44, %v5616_v3 }
 0x2a6   :  { %v4982_v47 = vpop.eup %4981  ;;  %v5845_v43 = vadd.f32 %v4980_v41, %v5628_v10 }
 0x2a7   :  { %v1070_v48 = vadd.f32 %v4982_v47, %v4980_v41  ;;  %v5842_v17 = vadd.f32 %v4982_v47, %v5619_v4 }
 0x2a8   :  { %v5847_v62 = vpop.f32.mrb[20].mxu1  ;;  %v1122_v56 = vpack.c.bf16 %v5845_v43, %v5855_v7 }
 0x2a9   :  { %v941_v1 = vand.u32 2147483647, %v5847_v62  ;;  %v5850_v12 = vpop.f32.mrb[21].mxu1  ;;  %v1121_v19 = vpack.c.bf16 %v5842_v17, %v5839_v57  ;;  %vm925_vm12 = vcmp.ne.f32.partialorder %v5847_v62, %v5847_v62 }
 0x2aa   :  { %v939_v3 = vand.u32 2147483647, %v5850_v12  ;;  %v5858_v29 = vpop.f32.mrb[22].mxu1  ;;  %vm923_vm13 = vcmp.ne.f32.partialorder %v5850_v12, %v5850_v12 }
 0x2ab   :  { %v949_v4 = vsub.f32 0.0, %v941_v1  ;;  %v942_v10 = vand.u32 2147483647, %v5858_v29  ;;  %v5861_v32 = vpop.f32.mrb[23].mxu1  ;;  %4395 = vmatpush3.bf16.msra.mxu1 %v1121_v19  ;;  %4424 = vmatprep.subr.bf16.mxu0 %v1121_v19  ;;  %vm926_vm0 = vcmp.ne.f32.partialorder %v5858_v29, %v5858_v29 }
 0x2ac   :  { %v5865_v60 = vpop.eup %4983  ;;  %v947_v25 = vsub.f32 0.0, %v939_v3  ;;  %v940_v28 = vand.u32 2147483647, %v5861_v32  ;;  %4425 = vmatpush3.bf16.msra.mxu0 %v1121_v19  ;;  %4396 = vmatprep.subr.bf16.mxu1 %v7939_v30  ;;  %vm924_vm14 = vcmp.ne.f32.partialorder %v5861_v32, %v5861_v32 }
 0x2ad   :  { %v5869_v2 = vpop.eup %4985  ;;  %v1068_v42 = vadd.f32 %v5865_v60, %v1067_v46  ;;  %v959_v6 = vmul.f32 1.442695, %v949_v4  ;;  %v950_v15 = vsub.f32 0.0, %v942_v10  ;;  %4426 = vmatprep.subr.bf16.mxu0 %v1122_v56 }
 0x2ae   :  { %v4988_v45 = vpop.eup %4987  ;;  %v955_v11 = vmul.f32 1.442695, %v947_v25  ;;  %v948_v49 = vsub.f32 0.0, %v940_v28 }
 0x2af   :  { %v1069_v34 = vadd.f32 %v5869_v2, %v1068_v42  ;;  %v1071_v20 = vadd.f32 %v4988_v45, %v1070_v48  ;;  %4991 = vpow2.f32 %v959_v6  ;;  %v961_v26 = vmul.f32 1.442695, %v950_v15  ;;  %4397 = vmatpush3.bf16.msra.mxu1 %v1122_v56  ;;  %v5873_v53 = vpop.eup %4989  ;;  %v7941_v6 = vld [vmem:[#allocation8_spill] sm:$0xff] }
 0x2b0   :  { %4993 = vpow2.f32 %v955_v11  ;;  %v957_v24 = vmul.f32 1.442695, %v948_v49  ;;  %v5875_v51 = vpop.f32.mrb[24].mxu1  ;;  %4427 = vmatpush3.bf16.msra.mxu0 %v1122_v56  ;;  %4398 = vmatprep.subr.bf16.mxu1 %v7939_v30  ;;  %v5904_v15 = vadd.f32 %v4988_v45, %v7941_v6 }
 0x2b1   :  { %v5878_v21 = vmul.f32 0.25, %v1069_v34  ;;  %v1072_v13 = vadd.f32 %v5873_v53, %v1071_v20  ;;  %4995 = vpow2.f32 %v961_v26  ;;  %v5881_v54 = vpop.f32.mrb[25].mxu1  ;;  %v945_v58 = vand.u32 2147483647, %v5875_v51 }
 0x2b2   :  { %4997 = vpow2.f32 %v957_v24  ;;  %v5884_v61 = vpop.f32.mrb[26].mxu1  ;;  %v943_v33 = vand.u32 2147483647, %v5881_v54  ;;  %v7942_v24 = vld [vmem:[#allocation9_spill] sm:$0xff]  ;;  %vm927_vm1 = vcmp.ne.f32.partialorder %v5881_v54, %v5881_v54 }
 0x2b3   :  { %v1075_v9 = vsub.f32 %v4978_v44, %v5878_v21  ;;  %v1077_v14 = vsub.f32 %v4976_v59, %v5878_v21  ;;  %v1079_v5 = vsub.f32 %v5865_v60, %v5878_v21  ;;  %v1074_v63 = vmul.f32 0.25, %v1072_v13  ;;  %v5890_v16 = vpop.f32.mrb[27].mxu1 }
 0x2b4   :  { %v953_v22 = vsub.f32 0.0, %v945_v58  ;;  %v951_v50 = vsub.f32 0.0, %v943_v33  ;;  %v946_v48 = vand.u32 2147483647, %v5884_v61  ;;  %v944_v56 = vand.u32 2147483647, %v5890_v16 }
 0x2b5   :  { %v1076_v36 = vsub.f32 %v4982_v47, %v1074_v63  ;;  %v1078_v37 = vsub.f32 %v4980_v41, %v1074_v63  ;;  %v1080_v0 = vsub.f32 %v4988_v45, %v1074_v63  ;;  %v1083_v38 = vmul.f32 %v1075_v9, %v1075_v9 }
 0x2b6   :  { %v967_v39 = vmul.f32 1.442695, %v953_v22  ;;  %v963_v40 = vmul.f32 1.442695, %v951_v50  ;;  %v1085_v59 = vmul.f32 %v1077_v14, %v1077_v14  ;;  %v1087_v25 = vmul.f32 %v1079_v5, %v1079_v5 }
 0x2b7   :  { %v1084_v31 = vmul.f32 %v1076_v36, %v1076_v36  ;;  %v1086_v47 = vmul.f32 %v1078_v37, %v1078_v37  ;;  %v954_v42 = vsub.f32 0.0, %v946_v48  ;;  %v1088_v11 = vmul.f32 %v1080_v0, %v1080_v0 }
 0x2b8   :  { %4999 = vpow2.f32 %v963_v40  ;;  %v952_v26 = vsub.f32 0.0, %v944_v56  ;;  %v5909_v13 = vadd.f32 %v5865_v60, %v7942_v24  ;;  %v5913_v58 = vadd.f32 %v5873_v53, %v5706_v55 }
 0x2b9   :  { %v5893_v44 = vpop.eup %4991  ;;  %v1091_v46 = vadd.f32 %v1084_v31, %v1083_v38  ;;  %5001 = vpow2.f32 %v967_v39  ;;  %v969_v45 = vmul.f32 1.442695, %v954_v42  ;;  %v5920_v36 = vadd.f32 %v5869_v2, %v5697_v52 }
 0x2ba   :  { %v4994_v1 = vpop.eup %4993  ;;  %v989_v19 = vadd.f32 1.0, %v5893_v44  ;;  %v992_v14 = vmul.f32 -0.5, %v5893_v44  ;;  %v965_v22 = vmul.f32 1.442695, %v952_v26  ;;  %v1123_v33 = vpack.c.bf16 %v5904_v15, %v5909_v13 }
 0x2bb   :  { %v5897_v23 = vpop.eup %4995  ;;  %v1092_v41 = vadd.f32 %v1091_v46, %v1085_v59  ;;  %v971_v3 = vadd.f32 1.0, %v4994_v1  ;;  %v974_v34 = vmul.f32 -0.5, %v4994_v1  ;;  %v977_v5 = vand.u32 2147483647, %v4994_v1 }
 0x2bc   :  { %v5899_v4 = vpop.eup %4997  ;;  %5003 = vlog2.f32 %v989_v19  ;;  %v998_v10 = vadd.f32 1.0, %v5897_v23  ;;  %v1001_v37 = vmul.f32 -0.5, %v5897_v23  ;;  %4399 = vmatpush3.bf16.msra.mxu1 %v1123_v33  ;;  %4428 = vmatprep.subr.bf16.mxu0 %v1123_v33  ;;  %v1124_v50 = vpack.c.bf16 %v5913_v58, %v5920_v36 }
 0x2bd   :  { %v1093_v28 = vadd.f32 %v1092_v41, %v1086_v47  ;;  %5005 = vlog2.f32 %v971_v3  ;;  %v980_v20 = vadd.f32 1.0, %v5899_v4  ;;  %v975_v60 = vadd.f32 1.0, %v974_v34  ;;  %4429 = vmatpush3.bf16.msra.mxu0 %v1123_v33  ;;  %4400 = vmatprep.subr.bf16.mxu1 %v7939_v30 }
 0x2be   :  { %5007 = vlog2.f32 %v998_v10  ;;  %v983_v55 = vmul.f32 -0.5, %v5899_v4  ;;  %v1081_v38 = vsub.f32 %v5869_v2, %v5878_v21  ;;  %v1082_v31 = vsub.f32 %v5873_v53, %v1074_v63  ;;  %4430 = vmatprep.subr.bf16.mxu0 %v1124_v50 }
 0x2bf   :  { %v1094_v49 = vadd.f32 %v1093_v28, %v1087_v25  ;;  %5009 = vlog2.f32 %v980_v20  ;;  %v993_v39 = vadd.f32 1.0, %v992_v14  ;;  %v995_v46 = vand.u32 2147483647, %v5893_v44 }
 0x2c0   :  { %5011 = vpow2.f32 %v969_v45  ;;  %vm5936_vm8 = vcmp.lt.f32.partialorder %v977_v5, 0.0004427343  ;;  %v1089_v2 = vmul.f32 %v1081_v38, %v1081_v38  ;;  %v976_v53 = vmul.f32 %v4994_v1, %v975_v60  ;;  %4401 = vmatpush3.bf16.msra.mxu1 %v1124_v50  ;;  %v6038_v60 = vld [vmem:[%s7892_s2 + $0x30] sm:$0xff]  }
 0x2c1   :  { %v1095_v9 = vadd.f32 %v1094_v49, %v1088_v11  ;;  %5013 = vpow2.f32 %v965_v22  ;;  %v1002_v63 = vadd.f32 1.0, %v1001_v37  ;;  %v984_v19 = vadd.f32 1.0, %v983_v55  ;;  %4431 = vmatpush3.bf16.msra.mxu0 %v1124_v50  ;;  %4448 = vmatprep.subr.bf16.mxu1 %v7939_v30 }
 0x2c2   :  { %v5924_v0 = vpop.eup %4999  ;;  %v1090_v10 = vmul.f32 %v1082_v31, %v1082_v31  ;;  %v994_v25 = vmul.f32 %v5893_v44, %v993_v39  ;;  %v1004_v28 = vand.u32 2147483647, %v5897_v23  ;;  %v986_v42 = vand.u32 2147483647, %v5899_v4 }
 0x2c3   :  { %v5931_v52 = vpop.eup %5001  ;;  %v1007_v40 = vadd.f32 1.0, %v5924_v0  ;;  %v1096_v56 = vadd.f32 %v1095_v9, %v1089_v2  ;;  %v1010_v49 = vmul.f32 -0.5, %v5924_v0  ;;  %v917_v44 = vmax.f32 %v5847_v62, 0.0  ;;  %4403 = vmatmul.mubr.msk.bf16.vlgmr.msra.gmra.mrb[8].mxu1 %vm322_vm3, %v5722_v27 }
 0x2c4   :  { %v1025_v6 = vadd.f32 1.0, %v5931_v52  ;;  %vm5951_vm9 = vcmp.lt.f32.partialorder %v995_v46, 0.0004427343  ;;  %v915_v24 = vmax.f32 %v5850_v12, 0.0  ;;  %v918_v9 = vmax.f32 %v5858_v29, 0.0  ;;  %4433 = vmatmul.mubr.msk.bf16.vlgmr.msra.gmra.mrb[16].mxu0 %vm322_vm3, %v5540_v35  ;;  %4456 = vmatprep.mubr.msk.bf16.mxu1 %vm5383_vm4, %v7939_v30 }
 0x2c5   :  { %5015 = vlog2.f32 %v1007_v40  ;;  %v5948_v34 = vadd.f32 %v1096_v56, %v1090_v10  ;;  %v1003_v45 = vmul.f32 %v5897_v23, %v1002_v63  ;;  %v985_v22 = vmul.f32 %v5899_v4, %v984_v19  ;;  %v5975_v23 = vld [vmem:[%s7892_s2 + $0x10] sm:$0xff]   ;;  %v6010_v56 = vld [vmem:[%s7892_s2 + $0x20] sm:$0xff]  }
 0x2c6   :  { %v5004_v59 = vpop.eup %5003  ;;  %vm5967_vm10 = vcmp.lt.f32.partialorder %v1004_v28, 0.0004427343  ;;  %v916_v27 = vmax.f32 %v5861_v32, 0.0  ;;  %vm987_vm11 = vcmp.lt.f32.partialorder %v986_v42, 0.0004427343  ;;  %4436 = vmatprep.mubr.msk.bf16.mxu0 %vm322_vm3, %v5975_v23  ;;  %5017 = vlog2.f32 %v1025_v6 }
 0x2c7   :  { %v5006_v21 = vpop.eup %5005  ;;  %v991_v41 = vmul.f32 0.6931472, %v5004_v59  ;;  %v1011_v55 = vadd.f32 1.0, %v1010_v49  ;;  %v1013_v31 = vand.u32 2147483647, %v5924_v0  ;;  %v6021_v49 = vstv %s7895_s5 }
 0x2c8   :  { %v5008_v47 = vpop.eup %5007  ;;  %v973_v3 = vmul.f32 0.6931472, %v5006_v21 }
 0x2c9   :  { %v1000_v11 = vmul.f32 0.6931472, %v5008_v47  ;;  %v5010_v20 = vpop.eup %5009  ;;  %v997_v14 = vsel %vm5951_vm9, %v994_v25, %v991_v41  ;;  %v1012_v63 = vmul.f32 %v5924_v0, %v1011_v55  ;;  %v919_v41 = vmax.f32 %v5881_v54, 0.0 }
 0x2ca   :  { %v979_v1 = vsel %vm5936_vm8, %v976_v53, %v973_v3  ;;  %v982_v5 = vmul.f32 0.6931472, %v5010_v20  ;;  %v5979_v35 = vpop.eup %5011  ;;  %v1045_v50 = vadd.f32 %v997_v14, %v917_v44  ;;  %vm1014_vm15 = vcmp.lt.f32.partialorder %v1013_v31, 0.0004427343 }
 0x2cb   :  { %v1043_v33 = vadd.f32 %v979_v1, %v915_v24  ;;  %v1006_v4 = vsel %vm5967_vm10, %v1003_v45, %v1000_v11  ;;  %v1034_v39 = vadd.f32 1.0, %v5979_v35  ;;  %v5014_v40 = vpop.eup %5013  ;;  %v1037_v42 = vmul.f32 -0.5, %v5979_v35  ;;  %v6028_v45 = vld [vmem:[%s7892_s2 + $0x28] sm:$0xff]  }
 0x2cc   :  { %v988_v37 = vsel %vm987_vm11, %v985_v22, %v982_v5  ;;  %v1046_v48 = vadd.f32 %v1006_v4, %v918_v9  ;;  %v1016_v19 = vadd.f32 1.0, %v5014_v40  ;;  %v1053_v47 = vsel %vm925_vm12, %v5847_v62, %v1045_v50 }
 0x2cd   :  { %v1044_v38 = vadd.f32 %v988_v37, %v916_v27  ;;  %v1051_v46 = vsel %vm923_vm13, %v5850_v12, %v1043_v33  ;;  %5019 = vlog2.f32 %v1034_v39  ;;  %v6001_v12 = vld [vmem:[%s7892_s2 + $0x18] sm:$0xff]   ;;  %v1028_v62 = vmul.f32 -0.5, %v5931_v52 }
 0x2ce   :  { %5021 = vlog2.f32 %v1016_v19  ;;  %4437 = vmatmul.mubr.msk.bf16.gmra.mrb[20].mxu0 %vm322_vm3, %v6001_v12  ;;  %v1031_v20 = vand.u32 2147483647, %v5931_v52  ;;  %v1038_v24 = vadd.f32 1.0, %v1037_v42  ;;  %v1040_v14 = vand.u32 2147483647, %v5979_v35  ;;  %v6064_v19 = vld [vmem:[%s7893_s3] sm:$0xff]  }
 0x2cf   :  { %v5016_v59 = vpop.eup %5015  ;;  %v1052_v2 = vsel %vm924_vm14, %v5861_v32, %v1044_v38  ;;  %v1054_v32 = vsel %vm926_vm0, %v5858_v29, %v1046_v48  ;;  %4440 = vmatprep.mubr.msk.bf16.mxu0 %vm322_vm3, %v6010_v56  ;;  %v1019_v29 = vmul.f32 -0.5, %v5014_v40  ;;  %v1029_v11 = vadd.f32 1.0, %v1028_v62 }
 0x2d0   :  { %v1105_v21 = vadd.f32 %v1052_v2, %v1051_v46  ;;  %v1009_v53 = vmul.f32 0.6931472, %v5016_v59  ;;  %v5018_v6 = vpop.eup %5017  ;;  %v4740_v5 = vadd.f32 %v6021_v49, %v5826_v18  ;;  %vm1032_vm5 = vcmp.lt.f32.partialorder %v1031_v20, 0.0004427343 }
 0x2d1   :  { %v1027_v26 = vmul.f32 0.6931472, %v5018_v6  ;;  %v1020_v9 = vadd.f32 1.0, %v1019_v29  ;;  %v1030_v22 = vmul.f32 %v5931_v52, %v1029_v11  ;;  %v1098_v4 = vrot.slane %v5948_v34, 4 }
 0x2d2   :  { %v1106_v3 = vadd.f32 %v1105_v21, %v1053_v47  ;;  %v1015_v10 = vsel %vm1014_vm15, %v1012_v63, %v1009_v53  ;;  %v1039_v55 = vmul.f32 %v5979_v35, %v1038_v24  ;;  %v921_v52 = vmax.f32 %v5875_v51, 0.0  ;;  %v6055_v53 = vld [vmem:[%s7892_s2 + $0x38] sm:$0xff]  }
 0x2d3   :  { %v1047_v0 = vadd.f32 %v1015_v10, %v919_v41  ;;  %v1033_v37 = vsel %vm1032_vm5, %v1030_v22, %v1027_v26  ;;  %v1021_v18 = vmul.f32 %v5014_v40, %v1020_v9  ;;  %vm1041_vm6 = vcmp.lt.f32.partialorder %v1040_v14, 0.0004427343  ;;  %v6087_v22 = vld [vmem:[%s7893_s3 + $0x8] sm:$0xff]  }
 0x2d4   :  { %v1107_v25 = vadd.f32 %v1106_v3, %v1054_v32  ;;  %v920_v38 = vmax.f32 %v5890_v16, 0.0  ;;  %v4741_v31 = vadd.f32 %v4740_v5, %v6021_v49  ;;  %v1049_v46 = vadd.f32 %v1033_v37, %v921_v52  ;;  %v6115_v37 = vld [vmem:[%s7893_s3 + $0x28] sm:$0xff]  }
 0x2d5   :  { %v1055_v28 = vsel %vm927_vm1, %v5881_v54, %v1047_v0  ;;  %v1022_v54 = vand.u32 2147483647, %v5014_v40  ;;  %v922_v48 = vmax.f32 %v5884_v61, 0.0  ;;  %vm928_vm8 = vcmp.ne.f32.partialorder %v5890_v16, %v5890_v16 }
 0x2d6   :  { %v1108_v1 = vadd.f32 %v1107_v25, %v1055_v28  ;;  %4441 = vmatmul.mubr.msk.bf16.gmra.mrb[24].mxu0 %vm322_vm3, %v6028_v45  ;;  %v1099_v35 = vadd.f32 %v1098_v4, %v5948_v34  ;;  %vm929_vm9 = vcmp.ne.f32.partialorder %v5875_v51, %v5875_v51  ;;  %vm930_vm10 = vcmp.ne.f32.partialorder %v5884_v61, %v5884_v61 }
 0x2d7   :  { %v5020_v44 = vpop.eup %5019  ;;  %4444 = vmatprep.mubr.msk.bf16.mxu0 %vm322_vm3, %v6038_v60  ;;  %vm1023_vm7 = vcmp.lt.f32.partialorder %v1022_v54, 0.0004427343  ;;  %v1057_v34 = vsel %vm929_vm9, %v5875_v51, %v1049_v46  ;;  %v4018_v54 = vld [vmem:[%s7890_s0 + $0x10] sm:$0x7] }
 0x2d8   :  { %v1036_v33 = vmul.f32 0.6931472, %v5020_v44  ;;  %v5022_v27 = vpop.eup %5021  ;;  %v1100_v41 = vrot.slane %v1099_v35, 2  ;;  %v2085_v5 = vand.u32 %v4018_v54, %v5435_v8 }
 0x2d9   :  { %v1018_v50 = vmul.f32 0.6931472, %v5022_v27  ;;  %v6108_v27 = vld [vmem:[%s7893_s3 + $0x20] sm:$0xff]  }
 0x2da   :  { %v1042_v39 = vsel %vm1041_vm6, %v1039_v55, %v1036_v33  ;;  %v1101_v0 = vadd.f32 %v1100_v41, %v1099_v35  ;;  %4514 = vmatprep.subr.bf16.mxu0 %v2085_v5  ;;  %v6101_v33 = vld [vmem:[%s7893_s3 + $0x18] sm:$0xff]  }
 0x2db   :  { %v1024_v59 = vsel %vm1023_vm7, %v1021_v18, %v1018_v50  ;;  %v1050_v40 = vadd.f32 %v1042_v39, %v922_v48  ;;  %4515 = vmatpush3.bf16.msra.mxu0 %v2085_v5  ;;  %v6122_v50 = vld [vmem:[%s7893_s3 + $0x30] sm:$0xff]  }
 0x2dc   :  { %v1048_v2 = vadd.f32 %v1024_v59, %v920_v38  ;;  %v1102_v29 = vrot.slane %v1101_v0, 1  ;;  %v6136_v59 = vld [vmem:[%s7892_s2] sm:$0xff]  }
 0x2dd   :  { %v1058_v3 = vsel %vm930_vm10, %v5884_v61, %v1050_v40 }
 0x2de   :  { %v1056_v21 = vsel %vm928_vm8, %v5890_v16, %v1048_v2  ;;  %4445 = vmatmul.mubr.msk.bf16.gmra.mrb[28].mxu0 %vm322_vm3, %v6055_v53  ;;  %v4742_v16 = vadd.f32 %v4741_v31, %v6021_v49  ;;  %v1103_v11 = vadd.f32 %v1102_v29, %v1101_v0  ;;  %v6129_v31 = vld [vmem:[%s7893_s3 + $0x38] sm:$0xff]  }
 0x2df   :  { %v1109_v63 = vadd.f32 %v1108_v1, %v1056_v21  ;;  %4516 = vmatprep.mubr.msk.bf16.mxu0 %vm153_vm2, %v6064_v19 }
 0x2e0   :  { %v4743_v32 = vadd.f32 %v4742_v16, %v6021_v49  ;;  %v1104_v61 = vmul.f32 0.33333334, %v1103_v11 }
 0x2e1   :  { %v1110_v47 = vadd.f32 %v1109_v63, %v1057_v34 }
 0x2e2   :  { %v4744_v28 = vadd.f32 %v4743_v32, %v6021_v49 }
 0x2e3   :  { %v1111_v10 = vadd.f32 %v1110_v47, %v1058_v3 }
 0x2e4   :  { %v4745_v51 = vadd.f32 %v4744_v28, %v6021_v49 }
 0x2e5   :  { %v1112_v62 = vrot.slane %v1111_v10, 4 }
 0x2e6   :  { %v4746_v44 = vadd.f32 %v4745_v51, %v6021_v49  ;;  %4517 = vmatmul.mubr.msk.bf16.vlgmr.msra.gmra.mrb[32].mxu0 %vm153_vm2, %v6087_v22 }
 0x2e7   :  { %v1113_v25 = vadd.f32 %v1112_v62, %v1111_v10 }
 0x2e8   :  { %v4747_v9 = vadd.f32 %v4746_v44, %v6021_v49  ;;  %v6094_v49 = vld [vmem:[%s7893_s3 + $0x10] sm:$0xff]  }
 0x2e9   :  { %v1114_v42 = vrot.slane %v1113_v25, 2  ;;  %4520 = vmatprep.mubr.msk.bf16.mxu0 %vm153_vm2, %v6094_v49 }
 0x2eb   :  { %v1115_v6 = vadd.f32 %v1114_v42, %v1113_v25 }
 0x2ed   :  { %v1116_v1 = vrot.slane %v1115_v6, 1 }
 0x2ee   :  { %4521 = vmatmul.mubr.msk.bf16.gmra.mrb[36].mxu0 %vm153_vm2, %v6101_v33 }
 0x2ef   :  { %v1117_v20 = vadd.f32 %v1116_v1, %v1115_v6  ;;  %4524 = vmatprep.mubr.msk.bf16.mxu0 %vm153_vm2, %v6108_v27 }
 0x2f1   :  { %v1118_v26 = vmul.f32 0.25, %v1117_v20 }
 0x2f3   :  { %v1119_v24 = vadd.f32 %v1118_v26, %v1104_v61 }
 0x2f5   :  { %v6078_v14 = vadd.f32 %v4747_v9, %v1119_v24 }
 0x2f6   :  { %4525 = vmatmul.mubr.msk.bf16.gmra.mrb[40].mxu0 %vm153_vm2, %v6115_v37 }
 0x2f7   :  { %4528 = vmatprep.mubr.msk.bf16.mxu0 %vm153_vm2, %v6122_v50 }
 0x2fe   :  { %4529 = vmatmul.mubr.msk.bf16.gmra.mrb[44].mxu0 %vm153_vm2, %v6129_v31 }
 0x2ff   :  { %4540 = vmatprep.mubr.msk.bf16.mxu0 %vm322_vm3, %v6136_v59 }
 0x397   :  { %v4434_v4 = vpop.f32.mrb[16].mxu0 }
 0x398   :  { %5023 = vtanh.f32 %v4434_v4  ;;  %v1302_v55 = vpop.f32.mrb[17].mxu0 }
 0x399   :  { %5025 = vtanh.f32 %v1302_v55  ;;  %v4435_v18 = vpop.f32.mrb[18].mxu0 }
 0x39a   :  { %5027 = vtanh.f32 %v4435_v18  ;;  %v1305_v52 = vpop.f32.mrb[19].mxu0 }
 0x39b   :  { %5029 = vtanh.f32 %v1305_v52 }
 0x3a1   :  { %v4438_v38 = vpop.f32.mrb[20].mxu0 }
 0x3a2   :  { %v1318_v39 = vpop.f32.mrb[21].mxu0  ;;  %v6140_v48 = vpop.eup %5023 }
 0x3a3   :  { %5031 = vtanh.f32 %v1318_v39  ;;  %v4439_v46 = vpop.f32.mrb[22].mxu0  ;;  %v5026_v35 = vpop.eup %5025  ;;  %v6174_v42 = vadd.f32 %v6140_v48, %v5855_v7 }
 0x3a4   :  { %5033 = vtanh.f32 %v4438_v38  ;;  %v1321_v2 = vpop.f32.mrb[23].mxu0  ;;  %v6142_v40 = vpop.eup %5027  ;;  %v1525_v21 = vadd.f32 %v5026_v35, %v6140_v48  ;;  %v6147_v34 = vadd.f32 %v5026_v35, %v5839_v57 }
 0x3a5   :  { %5035 = vtanh.f32 %v1321_v2  ;;  %v5030_v63 = vpop.eup %5029  ;;  %v6163_v62 = vadd.f32 %v6142_v40, %v5845_v43  ;;  %7952 = vst [vmem:[#allocation10_spill] sm:$0xff] %v6174_v42 }
 0x3a6   :  { %5037 = vtanh.f32 %v4439_v46  ;;  %v1528_v16 = vadd.f32 %v5030_v63, %v6142_v40  ;;  %7949 = vst [vmem:[#allocation7_spill] sm:$0xff] %v6147_v34  ;;  %v6150_v47 = vadd.f32 %v5030_v63, %v5842_v17 }
 0x3a7   :  { %7951 = vst [vmem:[#allocation9_spill] sm:$0xff] %v6163_v62  ;;  %v6180_v44 = vpack.c.bf16 %v6163_v62, %v6174_v42 }
 0x3a8   :  { %7950 = vst [vmem:[#allocation8_spill] sm:$0xff] %v6150_v47  ;;  %v6159_v32 = vpack.c.bf16 %v6150_v47, %v6147_v34 }
 0x3a9   :  { %v6152_v41 = vpop.f32.mrb[24].mxu0 }
 0x3aa   :  { %v1399_v3 = vand.u32 2147483647, %v6152_v41  ;;  %v6155_v10 = vpop.f32.mrb[25].mxu0  ;;  %4449 = vmatpush3.bf16.msra.mxu1 %v6159_v32  ;;  %vm1383_vm13 = vcmp.ne.f32.partialorder %v6152_v41, %v6152_v41 }
 0x3ab   :  { %v1397_v57 = vand.u32 2147483647, %v6155_v10  ;;  %v6166_v0 = vpop.f32.mrb[26].mxu0  ;;  %4450 = vmatprep.subr.bf16.mxu1 %v7939_v30  ;;  %vm1381_vm12 = vcmp.ne.f32.partialorder %v6155_v10, %v6155_v10 }
 0x3ac   :  { %v1407_v17 = vsub.f32 0.0, %v1399_v3  ;;  %v1400_v25 = vand.u32 2147483647, %v6166_v0  ;;  %v6169_v28 = vpop.f32.mrb[27].mxu0  ;;  %vm1384_vm5 = vcmp.ne.f32.partialorder %v6166_v0, %v6166_v0 }
 0x3ad   :  { %v5032_v29 = vpop.eup %5031  ;;  %v1405_v6 = vsub.f32 0.0, %v1397_v57  ;;  %v1398_v43 = vand.u32 2147483647, %v6169_v28  ;;  %vm1382_vm15 = vcmp.ne.f32.partialorder %v6169_v28, %v6169_v28 }
 0x3ae   :  { %v5034_v51 = vpop.eup %5033  ;;  %v1526_v1 = vadd.f32 %v5032_v29, %v1525_v21  ;;  %v1417_v11 = vmul.f32 1.442695, %v1407_v17  ;;  %v1408_v20 = vsub.f32 0.0, %v1400_v25  ;;  %4451 = vmatpush3.bf16.msra.mxu1 %v6180_v44 }
 0x3af   :  { %v5036_v26 = vpop.eup %5035  ;;  %v1413_v61 = vmul.f32 1.442695, %v1405_v6  ;;  %v1406_v24 = vsub.f32 0.0, %v1398_v43  ;;  %4452 = vmatprep.subr.bf16.mxu1 %v7939_v30 }
 0x3b0   :  { %v1527_v9 = vadd.f32 %v5034_v51, %v1526_v1  ;;  %v1529_v7 = vadd.f32 %v5036_v26, %v1528_v16  ;;  %5039 = vpow2.f32 %v1417_v11  ;;  %v1419_v54 = vmul.f32 1.442695, %v1408_v20  ;;  %v5038_v5 = vpop.eup %5037 }
 0x3b1   :  { %5041 = vpow2.f32 %v1413_v61  ;;  %v1415_v4 = vmul.f32 1.442695, %v1406_v24  ;;  %v6183_v55 = vpop.f32.mrb[28].mxu0  ;;  %v6197_v25 = vadd.f32 %v5036_v26, %v5904_v15  ;;  %v6206_v61 = vadd.f32 %v5038_v5, %v5913_v58 }
 0x3b2   :  { %v1531_v18 = vmul.f32 0.25, %v1527_v9  ;;  %v1530_v52 = vadd.f32 %v5038_v5, %v1529_v7  ;;  %5043 = vpow2.f32 %v1419_v54  ;;  %v6186_v38 = vpop.f32.mrb[29].mxu0  ;;  %v1403_v39 = vand.u32 2147483647, %v6183_v55 }
 0x3b3   :  { %5045 = vpow2.f32 %v1415_v4  ;;  %v6189_v46 = vpop.f32.mrb[30].mxu0  ;;  %v1401_v17 = vand.u32 2147483647, %v6186_v38  ;;  %7953 = vst [vmem:[#allocation11_spill] sm:$0xff] %v6197_v25  ;;  %7955 = vst [vmem:[#allocation13_spill] sm:$0xff] %v6206_v61  ;;  %vm1385_vm7 = vcmp.ne.f32.partialorder %v6186_v38, %v6186_v38 }
 0x3b4   :  { %v1533_v2 = vsub.f32 %v5026_v35, %v1531_v18  ;;  %v6191_v21 = vsub.f32 %v5032_v29, %v1531_v18  ;;  %v1532_v16 = vmul.f32 0.25, %v1530_v52  ;;  %v6193_v3 = vpop.f32.mrb[31].mxu0  ;;  %v1411_v57 = vsub.f32 0.0, %v1403_v39 }
 0x3b5   :  { %v1409_v11 = vsub.f32 0.0, %v1401_v17  ;;  %v1404_v20 = vand.u32 2147483647, %v6189_v46  ;;  %v6203_v35 = vadd.f32 %v5032_v29, %v5909_v13  ;;  %v1402_v9 = vand.u32 2147483647, %v6193_v3 }
 0x3b6   :  { %v1534_v6 = vsub.f32 %v5030_v63, %v1532_v16  ;;  %v6199_v43 = vsub.f32 %v5036_v26, %v1532_v16  ;;  %v1425_v1 = vmul.f32 1.442695, %v1411_v57  ;;  %v4000_v63 = vld [vmem:[%s7890_s0 + $0xc] sm:$0x7]  ;;  %v1535_v13 = vsub.f32 %v6140_v48, %v1531_v18 }
 0x3b7   :  { %7954 = vst [vmem:[#allocation12_spill] sm:$0xff] %v6203_v35  ;;  %v1421_v24 = vmul.f32 1.442695, %v1409_v11  ;;  %v6211_v15 = vpack.c.bf16 %v6197_v25, %v6203_v35  ;;  %v1412_v7 = vsub.f32 0.0, %v1404_v20  ;;  %v1536_v58 = vsub.f32 %v6142_v40, %v1532_v16 }
 0x3b8   :  { %5047 = vpow2.f32 %v1425_v1  ;;  %v6220_v29 = vsub.f32 %v5034_v51, %v1531_v18  ;;  %v6227_v52 = vadd.f32 %v5034_v51, %v5920_v36  ;;  %v1627_v48 = vand.u32 %v4000_v63, %v5435_v8 }
 0x3b9   :  { %5049 = vpow2.f32 %v1421_v24  ;;  %4453 = vmatpush3.bf16.msra.mxu1 %v6211_v15  ;;  %v1410_v17 = vsub.f32 0.0, %v1402_v9  ;;  %v1427_v36 = vmul.f32 1.442695, %v1412_v7  ;;  %v1542_v11 = vmul.f32 %v1534_v6, %v1534_v6  ;;  %v6251_v7 = vld [vmem:[%s7894_s4] sm:$0x1] }
 0x3ba   :  { %v6216_v26 = vpop.eup %5039  ;;  %7956 = vst [vmem:[#allocation14_spill] sm:$0xff] %v6227_v52  ;;  %4454 = vmatprep.subr.bf16.mxu1 %v7939_v30  ;;  %v6239_v1 = vpack.c.bf16 %v6206_v61, %v6227_v52  ;;  %v6244_v63 = vsub.f32 %v5038_v5, %v1532_v16  ;;  %7957 = vst [vmem:[#allocation15_spill] sm:$0xff] %v6251_v7  ;;  %v1373_v16 = vmax.f32 %v6155_v10, 0.0 }
 0x3bb   :  { %v6222_v54 = vpop.eup %5041  ;;  %v1447_v4 = vadd.f32 1.0, %v6216_v26  ;;  %v1423_v24 = vmul.f32 1.442695, %v1410_v17  ;;  %v1545_v9 = vmul.f32 %v6191_v21, %v6191_v21  ;;  %v1544_v42 = vmul.f32 %v1536_v58, %v1536_v58 }
 0x3bc   :  { %v6229_v39 = vpop.eup %5043  ;;  %v1429_v57 = vadd.f32 1.0, %v6222_v54  ;;  %v1432_v20 = vmul.f32 -0.5, %v6222_v54 }
 0x3bd   :  { %v6234_v40 = vpop.eup %5045  ;;  %5051 = vlog2.f32 %v1447_v4  ;;  %v1456_v18 = vadd.f32 1.0, %v6229_v39  ;;  %4455 = vmatpush3.bf16.msra.mxu1 %v6239_v1  ;;  %v1450_v4 = vmul.f32 -0.5, %v6216_v26  ;;  %v1459_v5 = vmul.f32 -0.5, %v6229_v39 }
 0x3be   :  { %5053 = vlog2.f32 %v1429_v57  ;;  %v1438_v51 = vadd.f32 1.0, %v6234_v40  ;;  %4460 = vmatprep.subr.bf16.mxu1 %v1627_v48  ;;  %v1541_v57 = vmul.f32 %v1533_v2, %v1533_v2 }
 0x3bf   :  { %5055 = vlog2.f32 %v1456_v18  ;;  %v1435_v18 = vand.u32 2147483647, %v6222_v54  ;;  %v1451_v8 = vadd.f32 1.0, %v1450_v4  ;;  %v1460_v61 = vadd.f32 1.0, %v1459_v5 }
 0x3c0   :  { %5057 = vlog2.f32 %v1438_v51  ;;  %4457 = vmatmul.mubr.msk.bf16.vlgmr.msra.gmra.mrb[8].mxu1 %vm322_vm3, %v6251_v7  ;;  %v1441_v51 = vmul.f32 -0.5, %v6234_v40  ;;  %v1549_v7 = vadd.f32 %v1542_v11, %v1541_v57 }
 0x3c1   :  { %5059 = vpow2.f32 %v1427_v36  ;;  %4461 = vmatpush3.bf16.msra.mxu1 %v1627_v48  ;;  %4462 = vmatprep.mubr.msk.bf16.mxu1 %vm153_vm2, %v6064_v19  ;;  %v1374_v36 = vmax.f32 %v6169_v28, 0.0  ;;  %v1543_v48 = vmul.f32 %v1535_v13, %v1535_v13  ;;  %v1453_v19 = vand.u32 2147483647, %v6216_v26 }
 0x3c2   :  { %v6255_v6 = vpop.eup %5047  ;;  %5061 = vpow2.f32 %v1423_v24  ;;  %4478 = vmatprep.subr.bf16.mxu1 %v6159_v32  ;;  %v1433_v24 = vadd.f32 1.0, %v1432_v20  ;;  %vm6273_vm11 = vcmp.lt.f32.partialorder %v1435_v18, 0.0004427343  ;;  %v1462_v13 = vand.u32 2147483647, %v6229_v39 }
 0x3c3   :  { %v6266_v2 = vpop.eup %5049  ;;  %v1483_v52 = vadd.f32 1.0, %v6255_v6  ;;  %v1550_v62 = vadd.f32 %v1549_v7, %v1543_v48  ;;  %v1442_v11 = vadd.f32 1.0, %v1441_v51  ;;  %v1444_v18 = vand.u32 2147483647, %v6234_v40 }
 0x3c4   :  { %v1465_v17 = vadd.f32 1.0, %v6266_v2  ;;  %v1434_v57 = vmul.f32 %v6222_v54, %v1433_v24  ;;  %v1452_v58 = vmul.f32 %v6216_v26, %v1451_v8  ;;  %v1468_v7 = vmul.f32 -0.5, %v6266_v2 }
 0x3c5   :  { %v1551_v34 = vadd.f32 %v1550_v62, %v1544_v42  ;;  %vm6288_vm14 = vcmp.lt.f32.partialorder %v1453_v19, 0.0004427343  ;;  %v1461_v42 = vmul.f32 %v6229_v39, %v1460_v61  ;;  %v1443_v54 = vmul.f32 %v6234_v40, %v1442_v11 }
 0x3c6   :  { %5063 = vlog2.f32 %v1465_v17  ;;  %vm6308_vm0 = vcmp.lt.f32.partialorder %v1462_v13, 0.0004427343  ;;  %vm1445_vm1 = vcmp.lt.f32.partialorder %v1444_v18, 0.0004427343  ;;  %v1469_v51 = vadd.f32 1.0, %v1468_v7 }
 0x3c7   :  { %v5052_v35 = vpop.eup %5051  ;;  %5065 = vlog2.f32 %v1483_v52  ;;  %v1552_v25 = vadd.f32 %v1551_v34, %v1545_v9  ;;  %v1546_v34 = vmul.f32 %v6199_v43, %v6199_v43  ;;  %v7964_v9 = vmax.f32 %v6152_v41, 0.0 }
 0x3c8   :  { %v5054_v47 = vpop.eup %5053  ;;  %v1449_v21 = vmul.f32 0.6931472, %v5052_v35  ;;  %4463 = vmatmul.mubr.msk.bf16.vlgmr.msra.gmra.mrb[28].mxu1 %vm153_vm2, %v6087_v22  ;;  %v1486_v48 = vmul.f32 -0.5, %v6255_v6  ;;  %v1471_v19 = vand.u32 2147483647, %v6266_v2 }
 0x3c9   :  { %v5056_v20 = vpop.eup %5055  ;;  %v1431_v4 = vmul.f32 0.6931472, %v5054_v47  ;;  %4479 = vmatpush3.bf16.msra.mxu1 %v6159_v32  ;;  %4466 = vmatprep.mubr.msk.bf16.mxu1 %vm153_vm2, %v6094_v49  ;;  %v1553_v11 = vadd.f32 %v1552_v25, %v1546_v34 }
 0x3ca   :  { %v1458_v35 = vmul.f32 0.6931472, %v5056_v20  ;;  %v5058_v5 = vpop.eup %5057  ;;  %v1455_v22 = vsel %vm6288_vm14, %v1452_v58, %v1449_v21  ;;  %4480 = vmatprep.subr.bf16.mxu1 %v6180_v44  ;;  %v1547_v21 = vmul.f32 %v6220_v29, %v6220_v29  ;;  %vm1472_vm6 = vcmp.lt.f32.partialorder %v1471_v19, 0.0004427343 }
 0x3cb   :  { %v1437_v62 = vsel %vm6273_vm11, %v1434_v57, %v1431_v4  ;;  %v6300_v8 = vpop.eup %5059  ;;  %v1440_v26 = vmul.f32 0.6931472, %v5058_v5  ;;  %v1470_v57 = vmul.f32 %v6266_v2, %v1469_v51  ;;  %v1487_v7 = vadd.f32 1.0, %v1486_v48 }
 0x3cc   :  { %v6306_v61 = vpop.eup %5061  ;;  %v1501_v52 = vadd.f32 %v1437_v62, %v1373_v16  ;;  %v1492_v49 = vadd.f32 1.0, %v6300_v8  ;;  %v1464_v32 = vsel %vm6308_vm0, %v1461_v42, %v1458_v35  ;;  %v1503_v16 = vadd.f32 %v1455_v22, %v7964_v9 }
 0x3cd   :  { %v1446_v17 = vsel %vm1445_vm1, %v1443_v54, %v1440_v26  ;;  %v1474_v40 = vadd.f32 1.0, %v6306_v61  ;;  %4481 = vmatpush3.bf16.msra.mxu1 %v6180_v44  ;;  %v1495_v29 = vmul.f32 -0.5, %v6300_v8  ;;  %v1554_v2 = vadd.f32 %v1553_v11, %v1547_v21 }
 0x3ce   :  { %v1502_v24 = vadd.f32 %v1446_v17, %v1374_v36  ;;  %5067 = vlog2.f32 %v1492_v49  ;;  %4482 = vmatprep.subr.bf16.mxu1 %v6211_v15  ;;  %v1509_v43 = vsel %vm1381_vm12, %v6155_v10, %v1501_v52  ;;  %v7965_v36 = vmax.f32 %v6166_v0, 0.0 }
 0x3cf   :  { %5069 = vlog2.f32 %v1474_v40  ;;  %v1548_v10 = vmul.f32 %v6244_v63, %v6244_v63  ;;  %v1511_v18 = vsel %vm1383_vm13, %v6152_v41, %v1503_v16  ;;  %v1377_v63 = vmax.f32 %v6186_v38, 0.0 }
 0x3d0   :  { %v1504_v13 = vadd.f32 %v1464_v32, %v7965_v36  ;;  %v1510_v44 = vsel %vm1382_vm15, %v6169_v28, %v1502_v24  ;;  %v5064_v20 = vpop.eup %5063  ;;  %4467 = vmatmul.mubr.msk.bf16.gmra.mrb[32].mxu1 %vm153_vm2, %v6101_v33  ;;  %v1477_v28 = vmul.f32 -0.5, %v6306_v61  ;;  %v1496_v42 = vadd.f32 1.0, %v1495_v29 }
 0x3d1   :  { %v1563_v4 = vadd.f32 %v1510_v44, %v1509_v43  ;;  %v1467_v58 = vmul.f32 0.6931472, %v5064_v20  ;;  %4483 = vmatpush3.bf16.msra.mxu1 %v6211_v15  ;;  %4470 = vmatprep.mubr.msk.bf16.mxu1 %vm153_vm2, %v6108_v27  ;;  %v5066_v35 = vpop.eup %5065  ;;  %v1555_v47 = vadd.f32 %v1554_v2, %v1548_v10  ;;  %v1489_v15 = vand.u32 2147483647, %v6255_v6 }
 0x3d2   :  { %4484 = vmatprep.subr.bf16.mxu1 %v6239_v1  ;;  %v1512_v41 = vsel %vm1384_vm5, %v6166_v0, %v1504_v13  ;;  %v1485_v22 = vmul.f32 0.6931472, %v5066_v35  ;;  %v1478_v26 = vadd.f32 1.0, %v1477_v28  ;;  %v1498_v25 = vand.u32 2147483647, %v6300_v8 }
 0x3d3   :  { %v1564_v33 = vadd.f32 %v1563_v4, %v1511_v18  ;;  %v1473_v5 = vsel %vm1472_vm6, %v1470_v57, %v1467_v58  ;;  %v1480_v0 = vand.u32 2147483647, %v6306_v61  ;;  %v1488_v39 = vmul.f32 %v6255_v6, %v1487_v7 }
 0x3d4   :  { %v1505_v62 = vadd.f32 %v1473_v5, %v1377_v63  ;;  %vm1490_vm8 = vcmp.lt.f32.partialorder %v1489_v15, 0.0004427343  ;;  %v1497_v51 = vmul.f32 %v6300_v8, %v1496_v42  ;;  %v1479_v40 = vmul.f32 %v6306_v61, %v1478_v26  ;;  %v7966_v15 = vld [vmem:[#allocation7_spill] sm:$0xff] }
 0x3d5   :  { %v1565_v27 = vadd.f32 %v1564_v33, %v1512_v41  ;;  %4485 = vmatpush3.bf16.msra.mxu1 %v6239_v1  ;;  %v1491_v1 = vsel %vm1490_vm8, %v1488_v39, %v1485_v22  ;;  %v1556_v34 = vrot.slane %v1555_v47, 4  ;;  %v1379_v9 = vmax.f32 %v6183_v55, 0.0  ;;  %v7968_v22 = vld [vmem:[#allocation9_spill] sm:$0xff]  ;;  %v7969_v39 = vld [vmem:[#allocation10_spill] sm:$0xff] }
 0x3d6   :  { %v1513_v54 = vsel %vm1385_vm7, %v6186_v38, %v1505_v62  ;;  %4502 = vmatprep.subr.bf16.mxu1 %v7939_v30  ;;  %vm1499_vm9 = vcmp.lt.f32.partialorder %v1498_v25, 0.0004427343  ;;  %v1378_v6 = vmax.f32 %v6193_v3, 0.0  ;;  %vm1481_vm10 = vcmp.lt.f32.partialorder %v1480_v0, 0.0004427343 }
 0x3d7   :  { %v1566_v49 = vadd.f32 %v1565_v27, %v1513_v54  ;;  %v1507_v8 = vadd.f32 %v1491_v1, %v1379_v9  ;;  %v1380_v48 = vmax.f32 %v6189_v46, 0.0  ;;  %vm1386_vm11 = vcmp.ne.f32.partialorder %v6193_v3, %v6193_v3  ;;  %v7967_v27 = vld [vmem:[#allocation8_spill] sm:$0xff] }
 0x3d8   :  { %v5068_v52 = vpop.eup %5067  ;;  %4471 = vmatmul.mubr.msk.bf16.gmra.mrb[36].mxu1 %vm153_vm2, %v6115_v37  ;;  %v1557_v61 = vadd.f32 %v1556_v34, %v1555_v47  ;;  %vm1387_vm12 = vcmp.ne.f32.partialorder %v6183_v55, %v6183_v55  ;;  %vm1388_vm13 = vcmp.ne.f32.partialorder %v6189_v46, %v6189_v46 }
 0x3d9   :  { %v5070_v32 = vpop.eup %5069  ;;  %v1494_v17 = vmul.f32 0.6931472, %v5068_v52  ;;  %4474 = vmatprep.mubr.msk.bf16.mxu1 %vm153_vm2, %v6122_v50  ;;  %v1515_v43 = vsel %vm1387_vm12, %v6183_v55, %v1507_v8  ;;  %v6389_v55 = vld [vmem:[%s7892_s2 + $0x8] sm:$0xff]  }
 0x3da   :  { %v1476_v38 = vmul.f32 0.6931472, %v5070_v32  ;;  %v1558_v13 = vrot.slane %v1557_v61, 2 }
 0x3db   :  { %v1500_v16 = vsel %vm1499_vm9, %v1497_v51, %v1494_v17 }
 0x3dc   :  { %v1482_v24 = vsel %vm1481_vm10, %v1479_v40, %v1476_v38  ;;  %v1508_v19 = vadd.f32 %v1500_v16, %v1380_v48  ;;  %v1559_v20 = vadd.f32 %v1558_v13, %v1557_v61 }
 0x3dd   :  { %v1506_v37 = vadd.f32 %v1482_v24, %v1378_v6 }
 0x3de   :  { %v1516_v44 = vsel %vm1388_vm13, %v6189_v46, %v1508_v19 }
 0x3df   :  { %v1514_v50 = vsel %vm1386_vm11, %v6193_v3, %v1506_v37 }
 0x3e0   :  { %v1567_v21 = vadd.f32 %v1566_v49, %v1514_v50  ;;  %4475 = vmatmul.mubr.msk.bf16.gmra.mrb[40].mxu1 %vm153_vm2, %v6129_v31 }
 0x3e1   :  { %4486 = vmatprep.mubr.msk.bf16.mxu1 %vm322_vm3, %v6136_v59  ;;  %v1560_v59 = vrot.slane %v1559_v20, 1 }
 0x3e2   :  { %v1568_v36 = vadd.f32 %v1567_v21, %v1515_v43 }
 0x3e3   :  { %v1561_v46 = vadd.f32 %v1560_v59, %v1559_v20  ;;  %v7970_v59 = vld [vmem:[#allocation13_spill] sm:$0xff] }
 0x3e4   :  { %v1569_v3 = vadd.f32 %v1568_v36, %v1516_v44 }
 0x3e5   :  { %v1562_v18 = vmul.f32 0.33333334, %v1561_v46 }
 0x3e6   :  { %v1570_v11 = vrot.slane %v1569_v3, 4 }
 0x3e8   :  { %v1571_v4 = vadd.f32 %v1570_v11, %v1569_v3  ;;  %4487 = vmatmul.mubr.msk.bf16.vlgmr.msra.gmra.mrb[28].mxu1 %vm322_vm3, %v6389_v55 }
 0x3e9   :  { %4490 = vmatprep.mubr.msk.bf16.mxu1 %vm322_vm3, %v5975_v23 }
 0x3ea   :  { %v1572_v31 = vrot.slane %v1571_v4, 2 }
 0x3ec   :  { %v1573_v57 = vadd.f32 %v1572_v31, %v1571_v4 }
 0x3ee   :  { %v1574_v29 = vrot.slane %v1573_v57, 1 }
 0x3f0   :  { %v1575_v10 = vadd.f32 %v1574_v29, %v1573_v57  ;;  %4491 = vmatmul.mubr.msk.bf16.gmra.mrb[32].mxu1 %vm322_vm3, %v6001_v12 }
 0x3f1   :  { %4494 = vmatprep.mubr.msk.bf16.mxu1 %vm322_vm3, %v6010_v56 }
 0x3f2   :  { %v1576_v58 = vmul.f32 0.25, %v1575_v10 }
 0x3f4   :  { %v1577_v28 = vadd.f32 %v1576_v58, %v1562_v18  ;;  %v7971_v58 = vld [vmem:[#allocation11_spill] sm:$0xff] }
 0x3f6   :  { %v6400_v2 = vadd.f32 %v6078_v14, %v1577_v28 }
 0x3f8   :  { %4495 = vmatmul.mubr.msk.bf16.gmra.mrb[36].mxu1 %vm322_vm3, %v6028_v45 }
 0x3f9   :  { %4498 = vmatprep.mubr.msk.bf16.mxu1 %vm322_vm3, %v6038_v60 }
 0x400   :  { %4499 = vmatmul.mubr.msk.bf16.gmra.mrb[40].mxu1 %vm322_vm3, %v6055_v53 }
 0x401   :  { %4510 = vmatprep.mubr.msk.bf16.mxu1 %vm5383_vm4, %v7939_v30 }
 0x4bb   :  { %v4488_v23 = vpop.f32.mrb[28].mxu1 }
 0x4bc   :  { %5071 = vtanh.f32 %v4488_v23  ;;  %v1760_v12 = vpop.f32.mrb[29].mxu1 }
 0x4bd   :  { %5073 = vtanh.f32 %v1760_v12  ;;  %v4489_v56 = vpop.f32.mrb[30].mxu1 }
 0x4be   :  { %5075 = vtanh.f32 %v4489_v56  ;;  %v1763_v14 = vpop.f32.mrb[31].mxu1 }
 0x4bf   :  { %5077 = vtanh.f32 %v1763_v14 }
 0x4c3   :  { %v4492_v35 = vpop.f32.mrb[32].mxu1 }
 0x4c4   :  { %v1776_v33 = vpop.f32.mrb[33].mxu1 }
 0x4c5   :  { %5079 = vtanh.f32 %v1776_v33  ;;  %v4493_v45 = vpop.f32.mrb[34].mxu1 }
 0x4c6   :  { %v6410_v63 = vpop.eup %5071  ;;  %5081 = vtanh.f32 %v4492_v35  ;;  %v1779_v60 = vpop.f32.mrb[35].mxu1  ;;  %v7972_v35 = vld [vmem:[#allocation12_spill] sm:$0xff] }
 0x4c7   :  { %v6412_v53 = vpop.eup %5073  ;;  %5083 = vtanh.f32 %v1779_v60  ;;  %v6443_v49 = vadd.f32 %v6410_v63, %v7969_v39 }
 0x4c8   :  { %v6414_v41 = vpop.eup %5075  ;;  %v1983_v7 = vadd.f32 %v6412_v53, %v6410_v63  ;;  %5085 = vtanh.f32 %v4493_v45  ;;  %v6424_v62 = vadd.f32 %v6412_v53, %v7966_v15  ;;  %v7973_v45 = vld [vmem:[#allocation14_spill] sm:$0xff] }
 0x4c9   :  { %v6418_v5 = vpop.eup %5077  ;;  %v6432_v26 = vadd.f32 %v6414_v41, %v7968_v22 }
 0x4ca   :  { %v1986_v47 = vadd.f32 %v6418_v5, %v6414_v41  ;;  %v6428_v42 = vadd.f32 %v6418_v5, %v7967_v27 }
 0x4cb   :  { %v6434_v54 = vpop.f32.mrb[36].mxu1  ;;  %v2038_v40 = vpack.c.bf16 %v6432_v26, %v6443_v49 }
 0x4cc   :  { %v1857_v25 = vand.u32 2147483647, %v6434_v54  ;;  %v6437_v0 = vpop.f32.mrb[37].mxu1  ;;  %v2037_v52 = vpack.c.bf16 %v6428_v42, %v6424_v62  ;;  %vm1841_vm5 = vcmp.ne.f32.partialorder %v6434_v54, %v6434_v54 }
 0x4cd   :  { %v1855_v32 = vand.u32 2147483647, %v6437_v0  ;;  %v6446_v17 = vpop.f32.mrb[38].mxu1  ;;  %vm1839_vm0 = vcmp.ne.f32.partialorder %v6437_v0, %v6437_v0 }
 0x4ce   :  { %v1865_v51 = vsub.f32 0.0, %v1857_v25  ;;  %v1858_v1 = vand.u32 2147483647, %v6446_v17  ;;  %v6449_v38 = vpop.f32.mrb[39].mxu1  ;;  %4503 = vmatpush3.bf16.msra.mxu1 %v2037_v52  ;;  %4532 = vmatprep.subr.bf16.mxu0 %v2037_v52  ;;  %vm1842_vm7 = vcmp.ne.f32.partialorder %v6446_v17, %v6446_v17 }
 0x4cf   :  { %v5080_v34 = vpop.eup %5079  ;;  %v1863_v9 = vsub.f32 0.0, %v1855_v32  ;;  %v1856_v6 = vand.u32 2147483647, %v6449_v38  ;;  %4533 = vmatpush3.bf16.msra.mxu0 %v2037_v52  ;;  %4504 = vmatprep.subr.bf16.mxu1 %v7939_v30  ;;  %vm1840_vm1 = vcmp.ne.f32.partialorder %v6449_v38, %v6449_v38 }
 0x4d0   :  { %v5082_v16 = vpop.eup %5081  ;;  %v1984_v24 = vadd.f32 %v5080_v34, %v1983_v7  ;;  %v1875_v8 = vmul.f32 1.442695, %v1865_v51  ;;  %v1866_v48 = vsub.f32 0.0, %v1858_v1  ;;  %4534 = vmatprep.subr.bf16.mxu0 %v2038_v40  ;;  %v6482_v33 = vadd.f32 %v5080_v34, %v7972_v35  ;;  %v4036_v51 = vld [vmem:[%s7890_s0 + $0x14] sm:$0x7] }
 0x4d1   :  { %v5084_v37 = vpop.eup %5083  ;;  %v1871_v61 = vmul.f32 1.442695, %v1863_v9  ;;  %v1864_v19 = vsub.f32 0.0, %v1856_v6  ;;  %v6485_v60 = vadd.f32 %v5082_v16, %v7973_v45 }
 0x4d2   :  { %v6455_v50 = vpop.eup %5085  ;;  %v1985_v21 = vadd.f32 %v5082_v16, %v1984_v24  ;;  %v1987_v43 = vadd.f32 %v5084_v37, %v1986_v47  ;;  %5087 = vpow2.f32 %v1875_v8  ;;  %v1877_v36 = vmul.f32 1.442695, %v1866_v48  ;;  %4505 = vmatpush3.bf16.msra.mxu1 %v2038_v40  ;;  %v7974_v48 = vld [vmem:[#allocation6_spill] sm:$0xff] }
 0x4d3   :  { %5089 = vpow2.f32 %v1871_v61  ;;  %v1873_v13 = vmul.f32 1.442695, %v1864_v19  ;;  %v6457_v44 = vpop.f32.mrb[40].mxu1  ;;  %4535 = vmatpush3.bf16.msra.mxu0 %v2038_v40  ;;  %4506 = vmatprep.subr.bf16.mxu1 %v7939_v30  ;;  %v6468_v57 = vadd.f32 %v6455_v50, %v7970_v59  ;;  %v6476_v28 = vadd.f32 %v5084_v37, %v7971_v58 }
 0x4d4   :  { %v1989_v3 = vmul.f32 0.25, %v1985_v21  ;;  %v1988_v11 = vadd.f32 %v6455_v50, %v1987_v43  ;;  %5091 = vpow2.f32 %v1877_v36  ;;  %v6461_v20 = vpop.f32.mrb[41].mxu1  ;;  %v1861_v4 = vand.u32 2147483647, %v6457_v44  ;;  %v7975_v43 = vld [vmem:[#allocation15_spill] sm:$0xff] }
 0x4d5   :  { %5093 = vpow2.f32 %v1873_v13  ;;  %v6464_v31 = vpop.f32.mrb[42].mxu1  ;;  %v1859_v10 = vand.u32 2147483647, %v6461_v20  ;;  %v2039_v22 = vpack.c.bf16 %v6476_v28, %v6482_v33  ;;  %v2040_v25 = vpack.c.bf16 %v6468_v57, %v6485_v60 }
 0x4d6   :  { %v6470_v29 = vsub.f32 %v5080_v34, %v1989_v3  ;;  %v1990_v46 = vmul.f32 0.25, %v1988_v11  ;;  %v6473_v18 = vpop.f32.mrb[43].mxu1  ;;  %v1869_v23 = vsub.f32 0.0, %v1861_v4  ;;  %v1862_v12 = vand.u32 2147483647, %v6464_v31 }
 0x4d7   :  { %v1867_v14 = vsub.f32 0.0, %v1859_v10  ;;  %v1860_v15 = vand.u32 2147483647, %v6473_v18  ;;  %v6493_v52 = vsub.f32 %v6412_v53, %v1989_v3  ;;  %4507 = vmatpush3.bf16.msra.mxu1 %v2039_v22  ;;  %4536 = vmatprep.subr.bf16.mxu0 %v2039_v22  ;;  %v6500_v34 = vsub.f32 %v6410_v63, %v1989_v3 }
 0x4d8   :  { %v6479_v56 = vsub.f32 %v5084_v37, %v1990_v46  ;;  %v1883_v7 = vmul.f32 1.442695, %v1869_v23  ;;  %v1870_v47 = vsub.f32 0.0, %v1862_v12  ;;  %v1992_v1 = vsub.f32 %v6418_v5, %v1990_v46  ;;  %4537 = vmatpush3.bf16.msra.mxu0 %v2039_v22  ;;  %4508 = vmatprep.subr.bf16.mxu1 %v7939_v30 }
 0x4d9   :  { %v1879_v27 = vmul.f32 1.442695, %v1867_v14  ;;  %v1868_v32 = vsub.f32 0.0, %v1860_v15  ;;  %v6503_v9 = vsub.f32 %v6414_v41, %v1990_v46  ;;  %v6505_v53 = vsub.f32 %v5082_v16, %v1989_v3  ;;  %4538 = vmatprep.subr.bf16.mxu0 %v2040_v25 }
 0x4da   :  { %5095 = vpow2.f32 %v1883_v7  ;;  %v1885_v39 = vmul.f32 1.442695, %v1870_v47  ;;  %v2543_v37 = vand.u32 %v4036_v51, %v7974_v48  ;;  %v6519_v36 = vsub.f32 %v6455_v50, %v1990_v46  ;;  %v6533_v50 = vld [vmem:[%s7892_s2 + $0x10] sm:$0xff]  }
 0x4db   :  { %5097 = vpow2.f32 %v1879_v27  ;;  %v1881_v41 = vmul.f32 1.442695, %v1868_v32  ;;  %4509 = vmatpush3.bf16.msra.mxu1 %v2040_v25  ;;  %v1833_v4 = vmax.f32 %v6434_v54, 0.0  ;;  %v1831_v10 = vmax.f32 %v6437_v0, 0.0 }
 0x4dc   :  { %v5088_v40 = vpop.eup %5087  ;;  %5099 = vpow2.f32 %v1885_v39  ;;  %4539 = vmatpush3.bf16.msra.mxu0 %v2040_v25  ;;  %4556 = vmatprep.subr.bf16.mxu1 %v7939_v30  ;;  %v1834_v12 = vmax.f32 %v6446_v17, 0.0  ;;  %v1832_v14 = vmax.f32 %v6449_v38, 0.0  ;;  %v2003_v7 = vmul.f32 %v6470_v29, %v6470_v29 }
 0x4dd   :  { %v5090_v6 = vpop.eup %5089  ;;  %v1905_v24 = vadd.f32 1.0, %v5088_v40  ;;  %v1908_v16 = vmul.f32 -0.5, %v5088_v40  ;;  %4568 = vmatprep.subr.bf16.mxu0 %v2543_v37  ;;  %v1911_v13 = vand.u32 2147483647, %v5088_v40  ;;  %v1835_v15 = vmax.f32 %v6461_v20, 0.0 }
 0x4de   :  { %v6508_v8 = vpop.eup %5091  ;;  %v1887_v5 = vadd.f32 1.0, %v5090_v6  ;;  %v1890_v21 = vmul.f32 -0.5, %v5090_v6  ;;  %4511 = vmatmul.mubr.msk.bf16.vlgmr.msra.gmra.mrb[8].mxu1 %vm322_vm3, %v7975_v43  ;;  %v1893_v3 = vand.u32 2147483647, %v5090_v6  ;;  %v2000_v32 = vmul.f32 %v1992_v1, %v1992_v1 }
 0x4df   :  { %v6511_v61 = vpop.eup %5093  ;;  %5101 = vlog2.f32 %v1905_v24  ;;  %v1914_v63 = vadd.f32 1.0, %v6508_v8  ;;  %4541 = vmatmul.mubr.msk.bf16.vlgmr.msra.gmra.mrb[32].mxu0 %vm322_vm3, %v6389_v55  ;;  %4564 = vmatprep.mubr.msk.bf16.mxu1 %vm5383_vm4, %v7939_v30  ;;  %v1909_v59 = vadd.f32 1.0, %v1908_v16  ;;  %v1917_v58 = vmul.f32 -0.5, %v6508_v8 }
 0x4e0   :  { %5103 = vlog2.f32 %v1887_v5  ;;  %v1896_v19 = vadd.f32 1.0, %v6511_v61  ;;  %4544 = vmatprep.mubr.msk.bf16.mxu0 %vm322_vm3, %v6533_v50  ;;  %4569 = vmatpush3.bf16.msra.mxu0 %v2543_v37  ;;  %v1891_v23 = vadd.f32 1.0, %v1890_v21  ;;  %v1899_v35 = vmul.f32 -0.5, %v6511_v61 }
 0x4e1   :  { %5105 = vlog2.f32 %v1914_v63  ;;  %vm6549_vm14 = vcmp.lt.f32.partialorder %v1911_v13, 0.0004427343  ;;  %vm6553_vm15 = vcmp.lt.f32.partialorder %v1893_v3, 0.0004427343  ;;  %v1920_v39 = vand.u32 2147483647, %v6508_v8 }
 0x4e2   :  { %5107 = vlog2.f32 %v1896_v19  ;;  %v1910_v24 = vmul.f32 %v5088_v40, %v1909_v59  ;;  %v1918_v29 = vadd.f32 1.0, %v1917_v58  ;;  %v1900_v16 = vadd.f32 1.0, %v1899_v35  ;;  %v6576_v3 = vld [vmem:[%s7892_s2 + $0x18] sm:$0xff]  }
 0x4e3   :  { %5109 = vpow2.f32 %v1881_v41  ;;  %v1892_v41 = vmul.f32 %v5090_v6, %v1891_v23  ;;  %v1999_v19 = vmul.f32 %v6493_v52, %v6493_v52  ;;  %v1902_v40 = vand.u32 2147483647, %v6511_v61  ;;  %v6641_v6 = vld [vmem:[%s7892_s2 + $0x30] sm:$0xff]  }
 0x4e4   :  { %v6525_v11 = vpop.eup %5095  ;;  %vm6569_vm6 = vcmp.lt.f32.partialorder %v1920_v39, 0.0004427343  ;;  %v2001_v52 = vmul.f32 %v6500_v34, %v6500_v34  ;;  %v1919_v35 = vmul.f32 %v6508_v8, %v1918_v29  ;;  %v1901_v39 = vmul.f32 %v6511_v61, %v1900_v16 }
 0x4e5   :  { %v6537_v46 = vpop.eup %5097  ;;  %v1941_v47 = vadd.f32 1.0, %v6525_v11  ;;  %v2007_v59 = vadd.f32 %v2000_v32, %v1999_v19  ;;  %vm1903_vm8 = vcmp.lt.f32.partialorder %v1902_v40, 0.0004427343  ;;  %v2004_v61 = vmul.f32 %v6479_v56, %v6479_v56 }
 0x4e6   :  { %v6542_v45 = vpop.eup %5099  ;;  %v1923_v27 = vadd.f32 1.0, %v6537_v46  ;;  %v1926_v43 = vmul.f32 -0.5, %v6537_v46  ;;  %v1929_v19 = vand.u32 2147483647, %v6537_v46  ;;  %v2005_v16 = vmul.f32 %v6505_v53, %v6505_v53 }
 0x4e7   :  { %v1950_v5 = vadd.f32 1.0, %v6542_v45  ;;  %4545 = vmatmul.mubr.msk.bf16.gmra.mrb[36].mxu0 %vm322_vm3, %v6576_v3  ;;  %v2008_v32 = vadd.f32 %v2007_v59, %v2001_v52  ;;  %vm1843_vm9 = vcmp.ne.f32.partialorder %v6461_v20, %v6461_v20 }
 0x4e8   :  { %5111 = vlog2.f32 %v1923_v27  ;;  %v2002_v27 = vmul.f32 %v6503_v9, %v6503_v9  ;;  %v1927_v29 = vadd.f32 1.0, %v1926_v43  ;;  %vm1930_vm10 = vcmp.lt.f32.partialorder %v1929_v19, 0.0004427343 }
 0x4e9   :  { %v5102_v51 = vpop.eup %5101  ;;  %5113 = vlog2.f32 %v1941_v47  ;;  %v6588_v47 = vld [vmem:[%s7892_s2 + $0x20] sm:$0xff]  }
 0x4ea   :  { %v5104_v37 = vpop.eup %5103  ;;  %v1907_v63 = vmul.f32 0.6931472, %v5102_v51  ;;  %5115 = vlog2.f32 %v1950_v5  ;;  %4548 = vmatprep.mubr.msk.bf16.mxu0 %vm322_vm3, %v6588_v47  ;;  %v2009_v22 = vadd.f32 %v2008_v32, %v2002_v27  ;;  %v1947_v27 = vand.u32 2147483647, %v6525_v11 }
 0x4eb   :  { %v5106_v1 = vpop.eup %5105  ;;  %v1889_v21 = vmul.f32 0.6931472, %v5104_v37 }
 0x4ec   :  { %v1916_v13 = vmul.f32 0.6931472, %v5106_v1  ;;  %v5108_v58 = vpop.eup %5107  ;;  %v1913_v25 = vsel %vm6549_vm14, %v1910_v24, %v1907_v63  ;;  %v2010_v1 = vadd.f32 %v2009_v22, %v2003_v7  ;;  %v6628_v7 = vld [vmem:[%s7892_s2 + $0x28] sm:$0xff]   ;;  %vm6661_vm11 = vcmp.lt.f32.partialorder %v1947_v27, 0.0004427343 }
 0x4ed   :  { %v1895_v23 = vsel %vm6553_vm15, %v1892_v41, %v1889_v21  ;;  %v6594_v34 = vpop.eup %5109  ;;  %v1898_v8 = vmul.f32 0.6931472, %v5108_v58  ;;  %v1944_v41 = vmul.f32 -0.5, %v6525_v11  ;;  %v1961_v24 = vadd.f32 %v1913_v25, %v1833_v4 }
 0x4ee   :  { %v1959_v51 = vadd.f32 %v1895_v23, %v1831_v10  ;;  %v1932_v5 = vadd.f32 1.0, %v6594_v34  ;;  %v1922_v9 = vsel %vm6569_vm6, %v1919_v35, %v1916_v13  ;;  %v1953_v10 = vmul.f32 -0.5, %v6542_v45 }
 0x4ef   :  { %v1904_v37 = vsel %vm1903_vm8, %v1901_v39, %v1898_v8  ;;  %v1962_v4 = vadd.f32 %v1922_v9, %v1834_v12  ;;  %v1935_v53 = vmul.f32 -0.5, %v6594_v34  ;;  %4549 = vmatmul.mubr.msk.bf16.gmra.mrb[40].mxu0 %vm322_vm3, %v6628_v7  ;;  %v2006_v58 = vmul.f32 %v6519_v36, %v6519_v36 }
 0x4f0   :  { %v1960_v63 = vadd.f32 %v1904_v37, %v1832_v14  ;;  %5117 = vlog2.f32 %v1932_v5  ;;  %v1967_v40 = vsel %vm1839_vm0, %v6437_v0, %v1959_v51  ;;  %v1928_v14 = vmul.f32 %v6537_v46, %v1927_v29  ;;  %4552 = vmatprep.mubr.msk.bf16.mxu0 %vm322_vm3, %v6641_v6 }
 0x4f1   :  { %v2011_v0 = vadd.f32 %v2010_v1, %v2004_v61  ;;  %v1945_v46 = vadd.f32 1.0, %v1944_v41  ;;  %v1970_v35 = vsel %vm1842_vm7, %v6446_v17, %v1962_v4  ;;  %v1954_v8 = vadd.f32 1.0, %v1953_v10  ;;  %v6672_v61 = vld [vmem:[%s7892_s2 + $0x38] sm:$0xff]  }
 0x4f2   :  { %v5112_v21 = vpop.eup %5111  ;;  %v1968_v56 = vsel %vm1840_vm1, %v6449_v38, %v1960_v63  ;;  %v1969_v38 = vsel %vm1841_vm5, %v6434_v54, %v1961_v24  ;;  %v1936_v51 = vadd.f32 1.0, %v1935_v53  ;;  %v1956_v5 = vand.u32 2147483647, %v6542_v45 }
 0x4f3   :  { %v2021_v43 = vadd.f32 %v1968_v56, %v1967_v40  ;;  %v1925_v13 = vmul.f32 0.6931472, %v5112_v21  ;;  %v5114_v12 = vpop.eup %5113  ;;  %v2012_v23 = vadd.f32 %v2011_v0, %v2005_v16  ;;  %v1938_v9 = vand.u32 2147483647, %v6594_v34  ;;  %v6681_v16 = vld [vmem:[%s7893_s3] sm:$0xff]  }
 0x4f4   :  { %v5116_v54 = vpop.eup %5115  ;;  %v1943_v39 = vmul.f32 0.6931472, %v5114_v12  ;;  %v1946_v17 = vmul.f32 %v6525_v11, %v1945_v46  ;;  %v1955_v24 = vmul.f32 %v6542_v45, %v1954_v8  ;;  %v1837_v10 = vmax.f32 %v6457_v44, 0.0  ;;  %v6697_v12 = vld [vmem:[%s7893_s3 + $0x8] sm:$0xff]   ;;  %v6705_v46 = vld [vmem:[%s7893_s3 + $0x10] sm:$0xff]  }
 0x4f5   :  { %v2022_v52 = vadd.f32 %v2021_v43, %v1969_v38  ;;  %v1931_v59 = vsel %vm1930_vm10, %v1928_v14, %v1925_v13  ;;  %v2013_v29 = vadd.f32 %v2012_v23, %v2006_v58  ;;  %v1952_v41 = vmul.f32 0.6931472, %v5116_v54  ;;  %v6712_v54 = vld [vmem:[%s7893_s3 + $0x18] sm:$0xff]  }
 0x4f6   :  { %v1963_v25 = vadd.f32 %v1931_v59, %v1835_v15  ;;  %v1949_v63 = vsel %vm6661_vm11, %v1946_v17, %v1943_v39  ;;  %vm1957_vm12 = vcmp.lt.f32.partialorder %v1956_v5, 0.0004427343  ;;  %v1836_v45 = vmax.f32 %v6473_v18, 0.0  ;;  %v6743_v17 = vld [vmem:[%s7893_s3 + $0x38] sm:$0xff]  }
 0x4f7   :  { %v2023_v32 = vadd.f32 %v2022_v52, %v1970_v35  ;;  %4553 = vmatmul.mubr.msk.bf16.gmra.mrb[44].mxu0 %vm322_vm3, %v6672_v61  ;;  %v2014_v11 = vrot.slane %v2013_v29, 4  ;;  %vm1939_vm13 = vcmp.lt.f32.partialorder %v1938_v9, 0.0004427343  ;;  %v1965_v21 = vadd.f32 %v1949_v63, %v1837_v10  ;;  %v6719_v35 = vld [vmem:[%s7893_s3 + $0x20] sm:$0xff]  }
 0x4f8   :  { %v1971_v36 = vsel %vm1843_vm9, %v6461_v20, %v1963_v25  ;;  %v1937_v20 = vmul.f32 %v6594_v34, %v1936_v51  ;;  %4570 = vmatprep.mubr.msk.bf16.mxu0 %vm153_vm2, %v6681_v16  ;;  %v1958_v34 = vsel %vm1957_vm12, %v1955_v24, %v1952_v41  ;;  %v1838_v40 = vmax.f32 %v6464_v31, 0.0 }
 0x4f9   :  { %v2024_v37 = vadd.f32 %v2023_v32, %v1971_v36  ;;  %vm1844_vm14 = vcmp.ne.f32.partialorder %v6473_v18, %v6473_v18  ;;  %v2015_v56 = vadd.f32 %v2014_v11, %v2013_v29  ;;  %vm1845_vm15 = vcmp.ne.f32.partialorder %v6457_v44, %v6457_v44  ;;  %v6726_v32 = vld [vmem:[%s7893_s3 + $0x28] sm:$0xff]   ;;  %v6733_v36 = vld [vmem:[%s7893_s3 + $0x30] sm:$0xff]  }
 0x4fa   :  { %v5118_v22 = vpop.eup %5117  ;;  %v1966_v14 = vadd.f32 %v1958_v34, %v1838_v40  ;;  %v1973_v53 = vsel %vm1845_vm15, %v6457_v44, %v1965_v21  ;;  %vm1846_vm0 = vcmp.ne.f32.partialorder %v6464_v31, %v6464_v31 }
 0x4fb   :  { %v1934_v19 = vmul.f32 0.6931472, %v5118_v22  ;;  %v2016_v38 = vrot.slane %v2015_v56, 2 }
 0x4fd   :  { %v1940_v1 = vsel %vm1939_vm13, %v1937_v20, %v1934_v19  ;;  %v2017_v59 = vadd.f32 %v2016_v38, %v2015_v56 }
 0x4fe   :  { %v1964_v4 = vadd.f32 %v1940_v1, %v1836_v45 }
 0x4ff   :  { %4571 = vmatmul.mubr.msk.bf16.vlgmr.msra.gmra.mrb[48].mxu0 %vm153_vm2, %v6697_v12 }
 0x500   :  { %v1972_v43 = vsel %vm1844_vm14, %v6473_v18, %v1964_v4  ;;  %v1974_v18 = vsel %vm1846_vm0, %v6464_v31, %v1966_v14  ;;  %4574 = vmatprep.mubr.msk.bf16.mxu0 %vm153_vm2, %v6705_v46  ;;  %v2018_v31 = vrot.slane %v2017_v59, 1 }
 0x501   :  { %v2025_v13 = vadd.f32 %v2024_v37, %v1972_v43  ;;  %v6750_v37 = vld [vmem:[%s7892_s2] sm:$0xff]  }
 0x502   :  { %v2019_v8 = vadd.f32 %v2018_v31, %v2017_v59 }
 0x503   :  { %v2026_v0 = vadd.f32 %v2025_v13, %v1973_v53 }
 0x504   :  { %v2020_v51 = vmul.f32 0.33333334, %v2019_v8 }
 0x505   :  { %v2027_v44 = vadd.f32 %v2026_v0, %v1974_v18 }
 0x507   :  { %v2028_v52 = vrot.slane %v2027_v44, 4  ;;  %4575 = vmatmul.mubr.msk.bf16.gmra.mrb[52].mxu0 %vm153_vm2, %v6712_v54 }
 0x508   :  { %4578 = vmatprep.mubr.msk.bf16.mxu0 %vm153_vm2, %v6719_v35 }
 0x509   :  { %v2029_v58 = vadd.f32 %v2028_v52, %v2027_v44 }
 0x50b   :  { %v2030_v23 = vrot.slane %v2029_v58, 2 }
 0x50d   :  { %v2031_v27 = vadd.f32 %v2030_v23, %v2029_v58 }
 0x50f   :  { %v2032_v25 = vrot.slane %v2031_v27, 1  ;;  %4579 = vmatmul.mubr.msk.bf16.gmra.mrb[56].mxu0 %vm153_vm2, %v6726_v32 }
 0x510   :  { %4582 = vmatprep.mubr.msk.bf16.mxu0 %vm153_vm2, %v6733_v36 }
 0x511   :  { %v2033_v39 = vadd.f32 %v2032_v25, %v2031_v27 }
 0x513   :  { %v2034_v29 = vmul.f32 0.25, %v2033_v39 }
 0x515   :  { %v2035_v5 = vadd.f32 %v2034_v29, %v2020_v51 }
 0x517   :  { %v6738_v9 = vadd.f32 %v6400_v2, %v2035_v5  ;;  %4583 = vmatmul.mubr.msk.bf16.gmra.mrb[60].mxu0 %vm153_vm2, %v6743_v17 }
 0x518   :  { %4594 = vmatprep.mubr.msk.bf16.mxu0 %vm322_vm3, %v6750_v37 }
 0x5b2   :  { %v4542_v41 = vpop.f32.mrb[32].mxu0 }
 0x5b3   :  { %5119 = vtanh.f32 %v4542_v41  ;;  %v2218_v2 = vpop.f32.mrb[33].mxu0 }
 0x5b4   :  { %5121 = vtanh.f32 %v2218_v2  ;;  %v4543_v22 = vpop.f32.mrb[34].mxu0 }
 0x5b5   :  { %5123 = vtanh.f32 %v4543_v22  ;;  %v2221_v15 = vpop.f32.mrb[35].mxu0 }
 0x5b6   :  { %5125 = vtanh.f32 %v2221_v15 }
 0x5ba   :  { %v4546_v24 = vpop.f32.mrb[36].mxu0 }
 0x5bb   :  { %v2234_v63 = vpop.f32.mrb[37].mxu0 }
 0x5bc   :  { %5127 = vtanh.f32 %v2234_v63  ;;  %v4547_v19 = vpop.f32.mrb[38].mxu0 }
 0x5bd   :  { %v6754_v20 = vpop.eup %5119  ;;  %5129 = vtanh.f32 %v4546_v24  ;;  %v2237_v11 = vpop.f32.mrb[39].mxu0 }
 0x5be   :  { %v6756_v10 = vpop.eup %5121  ;;  %5131 = vtanh.f32 %v2237_v11 }
 0x5bf   :  { %v6758_v45 = vpop.eup %5123  ;;  %v2441_v34 = vadd.f32 %v6756_v10, %v6754_v20  ;;  %5133 = vtanh.f32 %v4547_v19  ;;  %v6768_v40 = vadd.f32 %v6756_v10, %v6424_v62  ;;  %v6787_v62 = vadd.f32 %v6754_v20, %v6443_v49 }
 0x5c0   :  { %v6762_v1 = vpop.eup %5125  ;;  %v6776_v56 = vadd.f32 %v6758_v45, %v6432_v26 }
 0x5c1   :  { %v2444_v21 = vadd.f32 %v6762_v1, %v6758_v45  ;;  %v6772_v4 = vadd.f32 %v6762_v1, %v6428_v42  ;;  %7985 = vst [vmem:[#allocation8_spill] sm:$0xff] %v6787_v62 }
 0x5c2   :  { %7984 = vst [vmem:[#allocation7_spill] sm:$0xff] %v6776_v56  ;;  %v6778_v14 = vpop.f32.mrb[40].mxu0  ;;  %v2496_v44 = vpack.c.bf16 %v6776_v56, %v6787_v62 }
 0x5c3   :  { %v2315_v43 = vand.u32 2147483647, %v6778_v14  ;;  %v6781_v13 = vpop.f32.mrb[41].mxu0  ;;  %v2495_v53 = vpack.c.bf16 %v6772_v4, %v6768_v40  ;;  %vm2299_vm7 = vcmp.ne.f32.partialorder %v6778_v14, %v6778_v14 }
 0x5c4   :  { %v2313_v42 = vand.u32 2147483647, %v6781_v13  ;;  %v6790_v0 = vpop.f32.mrb[42].mxu0  ;;  %vm2297_vm5 = vcmp.ne.f32.partialorder %v6781_v13, %v6781_v13 }
 0x5c5   :  { %v2323_v38 = vsub.f32 0.0, %v2315_v43  ;;  %v2316_v26 = vand.u32 2147483647, %v6790_v0  ;;  %v6793_v18 = vpop.f32.mrb[43].mxu0  ;;  %4557 = vmatpush3.bf16.msra.mxu1 %v2495_v53  ;;  %4586 = vmatprep.subr.bf16.mxu0 %v2495_v53  ;;  %vm2300_vm10 = vcmp.ne.f32.partialorder %v6790_v0, %v6790_v0 }
 0x5c6   :  { %v5128_v52 = vpop.eup %5127  ;;  %v2321_v59 = vsub.f32 0.0, %v2313_v42  ;;  %v2314_v58 = vand.u32 2147483647, %v6793_v18  ;;  %4587 = vmatpush3.bf16.msra.mxu0 %v2495_v53  ;;  %4558 = vmatprep.subr.bf16.mxu1 %v7939_v30  ;;  %vm2298_vm6 = vcmp.ne.f32.partialorder %v6793_v18, %v6793_v18 }
 0x5c7   :  { %v5130_v49 = vpop.eup %5129  ;;  %v2442_v23 = vadd.f32 %v5128_v52, %v2441_v34  ;;  %v2333_v31 = vmul.f32 1.442695, %v2323_v38  ;;  %v2324_v27 = vsub.f32 0.0, %v2316_v26  ;;  %4588 = vmatprep.subr.bf16.mxu0 %v2496_v44 }
 0x5c8   :  { %v5132_v25 = vpop.eup %5131  ;;  %v2329_v8 = vmul.f32 1.442695, %v2321_v59  ;;  %v2322_v39 = vsub.f32 0.0, %v2314_v58  ;;  %v6820_v59 = vadd.f32 %v5130_v49, %v6485_v60 }
 0x5c9   :  { %v5134_v51 = vpop.eup %5133  ;;  %v2443_v29 = vadd.f32 %v5130_v49, %v2442_v23  ;;  %v2445_v5 = vadd.f32 %v5132_v25, %v2444_v21  ;;  %5135 = vpow2.f32 %v2333_v31  ;;  %v2335_v41 = vmul.f32 1.442695, %v2324_v27  ;;  %4559 = vmatpush3.bf16.msra.mxu1 %v2496_v44 }
 0x5ca   :  { %5137 = vpow2.f32 %v2329_v8  ;;  %v2331_v2 = vmul.f32 1.442695, %v2322_v39  ;;  %v6799_v22 = vpop.f32.mrb[44].mxu0  ;;  %4589 = vmatpush3.bf16.msra.mxu0 %v2496_v44  ;;  %4560 = vmatprep.subr.bf16.mxu1 %v7939_v30  ;;  %v6808_v34 = vadd.f32 %v5134_v51, %v6468_v57  ;;  %v6816_v38 = vadd.f32 %v5132_v25, %v6476_v28  ;;  %7988 = vst [vmem:[#allocation13_spill] sm:$0xff] %v6820_v59 }
 0x5cb   :  { %v2447_v15 = vmul.f32 0.25, %v2443_v29  ;;  %v2446_v24 = vadd.f32 %v5134_v51, %v2445_v5  ;;  %5139 = vpow2.f32 %v2335_v41  ;;  %v6802_v63 = vpop.f32.mrb[45].mxu0  ;;  %v2319_v19 = vand.u32 2147483647, %v6799_v22 }
 0x5cc   :  { %5141 = vpow2.f32 %v2331_v2  ;;  %v6805_v11 = vpop.f32.mrb[46].mxu0  ;;  %7986 = vst [vmem:[#allocation9_spill] sm:$0xff] %v6808_v34  ;;  %v2317_v53 = vand.u32 2147483647, %v6802_v63  ;;  %7987 = vst [vmem:[#allocation10_spill] sm:$0xff] %v6816_v38  ;;  %v6825_v23 = vadd.f32 %v5128_v52, %v6482_v33  ;;  %v2498_v28 = vpack.c.bf16 %v6808_v34, %v6820_v59 }
 0x5cd   :  { %v6810_v21 = vsub.f32 %v5128_v52, %v2447_v15  ;;  %v2448_v43 = vmul.f32 0.25, %v2446_v24  ;;  %v6813_v42 = vpop.f32.mrb[47].mxu0  ;;  %v2327_v26 = vsub.f32 0.0, %v2319_v19  ;;  %v2320_v44 = vand.u32 2147483647, %v6805_v11 }
 0x5ce   :  { %v2325_v57 = vsub.f32 0.0, %v2317_v53  ;;  %7989 = vst [vmem:[#allocation11_spill] sm:$0xff] %v6825_v23  ;;  %v2318_v8 = vand.u32 2147483647, %v6813_v42  ;;  %v2497_v29 = vpack.c.bf16 %v6816_v38, %v6825_v23  ;;  %v6833_v60 = vsub.f32 %v6756_v10, %v2447_v15 }
 0x5cf   :  { %v6822_v58 = vsub.f32 %v5132_v25, %v2448_v43  ;;  %v2341_v31 = vmul.f32 1.442695, %v2327_v26  ;;  %v2328_v27 = vsub.f32 0.0, %v2320_v44  ;;  %v2450_v25 = vsub.f32 %v6762_v1, %v2448_v43 }
 0x5d0   :  { %v2337_v39 = vmul.f32 1.442695, %v2325_v57  ;;  %v2326_v33 = vsub.f32 0.0, %v2318_v8  ;;  %v6837_v52 = vsub.f32 %v6754_v20, %v2447_v15  ;;  %4561 = vmatpush3.bf16.msra.mxu1 %v2497_v29  ;;  %4590 = vmatprep.subr.bf16.mxu0 %v2497_v29  ;;  %v6842_v2 = vsub.f32 %v6758_v45, %v2448_v43 }
 0x5d1   :  { %5143 = vpow2.f32 %v2341_v31  ;;  %v2343_v5 = vmul.f32 1.442695, %v2328_v27  ;;  %v6844_v24 = vsub.f32 %v5130_v49, %v2447_v15  ;;  %v6846_v10 = vsub.f32 %v5134_v51, %v2448_v43  ;;  %4591 = vmatpush3.bf16.msra.mxu0 %v2497_v29  ;;  %4562 = vmatprep.subr.bf16.mxu1 %v7939_v30  ;;  %v6864_v43 = vld [vmem:[%s7894_s4] sm:$0x1] }
 0x5d2   :  { %5145 = vpow2.f32 %v2337_v39  ;;  %4592 = vmatprep.subr.bf16.mxu0 %v2498_v28  ;;  %v2339_v51 = vmul.f32 1.442695, %v2326_v33  ;;  %7990 = vst [vmem:[#allocation12_spill] sm:$0xff] %v6864_v43  ;;  %v2291_v8 = vmax.f32 %v6778_v14, 0.0  ;;  %v2290_v33 = vmax.f32 %v6793_v18, 0.0 }
 0x5d3   :  { %v6839_v41 = vpop.eup %5135  ;;  %5147 = vpow2.f32 %v2343_v5  ;;  %v2457_v34 = vmul.f32 %v6833_v60, %v6833_v60  ;;  %vm2301_vm12 = vcmp.ne.f32.partialorder %v6802_v63, %v6802_v63 }
 0x5d4   :  { %v6848_v19 = vpop.eup %5137  ;;  %v2363_v1 = vadd.f32 1.0, %v6839_v41  ;;  %4563 = vmatpush3.bf16.msra.mxu1 %v2498_v28  ;;  %v2366_v44 = vmul.f32 -0.5, %v6839_v41  ;;  %v2369_v57 = vand.u32 2147483647, %v6839_v41 }
 0x5d5   :  { %v6852_v20 = vpop.eup %5139  ;;  %v2345_v53 = vadd.f32 1.0, %v6848_v19  ;;  %v2348_v49 = vmul.f32 -0.5, %v6848_v19  ;;  %4593 = vmatpush3.bf16.msra.mxu0 %v2498_v28  ;;  %4610 = vmatprep.subr.bf16.mxu1 %v7939_v30  ;;  %v2289_v28 = vmax.f32 %v6781_v13, 0.0 }
 0x5d6   :  { %v6855_v26 = vpop.eup %5141  ;;  %5149 = vlog2.f32 %v2363_v1  ;;  %v2372_v45 = vadd.f32 1.0, %v6852_v20  ;;  %v2375_v29 = vmul.f32 -0.5, %v6852_v20  ;;  %v2367_v39 = vadd.f32 1.0, %v2366_v44 }
 0x5d7   :  { %5151 = vlog2.f32 %v2345_v53  ;;  %v2354_v15 = vadd.f32 1.0, %v6855_v26  ;;  %4565 = vmatmul.mubr.msk.bf16.vlgmr.msra.gmra.mrb[8].mxu1 %vm322_vm3, %v6864_v43  ;;  %v2349_v31 = vadd.f32 1.0, %v2348_v49  ;;  %v2357_v1 = vmul.f32 -0.5, %v6855_v26 }
 0x5d8   :  { %5153 = vlog2.f32 %v2372_v45  ;;  %4595 = vmatmul.mubr.msk.bf16.vlgmr.msra.gmra.mrb[48].mxu0 %vm322_vm3, %v6389_v55  ;;  %4618 = vmatprep.mubr.msk.bf16.mxu1 %vm5383_vm4, %v7939_v30  ;;  %v6886_v55 = vmul.f32 %v6810_v21, %v6810_v21  ;;  %v2351_v49 = vand.u32 2147483647, %v6848_v19  ;;  %vm6896_vm1 = vcmp.lt.f32.partialorder %v2369_v57, 0.0004427343 }
 0x5d9   :  { %5155 = vlog2.f32 %v2354_v15  ;;  %4598 = vmatprep.mubr.msk.bf16.mxu0 %vm322_vm3, %v6533_v50  ;;  %v2458_v15 = vmul.f32 %v2450_v25, %v2450_v25  ;;  %v2350_v21 = vmul.f32 %v6848_v19, %v2349_v31  ;;  %v2378_v59 = vand.u32 2147483647, %v6852_v20 }
 0x5da   :  { %5157 = vpow2.f32 %v2339_v51  ;;  %v2376_v53 = vadd.f32 1.0, %v2375_v29  ;;  %v2358_v25 = vadd.f32 1.0, %v2357_v1  ;;  %v2360_v19 = vand.u32 2147483647, %v6855_v26 }
 0x5db   :  { %v6874_v27 = vpop.eup %5143  ;;  %v2459_v44 = vmul.f32 %v6837_v52, %v6837_v52  ;;  %v2465_v60 = vadd.f32 %v2458_v15, %v2457_v34  ;;  %vm6916_vm8 = vcmp.lt.f32.partialorder %v2351_v49, 0.0004427343  ;;  %vm6920_vm9 = vcmp.lt.f32.partialorder %v2378_v59, 0.0004427343 }
 0x5dc   :  { %v6882_v5 = vpop.eup %5145  ;;  %v2399_v51 = vadd.f32 1.0, %v6874_v27  ;;  %v2377_v52 = vmul.f32 %v6852_v20, %v2376_v53  ;;  %v2359_v49 = vmul.f32 %v6855_v26, %v2358_v25  ;;  %vm2361_vm11 = vcmp.lt.f32.partialorder %v2360_v19, 0.0004427343 }
 0x5dd   :  { %v6891_v45 = vpop.eup %5147  ;;  %v2381_v50 = vadd.f32 1.0, %v6882_v5  ;;  %v2384_v29 = vmul.f32 -0.5, %v6882_v5  ;;  %v2387_v26 = vand.u32 2147483647, %v6882_v5  ;;  %v2463_v25 = vmul.f32 %v6844_v24, %v6844_v24 }
 0x5de   :  { %v2408_v38 = vadd.f32 1.0, %v6891_v45 }
 0x5df   :  { %5159 = vlog2.f32 %v2381_v50  ;;  %vm2388_vm13 = vcmp.lt.f32.partialorder %v2387_v26, 0.0004427343  ;;  %v2295_v26 = vmax.f32 %v6799_v22, 0.0 }
 0x5e0   :  { %v5150_v23 = vpop.eup %5149  ;;  %5161 = vlog2.f32 %v2399_v51  ;;  %4599 = vmatmul.mubr.msk.bf16.gmra.mrb[52].mxu0 %vm322_vm3, %v6576_v3  ;;  %v2460_v51 = vmul.f32 %v6842_v2, %v6842_v2  ;;  %v2402_v2 = vmul.f32 -0.5, %v6874_v27 }
 0x5e1   :  { %v5152_v30 = vpop.eup %5151  ;;  %v2365_v62 = vmul.f32 0.6931472, %v5150_v23  ;;  %v2368_v23 = vmul.f32 %v6839_v41, %v2367_v39  ;;  %5163 = vlog2.f32 %v2408_v38  ;;  %4602 = vmatprep.mubr.msk.bf16.mxu0 %vm322_vm3, %v6588_v47  ;;  %v2466_v41 = vadd.f32 %v2465_v60, %v2459_v44 }
 0x5e2   :  { %v5154_v57 = vpop.eup %5153  ;;  %v2347_v31 = vmul.f32 0.6931472, %v5152_v30  ;;  %v2385_v38 = vadd.f32 1.0, %v2384_v29  ;;  %v2403_v50 = vadd.f32 1.0, %v2402_v2  ;;  %v2294_v2 = vmax.f32 %v6813_v42, 0.0 }
 0x5e3   :  { %v2374_v1 = vmul.f32 0.6931472, %v5154_v57  ;;  %v5156_v30 = vpop.eup %5155  ;;  %v2371_v59 = vsel %vm6896_vm1, %v2368_v23, %v2365_v62  ;;  %v2462_v62 = vmul.f32 %v6822_v58, %v6822_v58  ;;  %v2467_v43 = vadd.f32 %v2466_v41, %v2460_v51 }
 0x5e4   :  { %v2353_v34 = vsel %vm6916_vm8, %v2350_v21, %v2347_v31  ;;  %v6931_v39 = vpop.eup %5157  ;;  %v2356_v3 = vmul.f32 0.6931472, %v5156_v30  ;;  %v2419_v21 = vadd.f32 %v2371_v59, %v2291_v8  ;;  %v7997_v8 = vmax.f32 %v6790_v0, 0.0 }
 0x5e5   :  { %v2417_v20 = vadd.f32 %v2353_v34, %v2289_v28  ;;  %v2390_v47 = vadd.f32 1.0, %v6931_v39  ;;  %v2380_v53 = vsel %vm6920_vm9, %v2377_v52, %v2374_v1  ;;  %v2411_v28 = vmul.f32 -0.5, %v6891_v45 }
 0x5e6   :  { %v2362_v15 = vsel %vm2361_vm11, %v2359_v49, %v2356_v3  ;;  %v2468_v56 = vadd.f32 %v2467_v43, %v6886_v55  ;;  %v2386_v31 = vmul.f32 %v6882_v5, %v2385_v38  ;;  %v2393_v55 = vmul.f32 -0.5, %v6931_v39 }
 0x5e7   :  { %v2418_v44 = vadd.f32 %v2362_v15, %v2290_v33  ;;  %5165 = vlog2.f32 %v2390_v47  ;;  %v2425_v58 = vsel %vm2297_vm5, %v6781_v13, %v2417_v20  ;;  %v2420_v33 = vadd.f32 %v2380_v53, %v7997_v8 }
 0x5e8   :  { %4603 = vmatmul.mubr.msk.bf16.gmra.mrb[56].mxu0 %vm322_vm3, %v6628_v7  ;;  %v2469_v60 = vadd.f32 %v2468_v56, %v2462_v62  ;;  %v2427_v13 = vsel %vm2299_vm7, %v6778_v14, %v2419_v21  ;;  %v2405_v34 = vand.u32 2147483647, %v6874_v27  ;;  %v7998_v52 = vmax.f32 %v6802_v63, 0.0 }
 0x5e9   :  { %v5160_v19 = vpop.eup %5159  ;;  %v2426_v57 = vsel %vm2298_vm6, %v6793_v18, %v2418_v44  ;;  %4606 = vmatprep.mubr.msk.bf16.mxu0 %vm322_vm3, %v6641_v6  ;;  %v2464_v18 = vmul.f32 %v6846_v10, %v6846_v10  ;;  %v2428_v14 = vsel %vm2300_vm10, %v6790_v0, %v2420_v33  ;;  %v2412_v59 = vadd.f32 1.0, %v2411_v28 }
 0x5ea   :  { %v2479_v29 = vadd.f32 %v2426_v57, %v2425_v58  ;;  %v2383_v24 = vmul.f32 0.6931472, %v5160_v19  ;;  %v5162_v23 = vpop.eup %5161  ;;  %v2470_v1 = vadd.f32 %v2469_v60, %v2463_v25  ;;  %v2394_v49 = vadd.f32 1.0, %v2393_v55 }
 0x5eb   :  { %v5164_v30 = vpop.eup %5163  ;;  %v2401_v6 = vmul.f32 0.6931472, %v5162_v23  ;;  %v2414_v20 = vand.u32 2147483647, %v6891_v45  ;;  %v2396_v38 = vand.u32 2147483647, %v6931_v39  ;;  %v2404_v0 = vmul.f32 %v6874_v27, %v2403_v50 }
 0x5ec   :  { %v2480_v5 = vadd.f32 %v2479_v29, %v2427_v13  ;;  %v2389_v7 = vsel %vm2388_vm13, %v2386_v31, %v2383_v24  ;;  %v2471_v10 = vadd.f32 %v2470_v1, %v2464_v18  ;;  %v2410_v53 = vmul.f32 0.6931472, %v5164_v30 }
 0x5ed   :  { %v2421_v41 = vadd.f32 %v2389_v7, %v7998_v52  ;;  %vm2406_vm14 = vcmp.lt.f32.partialorder %v2405_v34, 0.0004427343  ;;  %v2413_v62 = vmul.f32 %v6891_v45, %v2412_v59  ;;  %v2395_v44 = vmul.f32 %v6931_v39, %v2394_v49 }
 0x5ee   :  { %v2481_v3 = vadd.f32 %v2480_v5, %v2428_v14  ;;  %v2407_v43 = vsel %vm2406_vm14, %v2404_v0, %v2401_v6  ;;  %vm2415_vm15 = vcmp.lt.f32.partialorder %v2414_v20, 0.0004427343  ;;  %vm2397_vm0 = vcmp.lt.f32.partialorder %v2396_v38, 0.0004427343 }
 0x5ef   :  { %v2429_v51 = vsel %vm2301_vm12, %v6802_v63, %v2421_v41  ;;  %v2472_v63 = vrot.slane %v2471_v10, 4  ;;  %v2416_v27 = vsel %vm2415_vm15, %v2413_v62, %v2410_v53  ;;  %v2423_v45 = vadd.f32 %v2407_v43, %v2295_v26  ;;  %v7999_v62 = vld [vmem:[#allocation7_spill] sm:$0xff] }
 0x5f0   :  { %v2482_v47 = vadd.f32 %v2481_v3, %v2429_v51  ;;  %4607 = vmatmul.mubr.msk.bf16.gmra.mrb[60].mxu0 %vm322_vm3, %v6672_v61  ;;  %v2296_v25 = vmax.f32 %v6805_v11, 0.0  ;;  %vm2302_vm1 = vcmp.ne.f32.partialorder %v6813_v42, %v6813_v42  ;;  %vm2303_vm5 = vcmp.ne.f32.partialorder %v6799_v22, %v6799_v22 }
 0x5f1   :  { %v5166_v15 = vpop.eup %5165  ;;  %4678 = vmatprep.mubr.msk.bf16.mxu0 %vm153_vm2, %v6681_v16  ;;  %v2473_v61 = vadd.f32 %v2472_v63, %v2471_v10  ;;  %v2431_v8 = vsel %vm2303_vm5, %v6799_v22, %v2423_v45  ;;  %vm2304_vm6 = vcmp.ne.f32.partialorder %v6805_v11, %v6805_v11 }
 0x5f2   :  { %v2392_v21 = vmul.f32 0.6931472, %v5166_v15  ;;  %v2424_v39 = vadd.f32 %v2416_v27, %v2296_v25 }
 0x5f3   :  { %v2474_v57 = vrot.slane %v2473_v61, 2 }
 0x5f4   :  { %v2398_v28 = vsel %vm2397_vm0, %v2395_v44, %v2392_v21  ;;  %v2432_v31 = vsel %vm2304_vm6, %v6805_v11, %v2424_v39  ;;  %v4072_v11 = vld [vmem:[%s7890_s0 + $0x1c] sm:$0x7] }
 0x5f5   :  { %v2422_v56 = vadd.f32 %v2398_v28, %v2294_v2  ;;  %v2475_v55 = vadd.f32 %v2474_v57, %v2473_v61  ;;  %v3459_v14 = vand.u32 %v4072_v11, %v7974_v48  ;;  %v8000_v2 = vld [vmem:[#allocation8_spill] sm:$0xff] }
 0x5f7   :  { %v2430_v19 = vsel %vm2302_vm1, %v6813_v42, %v2422_v56  ;;  %v2476_v13 = vrot.slane %v2475_v55, 1  ;;  %4676 = vmatprep.subr.bf16.mxu0 %v3459_v14  ;;  %v8001_v56 = vmov 0.0  }
 0x5f8   :  { %v2483_v58 = vadd.f32 %v2482_v47, %v2430_v19  ;;  %4677 = vmatpush3.bf16.msra.mxu0 %v3459_v14 }
 0x5f9   :  { %v2477_v18 = vadd.f32 %v2476_v13, %v2475_v55  ;;  %v8002_v13 = vld [vmem:[#allocation9_spill] sm:$0xff] }
 0x5fa   :  { %v2484_v33 = vadd.f32 %v2483_v58, %v2431_v8 }
 0x5fb   :  { %v2478_v7 = vmul.f32 0.33333334, %v2477_v18  ;;  %4679 = vmatmul.mubr.msk.bf16.vlgmr.msra.gmra.mrb[64].mxu0 %vm153_vm2, %v6697_v12 }
 0x5fc   :  { %v2485_v29 = vadd.f32 %v2484_v33, %v2432_v31  ;;  %4682 = vmatprep.mubr.msk.bf16.mxu0 %vm153_vm2, %v6705_v46 }
 0x5fe   :  { %v2486_v24 = vrot.slane %v2485_v29, 4 }
 0x600   :  { %v2487_v60 = vadd.f32 %v2486_v24, %v2485_v29 }
 0x602   :  { %v2488_v23 = vrot.slane %v2487_v60, 2 }
 0x603   :  { %4683 = vmatmul.mubr.msk.bf16.gmra.mrb[68].mxu0 %vm153_vm2, %v6712_v54 }
 0x604   :  { %v2489_v42 = vadd.f32 %v2488_v23, %v2487_v60  ;;  %4686 = vmatprep.mubr.msk.bf16.mxu0 %vm153_vm2, %v6719_v35 }
 0x606   :  { %v2490_v5 = vrot.slane %v2489_v42, 1 }
 0x608   :  { %v2491_v50 = vadd.f32 %v2490_v5, %v2489_v42 }
 0x60a   :  { %v2492_v1 = vmul.f32 0.25, %v2491_v50 }
 0x60b   :  { %4687 = vmatmul.mubr.msk.bf16.gmra.mrb[72].mxu0 %vm153_vm2, %v6726_v32 }
 0x60c   :  { %v2493_v22 = vadd.f32 %v2492_v1, %v2478_v7  ;;  %4690 = vmatprep.mubr.msk.bf16.mxu0 %vm153_vm2, %v6733_v36  ;;  %v8003_v7 = vld [vmem:[#allocation10_spill] sm:$0xff] }
 0x60e   :  { %v7008_v30 = vadd.f32 %v6738_v9, %v2493_v22  ;;  %v4054_v22 = vld [vmem:[%s7890_s0 + $0x18] sm:$0x7] }
 0x613   :  { %4691 = vmatmul.mubr.msk.bf16.gmra.mrb[76].mxu0 %vm153_vm2, %v6743_v17 }
 0x614   :  { %4702 = vmatprep.mubr.msk.bf16.mxu0 %vm322_vm3, %v6750_v37 }
 0x6ab   :  { %v4596_v9 = vpop.f32.mrb[48].mxu0 }
 0x6ac   :  { %5167 = vtanh.f32 %v4596_v9  ;;  %v2676_v34 = vpop.f32.mrb[49].mxu0 }
 0x6ad   :  { %5169 = vtanh.f32 %v2676_v34  ;;  %v4597_v52 = vpop.f32.mrb[50].mxu0 }
 0x6ae   :  { %5171 = vtanh.f32 %v4597_v52  ;;  %v2679_v41 = vpop.f32.mrb[51].mxu0 }
 0x6af   :  { %5173 = vtanh.f32 %v2679_v41  ;;  %v8004_v41 = vld [vmem:[#allocation11_spill] sm:$0xff] }
 0x6b3   :  { %v4600_v59 = vpop.f32.mrb[52].mxu0 }
 0x6b4   :  { %5175 = vtanh.f32 %v4600_v59  ;;  %v2692_v32 = vpop.f32.mrb[53].mxu0 }
 0x6b5   :  { %5177 = vtanh.f32 %v2692_v32  ;;  %v4601_v6 = vpop.f32.mrb[54].mxu0  ;;  %v8005_v32 = vld [vmem:[#allocation13_spill] sm:$0xff] }
 0x6b6   :  { %v7030_v36 = vpop.eup %5167  ;;  %5179 = vtanh.f32 %v4601_v6  ;;  %v2695_v3 = vpop.f32.mrb[55].mxu0 }
 0x6b7   :  { %v7032_v49 = vpop.eup %5169  ;;  %5181 = vtanh.f32 %v2695_v3  ;;  %v7072_v27 = vadd.f32 %v7030_v36, %v8000_v2 }
 0x6b8   :  { %v7034_v10 = vpop.eup %5171  ;;  %v2899_v17 = vadd.f32 %v7032_v49, %v7030_v36  ;;  %v7044_v20 = vadd.f32 %v7032_v49, %v6768_v40 }
 0x6b9   :  { %v7038_v51 = vpop.eup %5173  ;;  %v7061_v43 = vadd.f32 %v7034_v10, %v7999_v62 }
 0x6ba   :  { %v2902_v37 = vadd.f32 %v7038_v51, %v7034_v10  ;;  %v7048_v38 = vadd.f32 %v7038_v51, %v6772_v4 }
 0x6bb   :  { %v7050_v0 = vpop.f32.mrb[56].mxu0  ;;  %v7078_v8 = vpack.c.bf16 %v7061_v43, %v7072_v27 }
 0x6bc   :  { %v2773_v47 = vand.u32 2147483647, %v7050_v0  ;;  %v7053_v53 = vpop.f32.mrb[57].mxu0  ;;  %v7057_v15 = vpack.c.bf16 %v7048_v38, %v7044_v20  ;;  %vm2757_vm13 = vcmp.ne.f32.partialorder %v7050_v0, %v7050_v0 }
 0x6bd   :  { %v2771_v40 = vand.u32 2147483647, %v7053_v53  ;;  %v7064_v21 = vpop.f32.mrb[58].mxu0  ;;  %vm2755_vm10 = vcmp.ne.f32.partialorder %v7053_v53, %v7053_v53 }
 0x6be   :  { %v5176_v4 = vpop.eup %5175  ;;  %v2781_v44 = vsub.f32 0.0, %v2773_v47  ;;  %v2774_v63 = vand.u32 2147483647, %v7064_v21  ;;  %v7067_v26 = vpop.f32.mrb[59].mxu0  ;;  %4611 = vmatpush3.bf16.msra.mxu1 %v7057_v15  ;;  %vm2758_vm14 = vcmp.ne.f32.partialorder %v7064_v21, %v7064_v21 }
 0x6bf   :  { %v5178_v28 = vpop.eup %5177  ;;  %v2779_v45 = vsub.f32 0.0, %v2771_v40  ;;  %v2772_v25 = vand.u32 2147483647, %v7067_v26  ;;  %4612 = vmatprep.subr.bf16.mxu1 %v8001_v56  ;;  %v7107_v6 = vadd.f32 %v5176_v4, %v8005_v32  ;;  %vm2756_vm11 = vcmp.ne.f32.partialorder %v7067_v26, %v7067_v26 }
 0x6c0   :  { %v5180_v61 = vpop.eup %5179  ;;  %v2900_v39 = vadd.f32 %v5178_v28, %v2899_v17  ;;  %v2791_v19 = vmul.f32 1.442695, %v2781_v44  ;;  %v2782_v58 = vsub.f32 0.0, %v2774_v63  ;;  %v7104_v59 = vadd.f32 %v5178_v28, %v8004_v41 }
 0x6c1   :  { %v5182_v33 = vpop.eup %5181  ;;  %v2787_v57 = vmul.f32 1.442695, %v2779_v45  ;;  %v2780_v31 = vsub.f32 0.0, %v2772_v25  ;;  %v7085_v42 = vadd.f32 %v5180_v61, %v8002_v13 }
 0x6c2   :  { %v2901_v29 = vadd.f32 %v5176_v4, %v2900_v39  ;;  %v2903_v24 = vadd.f32 %v5182_v33, %v2902_v37  ;;  %5183 = vpow2.f32 %v2791_v19  ;;  %v2793_v55 = vmul.f32 1.442695, %v2782_v58  ;;  %4613 = vmatpush3.bf16.msra.mxu1 %v7078_v8 }
 0x6c3   :  { %5185 = vpow2.f32 %v2787_v57  ;;  %v2789_v60 = vmul.f32 1.442695, %v2780_v31  ;;  %v7081_v23 = vpop.f32.mrb[60].mxu0  ;;  %4614 = vmatprep.subr.bf16.mxu1 %v8001_v56  ;;  %v7090_v1 = vadd.f32 %v5182_v33, %v8003_v7  ;;  %v3001_v37 = vand.u32 %v4054_v22, %v7974_v48  ;;  %v8006_v7 = vld [vmem:[#allocation12_spill] sm:$0xff] }
 0x6c4   :  { %v2905_v18 = vmul.f32 0.25, %v2901_v29  ;;  %v2904_v5 = vadd.f32 %v5180_v61, %v2903_v24  ;;  %5187 = vpow2.f32 %v2793_v55  ;;  %v7087_v50 = vpop.f32.mrb[61].mxu0  ;;  %v2777_v11 = vand.u32 2147483647, %v7081_v23 }
 0x6c5   :  { %5189 = vpow2.f32 %v2789_v60  ;;  %v7096_v14 = vpop.f32.mrb[62].mxu0  ;;  %v2775_v34 = vand.u32 2147483647, %v7087_v50  ;;  %v7114_v40 = vpack.c.bf16 %v7090_v1, %v7104_v59  ;;  %v7118_v44 = vpack.c.bf16 %v7085_v42, %v7107_v6 }
 0x6c6   :  { %v7098_v9 = vsub.f32 %v5178_v28, %v2905_v18  ;;  %v7101_v52 = vpop.f32.mrb[63].mxu0  ;;  %v2785_v3 = vsub.f32 0.0, %v2777_v11  ;;  %v2778_v17 = vand.u32 2147483647, %v7096_v14  ;;  %v2906_v28 = vmul.f32 0.25, %v2904_v5 }
 0x6c7   :  { %v2783_v47 = vsub.f32 0.0, %v2775_v34  ;;  %v2776_v62 = vand.u32 2147483647, %v7101_v52  ;;  %v7121_v45 = vsub.f32 %v7032_v49, %v2905_v18  ;;  %4615 = vmatpush3.bf16.msra.mxu1 %v7114_v40  ;;  %v7125_v48 = vsub.f32 %v7030_v36, %v2905_v18 }
 0x6c8   :  { %v2799_v63 = vmul.f32 1.442695, %v2785_v3  ;;  %v2786_v2 = vsub.f32 0.0, %v2778_v17  ;;  %v7127_v19 = vsub.f32 %v5176_v4, %v2905_v18  ;;  %4616 = vmatprep.subr.bf16.mxu1 %v8001_v56  ;;  %v7131_v57 = vsub.f32 %v7038_v51, %v2906_v28 }
 0x6c9   :  { %v2795_v25 = vmul.f32 1.442695, %v2783_v47  ;;  %v2784_v39 = vsub.f32 0.0, %v2776_v62  ;;  %v7134_v31 = vsub.f32 %v7034_v10, %v2906_v28  ;;  %v7136_v24 = vsub.f32 %v5182_v33, %v2906_v28 }
 0x6ca   :  { %5191 = vpow2.f32 %v2799_v63  ;;  %v2801_v58 = vmul.f32 1.442695, %v2786_v2  ;;  %v7138_v55 = vsub.f32 %v5180_v61, %v2906_v28  ;;  %v2749_v22 = vmax.f32 %v7050_v0, 0.0 }
 0x6cb   :  { %5193 = vpow2.f32 %v2795_v25  ;;  %v2797_v29 = vmul.f32 1.442695, %v2784_v39  ;;  %4617 = vmatpush3.bf16.msra.mxu1 %v7118_v44  ;;  %v2747_v3 = vmax.f32 %v7053_v53, 0.0  ;;  %v2750_v17 = vmax.f32 %v7064_v21, 0.0 }
 0x6cc   :  { %v5184_v49 = vpop.eup %5183  ;;  %5195 = vpow2.f32 %v2801_v58  ;;  %4622 = vmatprep.subr.bf16.mxu1 %v3001_v37  ;;  %vm2759_vm15 = vcmp.ne.f32.partialorder %v7087_v50, %v7087_v50 }
 0x6cd   :  { %v5186_v36 = vpop.eup %5185  ;;  %v2821_v4 = vadd.f32 1.0, %v5184_v49  ;;  %5197 = vpow2.f32 %v2797_v29  ;;  %v2824_v10 = vmul.f32 -0.5, %v5184_v49  ;;  %v2827_v11 = vand.u32 2147483647, %v5184_v49 }
 0x6ce   :  { %v5188_v60 = vpop.eup %5187  ;;  %v2803_v13 = vadd.f32 1.0, %v5186_v36  ;;  %v2806_v18 = vmul.f32 -0.5, %v5186_v36  ;;  %4619 = vmatmul.mubr.msk.bf16.vlgmr.msra.gmra.mrb[8].mxu1 %vm322_vm3, %v8006_v7  ;;  %v2809_v32 = vand.u32 2147483647, %v5186_v36 }
 0x6cf   :  { %v7141_v51 = vpop.eup %5189  ;;  %5199 = vlog2.f32 %v2821_v4  ;;  %v2830_v5 = vadd.f32 1.0, %v5188_v60  ;;  %v2833_v33 = vmul.f32 -0.5, %v5188_v60  ;;  %4623 = vmatpush3.bf16.msra.mxu1 %v3001_v37  ;;  %4624 = vmatprep.mubr.msk.bf16.mxu1 %vm153_vm2, %v6681_v16  ;;  %v2825_v34 = vadd.f32 1.0, %v2824_v10 }
 0x6d0   :  { %5201 = vlog2.f32 %v2803_v13  ;;  %v2812_v61 = vadd.f32 1.0, %v7141_v51  ;;  %v2807_v41 = vadd.f32 1.0, %v2806_v18  ;;  %4640 = vmatprep.subr.bf16.mxu1 %v7057_v15  ;;  %v2836_v47 = vand.u32 2147483647, %v5188_v60 }
 0x6d1   :  { %5203 = vlog2.f32 %v2830_v5  ;;  %v2815_v62 = vmul.f32 -0.5, %v7141_v51  ;;  %v2834_v2 = vadd.f32 1.0, %v2833_v33  ;;  %v2748_v37 = vmax.f32 %v7067_v26, 0.0 }
 0x6d2   :  { %5205 = vlog2.f32 %v2812_v61  ;;  %vm7160_vm7 = vcmp.lt.f32.partialorder %v2827_v11, 0.0004427343  ;;  %v2818_v58 = vand.u32 2147483647, %v7141_v51  ;;  %v2826_v10 = vmul.f32 %v5184_v49, %v2825_v34 }
 0x6d3   :  { %v2808_v18 = vmul.f32 %v5186_v36, %v2807_v41  ;;  %vm7169_vm8 = vcmp.lt.f32.partialorder %v2809_v32, 0.0004427343  ;;  %vm7176_vm9 = vcmp.lt.f32.partialorder %v2836_v47, 0.0004427343  ;;  %v2816_v11 = vadd.f32 1.0, %v2815_v62 }
 0x6d4   :  { %v7153_v63 = vpop.eup %5191  ;;  %v2835_v28 = vmul.f32 %v5188_v60, %v2834_v2  ;;  %v2915_v49 = vmul.f32 %v7121_v45, %v7121_v45  ;;  %v2916_v36 = vmul.f32 %v7131_v57, %v7131_v57  ;;  %vm7191_vm12 = vcmp.lt.f32.partialorder %v2818_v58, 0.0004427343 }
 0x6d5   :  { %v7158_v25 = vpop.eup %5193  ;;  %v2857_v29 = vadd.f32 1.0, %v7153_v63  ;;  %v2917_v47 = vmul.f32 %v7125_v48, %v7125_v48  ;;  %v2918_v62 = vmul.f32 %v7134_v31, %v7134_v31  ;;  %v2863_v48 = vand.u32 2147483647, %v7153_v63 }
 0x6d6   :  { %v7167_v13 = vpop.eup %5195  ;;  %v2839_v33 = vadd.f32 1.0, %v7158_v25  ;;  %4625 = vmatmul.mubr.msk.bf16.vlgmr.msra.gmra.mrb[44].mxu1 %vm153_vm2, %v6697_v12  ;;  %v2842_v12 = vmul.f32 -0.5, %v7158_v25  ;;  %v2921_v5 = vmul.f32 %v7127_v19, %v7127_v19  ;;  %v2923_v39 = vadd.f32 %v2916_v36, %v2915_v49 }
 0x6d7   :  { %v7174_v61 = vpop.eup %5197  ;;  %5207 = vlog2.f32 %v2857_v29  ;;  %v2866_v4 = vadd.f32 1.0, %v7167_v13  ;;  %4641 = vmatpush3.bf16.msra.mxu1 %v7057_v15  ;;  %4628 = vmatprep.mubr.msk.bf16.mxu1 %vm153_vm2, %v6705_v46  ;;  %v2817_v15 = vmul.f32 %v7141_v51, %v2816_v11  ;;  %v2860_v46 = vmul.f32 -0.5, %v7153_v63 }
 0x6d8   :  { %5209 = vlog2.f32 %v2839_v33  ;;  %v2848_v32 = vadd.f32 1.0, %v7174_v61  ;;  %4642 = vmatprep.subr.bf16.mxu1 %v7078_v8  ;;  %v2843_v33 = vadd.f32 1.0, %v2842_v12  ;;  %v2869_v11 = vmul.f32 -0.5, %v7167_v13 }
 0x6d9   :  { %v5200_v16 = vpop.eup %5199  ;;  %5211 = vlog2.f32 %v2866_v4  ;;  %v2845_v4 = vand.u32 2147483647, %v7158_v25  ;;  %v2861_v49 = vadd.f32 1.0, %v2860_v46  ;;  %vm7241_vm0 = vcmp.lt.f32.partialorder %v2863_v48, 0.0004427343 }
 0x6da   :  { %v5202_v34 = vpop.eup %5201  ;;  %v2823_v41 = vmul.f32 0.6931472, %v5200_v16  ;;  %v2919_v16 = vmul.f32 %v7098_v9, %v7098_v9  ;;  %5213 = vlog2.f32 %v2848_v32 }
 0x6db   :  { %v5204_v45 = vpop.eup %5203  ;;  %v2805_v57 = vmul.f32 0.6931472, %v5202_v34  ;;  %4643 = vmatpush3.bf16.msra.mxu1 %v7078_v8  ;;  %v2851_v8 = vmul.f32 -0.5, %v7174_v61  ;;  %vm7246_vm1 = vcmp.lt.f32.partialorder %v2845_v4, 0.0004427343 }
 0x6dc   :  { %v2832_v2 = vmul.f32 0.6931472, %v5204_v45  ;;  %v5206_v58 = vpop.eup %5205  ;;  %v2829_v31 = vsel %vm7160_vm7, %v2826_v10, %v2823_v41  ;;  %4644 = vmatprep.subr.bf16.mxu1 %v7114_v40  ;;  %v2844_v41 = vmul.f32 %v7158_v25, %v2843_v33  ;;  %vm2760_vm7 = vcmp.ne.f32.partialorder %v7101_v52, %v7101_v52 }
 0x6dd   :  { %v2811_v29 = vsel %vm7169_vm8, %v2808_v18, %v2805_v57  ;;  %v2814_v51 = vmul.f32 0.6931472, %v5206_v58  ;;  %v2920_v18 = vmul.f32 %v7136_v24, %v7136_v24  ;;  %v2877_v24 = vadd.f32 %v2829_v31, %v2749_v22 }
 0x6de   :  { %v2875_v9 = vadd.f32 %v2811_v29, %v2747_v3  ;;  %v2838_v10 = vsel %vm7176_vm9, %v2835_v28, %v2832_v2  ;;  %v2922_v3 = vmul.f32 %v7138_v55, %v7138_v55  ;;  %4629 = vmatmul.mubr.msk.bf16.gmra.mrb[48].mxu1 %vm153_vm2, %v6712_v54  ;;  %v2924_v28 = vadd.f32 %v2923_v39, %v2917_v47  ;;  %v5346_v55 = vld [vmem:[%s7893_s3 + $0x38] sm:$0xff]  }
 0x6df   :  { %v2820_v34 = vsel %vm7191_vm12, %v2817_v15, %v2814_v51  ;;  %v2870_v22 = vadd.f32 1.0, %v2869_v11  ;;  %4645 = vmatpush3.bf16.msra.mxu1 %v7114_v40  ;;  %4632 = vmatprep.mubr.msk.bf16.mxu1 %vm153_vm2, %v6719_v35  ;;  %v2878_v60 = vadd.f32 %v2838_v10, %v2750_v17  ;;  %v2852_v32 = vadd.f32 1.0, %v2851_v8 }
 0x6e0   :  { %v2876_v19 = vadd.f32 %v2820_v34, %v2748_v37  ;;  %v2883_v54 = vsel %vm2755_vm10, %v7053_v53, %v2875_v9  ;;  %4646 = vmatprep.subr.bf16.mxu1 %v7118_v44  ;;  %v2925_v40 = vadd.f32 %v2924_v28, %v2918_v62  ;;  %v2885_v53 = vsel %vm2757_vm13, %v7050_v0, %v2877_v24 }
 0x6e1   :  { %v5208_v7 = vpop.eup %5207  ;;  %v2872_v17 = vand.u32 2147483647, %v7167_v13  ;;  %v2854_v47 = vand.u32 2147483647, %v7174_v61  ;;  %v2886_v0 = vsel %vm2758_vm14, %v7064_v21, %v2878_v60  ;;  %v8019_v29 = vmax.f32 %v7087_v50, 0.0 }
 0x6e2   :  { %v5210_v37 = vpop.eup %5209  ;;  %v2884_v25 = vsel %vm2756_vm11, %v7067_v26, %v2876_v19  ;;  %v2859_v35 = vmul.f32 0.6931472, %v5208_v7  ;;  %v2926_v2 = vadd.f32 %v2925_v40, %v2919_v16  ;;  %v2862_v26 = vmul.f32 %v7153_v63, %v2861_v49 }
 0x6e3   :  { %v5212_v12 = vpop.eup %5211  ;;  %v2937_v45 = vadd.f32 %v2884_v25, %v2883_v54  ;;  %v2841_v57 = vmul.f32 0.6931472, %v5210_v37  ;;  %4647 = vmatpush3.bf16.msra.mxu1 %v7118_v44  ;;  %v2871_v16 = vmul.f32 %v7167_v13, %v2870_v22  ;;  %v2853_v44 = vmul.f32 %v7174_v61, %v2852_v32  ;;  %v5344_v13 = vld [vmem:[%s7893_s3 + $0x28] sm:$0xff]   ;;  %v5345_v61 = vld [vmem:[%s7893_s3 + $0x30] sm:$0xff]   ;;  %v5347_v37 = vld [vmem:[%s7892_s2] sm:$0xff]  }
 0x6e4   :  { %v2868_v46 = vmul.f32 0.6931472, %v5212_v12  ;;  %v5214_v58 = vpop.eup %5213  ;;  %4664 = vmatprep.subr.bf16.mxu1 %v8001_v56  ;;  %v2927_v63 = vadd.f32 %v2926_v2, %v2920_v18  ;;  %v2865_v4 = vsel %vm7241_vm0, %v2862_v26, %v2859_v35  ;;  %vm2873_vm5 = vcmp.lt.f32.partialorder %v2872_v17, 0.0004427343  ;;  %v7329_v12 = vld [vmem:[%s7892_s2 + $0x10] sm:$0xff]   ;;  %v7343_v2 = vld [vmem:[%s7892_s2 + $0x20] sm:$0xff]  }
 0x6e5   :  { %v2938_v15 = vadd.f32 %v2937_v45, %v2885_v53  ;;  %v2847_v62 = vsel %vm7246_vm1, %v2844_v41, %v2841_v57  ;;  %v2850_v51 = vmul.f32 0.6931472, %v5214_v58  ;;  %vm2855_vm6 = vcmp.lt.f32.partialorder %v2854_v47, 0.0004427343  ;;  %v7336_v47 = vld [vmem:[%s7892_s2 + $0x18] sm:$0xff]  }
 0x6e6   :  { %v2879_v48 = vadd.f32 %v2847_v62, %v8019_v29  ;;  %4633 = vmatmul.mubr.msk.bf16.gmra.mrb[52].mxu1 %vm153_vm2, %v5344_v13  ;;  %v2928_v33 = vadd.f32 %v2927_v63, %v2921_v5  ;;  %v2874_v9 = vsel %vm2873_vm5, %v2871_v16, %v2868_v46  ;;  %v2754_v10 = vmax.f32 %v7096_v14, 0.0  ;;  %v7353_v62 = vld [vmem:[%s7892_s2 + $0x28] sm:$0xff]   ;;  %v7360_v46 = vld [vmem:[%s7892_s2 + $0x30] sm:$0xff]  }
 0x6e7   :  { %v2939_v31 = vadd.f32 %v2938_v15, %v2886_v0  ;;  %v2856_v18 = vsel %vm2855_vm6, %v2853_v44, %v2850_v51  ;;  %4636 = vmatprep.mubr.msk.bf16.mxu1 %vm153_vm2, %v5345_v61  ;;  %v8021_v34 = vmax.f32 %v7101_v52, 0.0  ;;  %vm2761_vm8 = vcmp.ne.f32.partialorder %v7081_v23, %v7081_v23 }
 0x6e8   :  { %v2887_v21 = vsel %vm2759_vm15, %v7087_v50, %v2879_v48  ;;  %v8020_v50 = vmax.f32 %v7081_v23, 0.0  ;;  %v2929_v24 = vadd.f32 %v2928_v33, %v2922_v3  ;;  %v2882_v5 = vadd.f32 %v2874_v9, %v2754_v10 }
 0x6e9   :  { %v2940_v11 = vadd.f32 %v2939_v31, %v2887_v21  ;;  %v2880_v8 = vadd.f32 %v2856_v18, %v8021_v34  ;;  %vm2762_vm9 = vcmp.ne.f32.partialorder %v7096_v14, %v7096_v14 }
 0x6ea   :  { %v2881_v39 = vadd.f32 %v2865_v4, %v8020_v50  ;;  %v2930_v49 = vrot.slane %v2929_v24, 4  ;;  %v2890_v3 = vsel %vm2762_vm9, %v7096_v14, %v2882_v5  ;;  %v7322_v14 = vld [vmem:[%s7892_s2 + $0x8] sm:$0xff]  }
 0x6eb   :  { %v2888_v19 = vsel %vm2760_vm7, %v7101_v52, %v2880_v8 }
 0x6ec   :  { %v2941_v28 = vadd.f32 %v2940_v11, %v2888_v19  ;;  %v2889_v7 = vsel %vm2761_vm8, %v7081_v23, %v2881_v39  ;;  %v2931_v36 = vadd.f32 %v2930_v49, %v2929_v24 }
 0x6ee   :  { %v2942_v41 = vadd.f32 %v2941_v28, %v2889_v7  ;;  %4637 = vmatmul.mubr.msk.bf16.gmra.mrb[56].mxu1 %vm153_vm2, %v5346_v55  ;;  %v2932_v52 = vrot.slane %v2931_v36, 2 }
 0x6ef   :  { %4648 = vmatprep.mubr.msk.bf16.mxu1 %vm322_vm3, %v5347_v37 }
 0x6f0   :  { %v2943_v22 = vadd.f32 %v2942_v41, %v2890_v3  ;;  %v2933_v54 = vadd.f32 %v2932_v52, %v2931_v36 }
 0x6f2   :  { %v2944_v23 = vrot.slane %v2943_v22, 4  ;;  %v2934_v40 = vrot.slane %v2933_v54, 1 }
 0x6f4   :  { %v2945_v60 = vadd.f32 %v2944_v23, %v2943_v22  ;;  %v2935_v35 = vadd.f32 %v2934_v40, %v2933_v54 }
 0x6f6   :  { %v2946_v25 = vrot.slane %v2945_v60, 2  ;;  %4649 = vmatmul.mubr.msk.bf16.vlgmr.msra.gmra.mrb[44].mxu1 %vm322_vm3, %v7322_v14  ;;  %v2936_v53 = vmul.f32 0.33333334, %v2935_v35 }
 0x6f7   :  { %4652 = vmatprep.mubr.msk.bf16.mxu1 %vm322_vm3, %v7329_v12 }
 0x6f8   :  { %v2947_v45 = vadd.f32 %v2946_v25, %v2945_v60 }
 0x6fa   :  { %v2948_v57 = vrot.slane %v2947_v45, 1 }
 0x6fc   :  { %v2949_v32 = vadd.f32 %v2948_v57, %v2947_v45 }
 0x6fe   :  { %v2950_v17 = vmul.f32 0.25, %v2949_v32  ;;  %4653 = vmatmul.mubr.msk.bf16.gmra.mrb[48].mxu1 %vm322_vm3, %v7336_v47 }
 0x6ff   :  { %4656 = vmatprep.mubr.msk.bf16.mxu1 %vm322_vm3, %v7343_v2 }
 0x700   :  { %v2951_v15 = vadd.f32 %v2950_v17, %v2936_v53 }
 0x702   :  { %v7348_v26 = vadd.f32 %v7008_v30, %v2951_v15  ;;  %v7367_v30 = vld [vmem:[%s7892_s2 + $0x38] sm:$0xff]  }
 0x706   :  { %4657 = vmatmul.mubr.msk.bf16.gmra.mrb[52].mxu1 %vm322_vm3, %v7353_v62 }
 0x707   :  { %4660 = vmatprep.mubr.msk.bf16.mxu1 %vm322_vm3, %v7360_v46 }
 0x70e   :  { %4661 = vmatmul.mubr.msk.bf16.gmra.mrb[56].mxu1 %vm322_vm3, %v7367_v30 }
 0x70f   :  { %4672 = vmatprep.mubr.msk.bf16.mxu1 %vm5383_vm4, %v8001_v56 }
 0x7c9   :  { %v4650_v58 = vpop.f32.mrb[44].mxu1 }
 0x7ca   :  { %5215 = vtanh.f32 %v4650_v58  ;;  %v3134_v0 = vpop.f32.mrb[45].mxu1 }
 0x7cb   :  { %5217 = vtanh.f32 %v3134_v0  ;;  %v4651_v29 = vpop.f32.mrb[46].mxu1 }
 0x7cc   :  { %5219 = vtanh.f32 %v4651_v29  ;;  %v3137_v48 = vpop.f32.mrb[47].mxu1 }
 0x7cd   :  { %5221 = vtanh.f32 %v3137_v48 }
 0x7d1   :  { %v4654_v16 = vpop.f32.mrb[48].mxu1 }
 0x7d2   :  { %v3150_v63 = vpop.f32.mrb[49].mxu1 }
 0x7d3   :  { %5223 = vtanh.f32 %v3150_v63  ;;  %v4655_v4 = vpop.f32.mrb[50].mxu1 }
 0x7d4   :  { %v7373_v31 = vpop.eup %5215  ;;  %5225 = vtanh.f32 %v4654_v16  ;;  %v3153_v51 = vpop.f32.mrb[51].mxu1 }
 0x7d5   :  { %v7375_v44 = vpop.eup %5217  ;;  %5227 = vtanh.f32 %v3153_v51 }
 0x7d6   :  { %v7377_v21 = vpop.eup %5219  ;;  %v3357_v13 = vadd.f32 %v7375_v44, %v7373_v31  ;;  %5229 = vtanh.f32 %v4655_v4  ;;  %v7387_v9 = vadd.f32 %v7375_v44, %v7044_v20  ;;  %v7406_v20 = vadd.f32 %v7373_v31, %v7072_v27 }
 0x7d7   :  { %v7381_v33 = vpop.eup %5221  ;;  %v7395_v61 = vadd.f32 %v7377_v21, %v7061_v43 }
 0x7d8   :  { %v3360_v11 = vadd.f32 %v7381_v33, %v7377_v21  ;;  %v7391_v18 = vadd.f32 %v7381_v33, %v7048_v38 }
 0x7d9   :  { %v7397_v50 = vpop.f32.mrb[52].mxu1  ;;  %v3412_v19 = vpack.c.bf16 %v7395_v61, %v7406_v20 }
 0x7da   :  { %v3231_v39 = vand.u32 2147483647, %v7397_v50  ;;  %v7400_v10 = vpop.f32.mrb[53].mxu1  ;;  %v3411_v34 = vpack.c.bf16 %v7391_v18, %v7387_v9  ;;  %vm3215_vm14 = vcmp.ne.f32.partialorder %v7397_v50, %v7397_v50 }
 0x7db   :  { %v3229_v38 = vand.u32 2147483647, %v7400_v10  ;;  %v7409_v8 = vpop.f32.mrb[54].mxu1  ;;  %vm3213_vm12 = vcmp.ne.f32.partialorder %v7400_v10, %v7400_v10 }
 0x7dc   :  { %v3239_v24 = vsub.f32 0.0, %v3231_v39  ;;  %v3232_v43 = vand.u32 2147483647, %v7409_v8  ;;  %v7412_v5 = vpop.f32.mrb[55].mxu1  ;;  %4665 = vmatpush3.bf16.msra.mxu1 %v3411_v34  ;;  %4694 = vmatprep.subr.bf16.mxu0 %v3411_v34  ;;  %vm3216_vm15 = vcmp.ne.f32.partialorder %v7409_v8, %v7409_v8 }
 0x7dd   :  { %v7416_v49 = vpop.eup %5223  ;;  %v3237_v28 = vsub.f32 0.0, %v3229_v38  ;;  %v3230_v27 = vand.u32 2147483647, %v7412_v5  ;;  %4695 = vmatpush3.bf16.msra.mxu0 %v3411_v34  ;;  %4666 = vmatprep.subr.bf16.mxu1 %v8001_v56  ;;  %vm3214_vm13 = vcmp.ne.f32.partialorder %v7412_v5, %v7412_v5 }
 0x7de   :  { %v7420_v7 = vpop.eup %5225  ;;  %v3358_v36 = vadd.f32 %v7416_v49, %v3357_v13  ;;  %v3249_v41 = vmul.f32 1.442695, %v3239_v24  ;;  %v3240_v3 = vsub.f32 0.0, %v3232_v43  ;;  %4696 = vmatprep.subr.bf16.mxu0 %v3412_v19  ;;  %v7443_v0 = vadd.f32 %v7416_v49, %v7104_v59 }
 0x7df   :  { %v5228_v55 = vpop.eup %5227  ;;  %v3245_v52 = vmul.f32 1.442695, %v3237_v28  ;;  %v3238_v22 = vsub.f32 0.0, %v3230_v27  ;;  %v7452_v16 = vadd.f32 %v7420_v7, %v7107_v6 }
 0x7e0   :  { %v3359_v37 = vadd.f32 %v7420_v7, %v3358_v36  ;;  %v3361_v23 = vadd.f32 %v5228_v55, %v3360_v11  ;;  %5231 = vpow2.f32 %v3249_v41  ;;  %v3251_v54 = vmul.f32 1.442695, %v3240_v3  ;;  %4667 = vmatpush3.bf16.msra.mxu1 %v3412_v19  ;;  %v7424_v60 = vpop.eup %5229 }
 0x7e1   :  { %5233 = vpow2.f32 %v3245_v52  ;;  %v3247_v25 = vmul.f32 1.442695, %v3238_v22  ;;  %v7426_v40 = vpop.f32.mrb[56].mxu1  ;;  %4697 = vmatpush3.bf16.msra.mxu0 %v3412_v19  ;;  %4668 = vmatprep.subr.bf16.mxu1 %v8001_v56  ;;  %v7433_v57 = vadd.f32 %v5228_v55, %v7090_v1  ;;  %v7447_v29 = vadd.f32 %v7424_v60, %v7085_v42 }
 0x7e2   :  { %5235 = vpow2.f32 %v3251_v54  ;;  %v3235_v45 = vand.u32 2147483647, %v7426_v40  ;;  %v7430_v35 = vpop.f32.mrb[57].mxu1  ;;  %v3362_v13 = vadd.f32 %v7424_v60, %v3361_v23  ;;  %v3363_v39 = vmul.f32 0.25, %v3359_v37 }
 0x7e3   :  { %5237 = vpow2.f32 %v3247_v25  ;;  %v3233_v32 = vand.u32 2147483647, %v7430_v35  ;;  %v7436_v53 = vpop.f32.mrb[58].mxu1  ;;  %v3413_v51 = vpack.c.bf16 %v7433_v57, %v7443_v0  ;;  %v3414_v34 = vpack.c.bf16 %v7447_v29, %v7452_v16 }
 0x7e4   :  { %v3243_v17 = vsub.f32 0.0, %v3235_v45  ;;  %v3236_v15 = vand.u32 2147483647, %v7436_v53  ;;  %v7439_v58 = vpop.f32.mrb[59].mxu1  ;;  %v3364_v38 = vmul.f32 0.25, %v3362_v13  ;;  %v7461_v24 = vsub.f32 %v7375_v44, %v3363_v39 }
 0x7e5   :  { %v3241_v1 = vsub.f32 0.0, %v3233_v32  ;;  %v3234_v48 = vand.u32 2147483647, %v7439_v58  ;;  %4669 = vmatpush3.bf16.msra.mxu1 %v3413_v51  ;;  %4698 = vmatprep.subr.bf16.mxu0 %v3413_v51  ;;  %v7464_v43 = vsub.f32 %v7373_v31, %v3363_v39  ;;  %v7473_v36 = vsub.f32 %v7416_v49, %v3363_v39  ;;  %v7491_v45 = vld [vmem:[%s7894_s4] sm:$0x1]  ;;  %s5384_s4 = smov [#allocation3]  }
 0x7e6   :  { %v3257_v63 = vmul.f32 1.442695, %v3243_v17  ;;  %v3244_v4 = vsub.f32 0.0, %v3236_v15  ;;  %4699 = vmatpush3.bf16.msra.mxu0 %v3413_v51  ;;  %4670 = vmatprep.subr.bf16.mxu1 %v8001_v56  ;;  %v7467_v28 = vsub.f32 %v7381_v33, %v3364_v38  ;;  %v7470_v27 = vsub.f32 %v7377_v21, %v3364_v38  ;;  %s3923_s1 = sshll.u32 %s5384_s4, 4  ;;  %s3924_s1 = int_to_ptr.vmem [resolvable:$true] %s3923_s1 }
 0x7e7   :  { %v3253_v59 = vmul.f32 1.442695, %v3241_v1  ;;  %v3242_v11 = vsub.f32 0.0, %v3234_v48  ;;  %4700 = vmatprep.subr.bf16.mxu0 %v3414_v34  ;;  %v7477_v31 = vsub.f32 %v5228_v55, %v3364_v38  ;;  %v3207_v33 = vmax.f32 %v7397_v50, 0.0  ;;  %s5356_s23 = scalar_lea.vmem %s3924_s1, 16  ;;  %s5360_s24 = scalar_lea.vmem %s3924_s1, 32 }
 0x7e8   :  { %5239 = vpow2.f32 %v3257_v63  ;;  %v3259_v42 = vmul.f32 1.442695, %v3244_v4  ;;  %v3205_v37 = vmax.f32 %v7400_v10, 0.0  ;;  %v3206_v55 = vmax.f32 %v7412_v5, 0.0  ;;  %p5357_p0 = scmp.ne.s32.totalorder %s3924_s1, %s5356_s23  ;;  %p5361_p1 = scmp.lt.s32.totalorder %s3924_s1, %s3924_s1 }
 0x7e9   :  { %5241 = vpow2.f32 %v3253_v59  ;;  %v3255_v6 = vmul.f32 1.442695, %v3242_v11  ;;  %4671 = vmatpush3.bf16.msra.mxu1 %v3414_v34  ;;  %v7505_v63 = vsub.f32 %v7420_v7, %v3363_v39  ;;  %v7508_v4 = vsub.f32 %v7424_v60, %v3364_v38  ;;  %p5362_p2 = scmp.lt.s32.totalorder %s5360_s24, %s5356_s23 }
 0x7ea   :  { %v5232_v19 = vpop.eup %5231  ;;  %5243 = vpow2.f32 %v3259_v42  ;;  %4701 = vmatpush3.bf16.msra.mxu0 %v3414_v34  ;;  %4718 = vmatprep.subr.bf16.mxu1 %v8001_v56  ;;  %vm3217_vm5 = vcmp.ne.f32.partialorder %v7430_v35, %v7430_v35  ;;  %v8036_v48 = vmax.f32 %v7409_v8, 0.0  ;;  %vm3218_vm8 = vcmp.ne.f32.partialorder %v7439_v58, %v7439_v58 }
 0x7eb   :  { %v5234_v41 = vpop.eup %5233  ;;  %v3279_v3 = vadd.f32 1.0, %v5232_v19  ;;  %5245 = vpow2.f32 %v3255_v6  ;;  %v3282_v49 = vmul.f32 -0.5, %v5232_v19  ;;  %v3285_v32 = vand.u32 2147483647, %v5232_v19  ;;  %p5363_p3 = por %p5362_p2, %p5361_p1 }
 0x7ec   :  { %v7475_v44 = vpop.eup %5235  ;;  %v3261_v52 = vadd.f32 1.0, %v5234_v41  ;;  %v3264_v23 = vmul.f32 -0.5, %v5234_v41  ;;  %4673 = vmatmul.mubr.msk.bf16.vlgmr.msra.gmra.mrb[8].mxu1 %vm322_vm3, %v7491_v45  ;;  %v3267_v17 = vand.u32 2147483647, %v5234_v41  ;;  %vm3219_vm9 = vcmp.ne.f32.partialorder %v7426_v40, %v7426_v40 }
 0x7ed   :  { %v7479_v22 = vpop.eup %5237  ;;  %5247 = vlog2.f32 %v3279_v3  ;;  %v3288_v21 = vadd.f32 1.0, %v7475_v44  ;;  %v3291_v15 = vmul.f32 -0.5, %v7475_v44  ;;  %4703 = vmatmul.mubr.msk.bf16.vlgmr.msra.gmra.mrb[64].mxu0 %vm322_vm3, %v7322_v14  ;;  %4726 = vmatprep.mubr.msk.bf16.mxu1 %vm5383_vm4, %v8001_v56  ;;  %v3283_v13 = vadd.f32 1.0, %v3282_v49  ;;  %p5364_p4 = pnand %p5363_p3, %p5357_p0 }
 0x7ee   :  { %5249 = vlog2.f32 %v3261_v52  ;;  %v3270_v25 = vadd.f32 1.0, %v7479_v22  ;;  %4706 = vmatprep.mubr.msk.bf16.mxu0 %vm322_vm3, %v7329_v12  ;;  %v3265_v59 = vadd.f32 1.0, %v3264_v23  ;;  %v3294_v14 = vand.u32 2147483647, %v7475_v44 }
 0x7ef   :  { %5251 = vlog2.f32 %v3288_v21  ;;  %v3273_v34 = vmul.f32 -0.5, %v7479_v22  ;;  %v3276_v6 = vand.u32 2147483647, %v7479_v22  ;;  %vm7517_vm2 = vcmp.lt.f32.partialorder %v3285_v32, 0.0004427343 }
 0x7f0   :  { %5253 = vlog2.f32 %v3270_v25  ;;  %vm7521_vm4 = vcmp.lt.f32.partialorder %v3267_v17, 0.0004427343  ;;  %v3292_v38 = vadd.f32 1.0, %v3291_v15  ;;  %v3284_v11 = vmul.f32 %v5232_v19, %v3283_v13 }
 0x7f1   :  { %v3266_v12 = vmul.f32 %v5234_v41, %v3265_v59  ;;  %vm7528_vm10 = vcmp.lt.f32.partialorder %v3294_v14, 0.0004427343  ;;  %v3274_v1 = vadd.f32 1.0, %v3273_v34  ;;  %vm7532_vm11 = vcmp.lt.f32.partialorder %v3276_v6, 0.0004427343 }
 0x7f2   :  { %v5240_v51 = vpop.eup %5239  ;;  %v3293_v19 = vmul.f32 %v7475_v44, %v3292_v38  ;;  %v3375_v32 = vmul.f32 %v7464_v43, %v7464_v43 }
 0x7f3   :  { %v5242_v42 = vpop.eup %5241  ;;  %v3315_v3 = vadd.f32 1.0, %v5240_v51  ;;  %v3318_v49 = vmul.f32 -0.5, %v5240_v51  ;;  %v3321_v41 = vand.u32 2147483647, %v5240_v51 }
 0x7f4   :  { %v7515_v7 = vpop.eup %5243  ;;  %v3297_v52 = vadd.f32 1.0, %v5242_v42  ;;  %v3300_v23 = vmul.f32 -0.5, %v5242_v42  ;;  %v3303_v13 = vand.u32 2147483647, %v5242_v42 }
 0x7f5   :  { %v7525_v21 = vpop.eup %5245  ;;  %5255 = vlog2.f32 %v3315_v3  ;;  %v3324_v25 = vadd.f32 1.0, %v7515_v7  ;;  %4707 = vmatmul.mubr.msk.bf16.gmra.mrb[68].mxu0 %vm322_vm3, %v7336_v47  ;;  %v3319_v34 = vadd.f32 1.0, %v3318_v49  ;;  %v3327_v38 = vmul.f32 -0.5, %v7515_v7 }
 0x7f6   :  { %5257 = vlog2.f32 %v3297_v52  ;;  %v3306_v15 = vadd.f32 1.0, %v7525_v21  ;;  %v3301_v6 = vadd.f32 1.0, %v3300_v23  ;;  %4710 = vmatprep.mubr.msk.bf16.mxu0 %vm322_vm3, %v7343_v2  ;;  %v3330_v52 = vand.u32 2147483647, %v7515_v7 }
 0x7f7   :  { %v5248_v17 = vpop.eup %5247  ;;  %5259 = vlog2.f32 %v3324_v25  ;;  %v3309_v25 = vmul.f32 -0.5, %v7525_v21  ;;  %v3275_v49 = vmul.f32 %v7479_v22, %v3274_v1  ;;  %v3373_v23 = vmul.f32 %v7461_v24, %v7461_v24 }
 0x7f8   :  { %v5250_v3 = vpop.eup %5249  ;;  %v3281_v54 = vmul.f32 0.6931472, %v5248_v17  ;;  %5261 = vlog2.f32 %v3306_v15  ;;  %v3374_v2 = vmul.f32 %v7467_v28, %v7467_v28  ;;  %vm7562_vm0 = vcmp.lt.f32.partialorder %v3321_v41, 0.0004427343 }
 0x7f9   :  { %v5252_v59 = vpop.eup %5251  ;;  %v3263_v14 = vmul.f32 0.6931472, %v5250_v3  ;;  %vm7566_vm1 = vcmp.lt.f32.partialorder %v3303_v13, 0.0004427343  ;;  %v3320_v22 = vmul.f32 %v5240_v51, %v3319_v34  ;;  %vm7578_vm6 = vcmp.lt.f32.partialorder %v3330_v52, 0.0004427343 }
 0x7fa   :  { %v3290_v44 = vmul.f32 0.6931472, %v5252_v59  ;;  %v5254_v17 = vpop.eup %5253  ;;  %v3287_v15 = vsel %vm7517_vm2, %v3284_v11, %v3281_v54  ;;  %v3302_v54 = vmul.f32 %v5242_v42, %v3301_v6  ;;  %v3328_v11 = vadd.f32 1.0, %v3327_v38 }
 0x7fb   :  { %v3269_v47 = vsel %vm7521_vm4, %v3266_v12, %v3263_v14  ;;  %v3272_v3 = vmul.f32 0.6931472, %v5254_v17  ;;  %v3310_v39 = vadd.f32 1.0, %v3309_v25  ;;  %v3381_v42 = vadd.f32 %v3374_v2, %v3373_v23 }
 0x7fc   :  { %v3333_v24 = vadd.f32 %v3269_v47, %v3205_v37  ;;  %v3296_v28 = vsel %vm7528_vm10, %v3293_v19, %v3290_v44  ;;  %v3335_v37 = vadd.f32 %v3287_v15, %v3207_v33  ;;  %v3312_v34 = vand.u32 2147483647, %v7525_v21 }
 0x7fd   :  { %v3278_v1 = vsel %vm7532_vm11, %v3275_v49, %v3272_v3  ;;  %v3336_v13 = vadd.f32 %v3296_v28, %v8036_v48  ;;  %4711 = vmatmul.mubr.msk.bf16.gmra.mrb[72].mxu0 %vm322_vm3, %v7353_v62  ;;  %v3376_v33 = vmul.f32 %v7470_v27, %v7470_v27  ;;  %v3382_v38 = vadd.f32 %v3381_v42, %v3375_v32 }
 0x7fe   :  { %v3334_v51 = vadd.f32 %v3278_v1, %v3206_v55  ;;  %v3341_v43 = vsel %vm3213_vm12, %v7400_v10, %v3333_v24  ;;  %4714 = vmatprep.mubr.msk.bf16.mxu0 %vm322_vm3, %v7360_v46  ;;  %v3329_v27 = vmul.f32 %v7515_v7, %v3328_v11  ;;  %v3311_v25 = vmul.f32 %v7525_v21, %v3310_v39 }
 0x7ff   :  { %v5256_v41 = vpop.eup %5255  ;;  %v3343_v10 = vsel %vm3215_vm14, %v7397_v50, %v3335_v37  ;;  %v3377_v47 = vmul.f32 %v7473_v36, %v7473_v36  ;;  %v3383_v46 = vadd.f32 %v3382_v38, %v3376_v33  ;;  %v8037_v7 = vmax.f32 %v7430_v35, 0.0 }
 0x800   :  { %v5258_v19 = vpop.eup %5257  ;;  %v3317_v14 = vmul.f32 0.6931472, %v5256_v41  ;;  %v3342_v55 = vsel %vm3214_vm13, %v7412_v5, %v3334_v51  ;;  %v3344_v50 = vsel %vm3216_vm15, %v7409_v8, %v3336_v13  ;;  %vm3313_vm7 = vcmp.lt.f32.partialorder %v3312_v34, 0.0004427343 }
 0x801   :  { %v5260_v6 = vpop.eup %5259  ;;  %v3299_v44 = vmul.f32 0.6931472, %v5258_v19  ;;  %v3395_v62 = vadd.f32 %v3342_v55, %v3341_v43  ;;  %v3378_v15 = vmul.f32 %v7477_v31, %v7477_v31  ;;  %v3384_v3 = vadd.f32 %v3383_v46, %v3377_v47 }
 0x802   :  { %v3326_v52 = vmul.f32 0.6931472, %v5260_v6  ;;  %v5262_v17 = vpop.eup %5261  ;;  %v3323_v23 = vsel %vm7562_vm0, %v3320_v22, %v3317_v14  ;;  %v8038_v28 = vmax.f32 %v7426_v40, 0.0  ;;  %v8039_v8 = vmax.f32 %v7439_v58, 0.0 }
 0x803   :  { %v3305_v5 = vsel %vm7566_vm1, %v3302_v54, %v3299_v44  ;;  %v3396_v49 = vadd.f32 %v3395_v62, %v3343_v10  ;;  %v3308_v2 = vmul.f32 0.6931472, %v5262_v17  ;;  %v3379_v31 = vmul.f32 %v7505_v63, %v7505_v63 }
 0x804   :  { %v3337_v21 = vadd.f32 %v3305_v5, %v8037_v7  ;;  %v3332_v12 = vsel %vm7578_vm6, %v3329_v27, %v3326_v52  ;;  %v3339_v22 = vadd.f32 %v3323_v23, %v8038_v28  ;;  %v3385_v1 = vadd.f32 %v3384_v3, %v3378_v15 }
 0x805   :  { %v3397_v59 = vadd.f32 %v3396_v49, %v3344_v50  ;;  %v3314_v24 = vsel %vm3313_vm7, %v3311_v25, %v3308_v2  ;;  %4715 = vmatmul.mubr.msk.bf16.gmra.mrb[76].mxu0 %vm322_vm3, %v7367_v30  ;;  %v3380_v41 = vmul.f32 %v7508_v4, %v7508_v4  ;;  %vm3220_vm2 = vcmp.ne.f32.partialorder %v7436_v53, %v7436_v53 }
 0x806   :  { %v3345_v36 = vsel %vm3217_vm5, %v7430_v35, %v3337_v21  ;;  %v3338_v54 = vadd.f32 %v3314_v24, %v8039_v8  ;;  %v8040_v35 = vmax.f32 %v7436_v53, 0.0  ;;  %v3386_v37 = vadd.f32 %v3385_v1, %v3379_v31 }
 0x807   :  { %v3398_v11 = vadd.f32 %v3397_v59, %v3345_v36  ;;  %v3347_v51 = vsel %vm3219_vm9, %v7426_v40, %v3339_v22 }
 0x808   :  { %v3340_v60 = vadd.f32 %v3332_v12, %v8040_v35  ;;  %v3346_v39 = vsel %vm3218_vm8, %v7439_v58, %v3338_v54  ;;  %v3387_v32 = vadd.f32 %v3386_v37, %v3380_v41 }
 0x809   :  { %v3399_v63 = vadd.f32 %v3398_v11, %v3346_v39 }
 0x80a   :  { %v3348_v42 = vsel %vm3220_vm2, %v7436_v53, %v3340_v60  ;;  %v3388_v19 = vrot.slane %v3387_v32, 4 }
 0x80b   :  { %v3400_v30 = vadd.f32 %v3399_v63, %v3347_v51 }
 0x80c   :  { %v3389_v58 = vadd.f32 %v3388_v19, %v3387_v32 }
 0x80d   :  { %v3401_v48 = vadd.f32 %v3400_v30, %v3348_v42 }
 0x80e   :  { %v3390_v14 = vrot.slane %v3389_v58, 2 }
 0x80f   :  { %v3402_v13 = vrot.slane %v3401_v48, 4 }
 0x810   :  { %v3391_v34 = vadd.f32 %v3390_v14, %v3389_v58 }
 0x811   :  { %v3403_v4 = vadd.f32 %v3402_v13, %v3401_v48 }
 0x812   :  { %v3392_v6 = vrot.slane %v3391_v34, 1 }
 0x813   :  { %v3404_v33 = vrot.slane %v3403_v4, 2 }
 0x814   :  { %v3393_v55 = vadd.f32 %v3392_v6, %v3391_v34 }
 0x815   :  { %v3405_v43 = vadd.f32 %v3404_v33, %v3403_v4 }
 0x816   :  { %v3394_v38 = vmul.f32 0.33333334, %v3393_v55 }
 0x817   :  { %v3406_v44 = vrot.slane %v3405_v43, 1 }
 0x819   :  { %v3407_v40 = vadd.f32 %v3406_v44, %v3405_v43 }
 0x81b   :  { %v3408_v62 = vmul.f32 0.25, %v3407_v40 }
 0x81d   :  { %v3409_v52 = vadd.f32 %v3408_v62, %v3394_v38 }
 0x81f   :  { %v7653_v27 = vadd.f32 %v7348_v26, %v3409_v52 }
 0x8c0   :  { %v4704_v53 = vpop.f32.mrb[64].mxu0 }
 0x8c1   :  { %5263 = vtanh.f32 %v4704_v53  ;;  %v3592_v25 = vpop.f32.mrb[65].mxu0 }
 0x8c2   :  { %5265 = vtanh.f32 %v3592_v25  ;;  %v4705_v17 = vpop.f32.mrb[66].mxu0 }
 0x8c3   :  { %5267 = vtanh.f32 %v4705_v17  ;;  %v3595_v10 = vpop.f32.mrb[67].mxu0 }
 0x8c4   :  { %5269 = vtanh.f32 %v3595_v10 }
 0x8c8   :  { %v4708_v5 = vpop.f32.mrb[68].mxu0 }
 0x8c9   :  { %5271 = vtanh.f32 %v4708_v5  ;;  %v3608_v47 = vpop.f32.mrb[69].mxu0 }
 0x8ca   :  { %5273 = vtanh.f32 %v3608_v47  ;;  %v4709_v46 = vpop.f32.mrb[70].mxu0 }
 0x8cb   :  { %v7655_v49 = vpop.eup %5263  ;;  %5275 = vtanh.f32 %v4709_v46  ;;  %v3611_v23 = vpop.f32.mrb[71].mxu0 }
 0x8cc   :  { %v7657_v7 = vpop.eup %5265  ;;  %5277 = vtanh.f32 %v3611_v23  ;;  %v3809_v50 = vadd.f32 %v7655_v49, %v7406_v20 }
 0x8cd   :  { %v7659_v26 = vpop.eup %5267  ;;  %v3815_v21 = vadd.f32 %v7657_v7, %v7655_v49  ;;  %v3807_v36 = vadd.f32 %v7657_v7, %v7387_v9 }
 0x8ce   :  { %v7663_v2 = vpop.eup %5269  ;;  %v3810_v15 = vadd.f32 %v7659_v26, %v7395_v61 }
 0x8cf   :  { %v3818_v3 = vadd.f32 %v7663_v2, %v7659_v26  ;;  %v3808_v59 = vadd.f32 %v7663_v2, %v7391_v18 }
 0x8d0   :  { %v7675_v12 = vpop.f32.mrb[72].mxu0  ;;  %v3870_v24 = vpack.c.bf16 %v3810_v15, %v3809_v50 }
 0x8d1   :  { %v3689_v28 = vand.u32 2147483647, %v7675_v12  ;;  %v7678_v22 = vpop.f32.mrb[73].mxu0  ;;  %v3869_v20 = vpack.c.bf16 %v3808_v59, %v3807_v36  ;;  %vm3673_vm14 = vcmp.ne.f32.partialorder %v7675_v12, %v7675_v12 }
 0x8d2   :  { %v3687_v8 = vand.u32 2147483647, %v7678_v22  ;;  %v7681_v61 = vpop.f32.mrb[74].mxu0  ;;  %vm3671_vm12 = vcmp.ne.f32.partialorder %v7678_v22, %v7678_v22 }
 0x8d3   :  { %v7683_v54 = vpop.eup %5271  ;;  %v3697_v31 = vsub.f32 0.0, %v3689_v28  ;;  %v3690_v9 = vand.u32 2147483647, %v7681_v61  ;;  %v7686_v1 = vpop.f32.mrb[75].mxu0  ;;  %4719 = vmatpush3.bf16.msra.mxu1 %v3869_v20  ;;  %v3665_v20 = vmax.f32 %v7675_v12, 0.0  ;;  %vm3674_vm15 = vcmp.ne.f32.partialorder %v7681_v61, %v7681_v61 }
 0x8d4   :  { %v5274_v18 = vpop.eup %5273  ;;  %v3695_v11 = vsub.f32 0.0, %v3687_v8  ;;  %v3688_v35 = vand.u32 2147483647, %v7686_v1  ;;  %4720 = vmatprep.subr.bf16.mxu1 %v8001_v56  ;;  %v3813_v30 = vadd.f32 %v7683_v54, %v7452_v16  ;;  %vm3672_vm13 = vcmp.ne.f32.partialorder %v7686_v1, %v7686_v1 }
 0x8d5   :  { %v7690_v60 = vpop.eup %5275  ;;  %v3816_v39 = vadd.f32 %v5274_v18, %v3815_v21  ;;  %v3707_v41 = vmul.f32 1.442695, %v3697_v31  ;;  %v3698_v37 = vsub.f32 0.0, %v3690_v9  ;;  %v3811_v40 = vadd.f32 %v5274_v18, %v7443_v0 }
 0x8d6   :  { %v5278_v63 = vpop.eup %5277  ;;  %v3703_v51 = vmul.f32 1.442695, %v3695_v11  ;;  %v3696_v32 = vsub.f32 0.0, %v3688_v35  ;;  %v3814_v42 = vadd.f32 %v7690_v60, %v7447_v29  ;;  %v3666_v9 = vmax.f32 %v7681_v61, 0.0 }
 0x8d7   :  { %v3819_v19 = vadd.f32 %v5278_v63, %v3818_v3  ;;  %5279 = vpow2.f32 %v3707_v41  ;;  %v3709_v48 = vmul.f32 1.442695, %v3698_v37  ;;  %4721 = vmatpush3.bf16.msra.mxu1 %v3870_v24  ;;  %v3817_v4 = vadd.f32 %v7683_v54, %v3816_v39 }
 0x8d8   :  { %5281 = vpow2.f32 %v3703_v51  ;;  %v3705_v58 = vmul.f32 1.442695, %v3696_v32  ;;  %v7696_v13 = vpop.f32.mrb[76].mxu0  ;;  %4722 = vmatprep.subr.bf16.mxu1 %v8001_v56  ;;  %v3872_v14 = vpack.c.bf16 %v3814_v42, %v3813_v30  ;;  %v3812_v29 = vadd.f32 %v5278_v63, %v7433_v57 }
 0x8d9   :  { %5283 = vpow2.f32 %v3709_v48  ;;  %v3693_v34 = vand.u32 2147483647, %v7696_v13  ;;  %v7701_v16 = vpop.f32.mrb[77].mxu0  ;;  %v3820_v57 = vadd.f32 %v7690_v60, %v3819_v19  ;;  %v3821_v5 = vmul.f32 0.25, %v3817_v4 }
 0x8da   :  { %5285 = vpow2.f32 %v3705_v58  ;;  %v3691_v33 = vand.u32 2147483647, %v7701_v16  ;;  %v7705_v6 = vpop.f32.mrb[78].mxu0  ;;  %v3871_v25 = vpack.c.bf16 %v3812_v29, %v3811_v40  ;;  %v3669_v37 = vmax.f32 %v7696_v13, 0.0 }
 0x8db   :  { %v3701_v43 = vsub.f32 0.0, %v3693_v34  ;;  %v3694_v55 = vand.u32 2147483647, %v7705_v6  ;;  %v7708_v44 = vpop.f32.mrb[79].mxu0  ;;  %v3822_v46 = vmul.f32 0.25, %v3820_v57  ;;  %v7715_v0 = vsub.f32 %v7657_v7, %v3821_v5 }
 0x8dc   :  { %v3699_v38 = vsub.f32 0.0, %v3691_v33  ;;  %v3692_v62 = vand.u32 2147483647, %v7708_v44  ;;  %4723 = vmatpush3.bf16.msra.mxu1 %v3871_v25  ;;  %v7718_v21 = vsub.f32 %v7655_v49, %v3821_v5  ;;  %v7726_v36 = vsub.f32 %v5274_v18, %v3821_v5 }
 0x8dd   :  { %v3715_v52 = vmul.f32 1.442695, %v3701_v43  ;;  %v3702_v53 = vsub.f32 0.0, %v3694_v55  ;;  %4724 = vmatprep.subr.bf16.mxu1 %v8001_v56  ;;  %v7721_v15 = vsub.f32 %v7663_v2, %v3822_v46  ;;  %v7724_v3 = vsub.f32 %v7659_v26, %v3822_v46 }
 0x8de   :  { %v3711_v17 = vmul.f32 1.442695, %v3699_v38  ;;  %v3700_v10 = vsub.f32 0.0, %v3692_v62  ;;  %v7728_v7 = vsub.f32 %v5278_v63, %v3822_v46  ;;  %v3663_v26 = vmax.f32 %v7678_v22, 0.0 }
 0x8df   :  { %5287 = vpow2.f32 %v3715_v52  ;;  %v3717_v47 = vmul.f32 1.442695, %v3702_v53  ;;  %v3664_v18 = vmax.f32 %v7686_v1, 0.0  ;;  %v3667_v63 = vmax.f32 %v7701_v16, 0.0 }
 0x8e0   :  { %5289 = vpow2.f32 %v3711_v17  ;;  %v3713_v23 = vmul.f32 1.442695, %v3700_v10  ;;  %4725 = vmatpush3.bf16.msra.mxu1 %v3872_v14  ;;  %v7742_v51 = vsub.f32 %v7683_v54, %v3821_v5  ;;  %v7745_v32 = vsub.f32 %v7690_v60, %v3822_v46 }
 0x8e1   :  { %v5280_v50 = vpop.eup %5279  ;;  %5291 = vpow2.f32 %v3717_v47  ;;  %v3668_v29 = vmax.f32 %v7708_v44, 0.0  ;;  %vm3675_vm5 = vcmp.ne.f32.partialorder %v7701_v16, %v7701_v16  ;;  %vm3676_vm8 = vcmp.ne.f32.partialorder %v7708_v44, %v7708_v44 }
 0x8e2   :  { %v5282_v59 = vpop.eup %5281  ;;  %v3737_v24 = vadd.f32 1.0, %v5280_v50  ;;  %5293 = vpow2.f32 %v3713_v23  ;;  %v3740_v8 = vmul.f32 -0.5, %v5280_v50  ;;  %v3743_v35 = vand.u32 2147483647, %v5280_v50 }
 0x8e3   :  { %v5284_v56 = vpop.eup %5283  ;;  %v3719_v28 = vadd.f32 1.0, %v5282_v59  ;;  %v3722_v31 = vmul.f32 -0.5, %v5282_v59  ;;  %4727 = vmatmul.mubr.msk.bf16.vlgmr.msra.gmra.mrb[8].mxu1 %vm322_vm3, %v7491_v45  ;;  %v3725_v39 = vand.u32 2147483647, %v5282_v59  ;;  %v3670_v45 = vmax.f32 %v7705_v6, 0.0 }
 0x8e4   :  { %v7730_v49 = vpop.eup %5285  ;;  %5295 = vlog2.f32 %v3737_v24  ;;  %v3746_v2 = vadd.f32 1.0, %v5284_v56  ;;  %v3749_v41 = vmul.f32 -0.5, %v5284_v56  ;;  %v3741_v42 = vadd.f32 1.0, %v3740_v8 }
 0x8e5   :  { %5297 = vlog2.f32 %v3719_v28  ;;  %v3728_v11 = vadd.f32 1.0, %v7730_v49  ;;  %v3723_v19 = vadd.f32 1.0, %v3722_v31  ;;  %v3752_v48 = vand.u32 2147483647, %v5284_v56 }
 0x8e6   :  { %5299 = vlog2.f32 %v3746_v2  ;;  %v3731_v14 = vmul.f32 -0.5, %v7730_v49  ;;  %v3734_v4 = vand.u32 2147483647, %v7730_v49  ;;  %vm7753_vm3 = vcmp.lt.f32.partialorder %v3743_v35, 0.0004427343 }
 0x8e7   :  { %5301 = vlog2.f32 %v3728_v11  ;;  %vm7757_vm4 = vcmp.lt.f32.partialorder %v3725_v39, 0.0004427343  ;;  %v3750_v43 = vadd.f32 1.0, %v3749_v41  ;;  %v3742_v53 = vmul.f32 %v5280_v50, %v3741_v42 }
 0x8e8   :  { %v3724_v25 = vmul.f32 %v5282_v59, %v3723_v19  ;;  %vm7764_vm10 = vcmp.lt.f32.partialorder %v3752_v48, 0.0004427343  ;;  %v3732_v10 = vadd.f32 1.0, %v3731_v14  ;;  %vm7768_vm11 = vcmp.lt.f32.partialorder %v3734_v4, 0.0004427343 }
 0x8e9   :  { %v5288_v30 = vpop.eup %5287  ;;  %v3751_v50 = vmul.f32 %v5284_v56, %v3750_v43  ;;  %v3831_v48 = vmul.f32 %v7715_v0, %v7715_v0  ;;  %v3832_v14 = vmul.f32 %v7721_v15, %v7721_v15  ;;  %vm3677_vm9 = vcmp.ne.f32.partialorder %v7696_v13, %v7696_v13 }
 0x8ea   :  { %v5290_v58 = vpop.eup %5289  ;;  %v3773_v34 = vadd.f32 1.0, %v5288_v30  ;;  %v3776_v38 = vmul.f32 -0.5, %v5288_v30  ;;  %v3779_v59 = vand.u32 2147483647, %v5288_v30  ;;  %v3733_v19 = vmul.f32 %v7730_v49, %v3732_v10 }
 0x8eb   :  { %v7751_v33 = vpop.eup %5291  ;;  %v3755_v55 = vadd.f32 1.0, %v5290_v58  ;;  %v3758_v62 = vmul.f32 -0.5, %v5290_v58  ;;  %v3761_v24 = vand.u32 2147483647, %v5290_v58  ;;  %vm3678_vm2 = vcmp.ne.f32.partialorder %v7705_v6, %v7705_v6 }
 0x8ec   :  { %v7761_v40 = vpop.eup %5293  ;;  %5303 = vlog2.f32 %v3773_v34  ;;  %v3782_v52 = vadd.f32 1.0, %v7751_v33  ;;  %v3777_v8 = vadd.f32 1.0, %v3776_v38  ;;  %v3785_v35 = vmul.f32 -0.5, %v7751_v33 }
 0x8ed   :  { %5305 = vlog2.f32 %v3755_v55  ;;  %v3764_v47 = vadd.f32 1.0, %v7761_v40  ;;  %v3759_v31 = vadd.f32 1.0, %v3758_v62  ;;  %v3788_v39 = vand.u32 2147483647, %v7751_v33 }
 0x8ee   :  { %v5296_v17 = vpop.eup %5295  ;;  %5307 = vlog2.f32 %v3782_v52  ;;  %v3767_v56 = vmul.f32 -0.5, %v7761_v40  ;;  %vm7793_vm0 = vcmp.lt.f32.partialorder %v3779_v59, 0.0004427343  ;;  %vm7797_vm1 = vcmp.lt.f32.partialorder %v3761_v24, 0.0004427343 }
 0x8ef   :  { %v5298_v46 = vpop.eup %5297  ;;  %v3739_v23 = vmul.f32 0.6931472, %v5296_v17  ;;  %5309 = vlog2.f32 %v3764_v47  ;;  %v3778_v49 = vmul.f32 %v5288_v30, %v3777_v8  ;;  %v3760_v54 = vmul.f32 %v5290_v58, %v3759_v31 }
 0x8f0   :  { %v5300_v28 = vpop.eup %5299  ;;  %v3721_v2 = vmul.f32 0.6931472, %v5298_v46  ;;  %v3786_v38 = vadd.f32 1.0, %v3785_v35  ;;  %vm7809_vm6 = vcmp.lt.f32.partialorder %v3788_v39, 0.0004427343  ;;  %v3768_v52 = vadd.f32 1.0, %v3767_v56 }
 0x8f1   :  { %v3748_v11 = vmul.f32 0.6931472, %v5300_v28  ;;  %v5302_v41 = vpop.eup %5301  ;;  %v3745_v4 = vsel %vm7753_vm3, %v3742_v53, %v3739_v23  ;;  %v3839_v58 = vadd.f32 %v3832_v14, %v3831_v48  ;;  %v3770_v5 = vand.u32 2147483647, %v7761_v40 }
 0x8f2   :  { %v3727_v42 = vsel %vm7757_vm4, %v3724_v25, %v3721_v2  ;;  %v3730_v34 = vmul.f32 0.6931472, %v5302_v41  ;;  %v3833_v25 = vmul.f32 %v7718_v21, %v7718_v21  ;;  %v3834_v47 = vmul.f32 %v7724_v3, %v7724_v3 }
 0x8f3   :  { %v3791_v0 = vadd.f32 %v3727_v42, %v3663_v26  ;;  %v3754_v15 = vsel %vm7764_vm10, %v3751_v50, %v3748_v11  ;;  %v3793_v26 = vadd.f32 %v3745_v4, %v3665_v20  ;;  %v3787_v59 = vmul.f32 %v7751_v33, %v3786_v38 }
 0x8f4   :  { %v3736_v55 = vsel %vm7768_vm11, %v3733_v19, %v3730_v34  ;;  %v3794_v17 = vadd.f32 %v3754_v15, %v3666_v9  ;;  %v3840_v23 = vadd.f32 %v3839_v58, %v3833_v25  ;;  %v3769_v24 = vmul.f32 %v7761_v40, %v3768_v52 }
 0x8f5   :  { %v3792_v30 = vadd.f32 %v3736_v55, %v3664_v18  ;;  %v3799_v20 = vsel %vm3671_vm12, %v7678_v22, %v3791_v0  ;;  %v3801_v28 = vsel %vm3673_vm14, %v7675_v12, %v3793_v26  ;;  %vm3771_vm7 = vcmp.lt.f32.partialorder %v3770_v5, 0.0004427343 }
 0x8f6   :  { %v5304_v53 = vpop.eup %5303  ;;  %v3841_v2 = vadd.f32 %v3840_v23, %v3834_v47  ;;  %v3802_v12 = vsel %vm3674_vm15, %v7681_v61, %v3794_v17  ;;  %v3836_v11 = vmul.f32 %v7728_v7, %v7728_v7  ;;  %v3837_v7 = vmul.f32 %v7742_v51, %v7742_v51 }
 0x8f7   :  { %v5306_v57 = vpop.eup %5305  ;;  %v3775_v10 = vmul.f32 0.6931472, %v5304_v53  ;;  %v3800_v21 = vsel %vm3672_vm13, %v7686_v1, %v3792_v30  ;;  %v3835_v1 = vmul.f32 %v7726_v36, %v7726_v36  ;;  %v3838_v14 = vmul.f32 %v7745_v32, %v7745_v32 }
 0x8f8   :  { %v5308_v46 = vpop.eup %5307  ;;  %v3757_v18 = vmul.f32 0.6931472, %v5306_v57  ;;  %v3853_v9 = vadd.f32 %v3800_v21, %v3799_v20 }
 0x8f9   :  { %v3784_v50 = vmul.f32 0.6931472, %v5308_v46  ;;  %v5310_v3 = vpop.eup %5309  ;;  %v3781_v31 = vsel %vm7793_vm0, %v3778_v49, %v3775_v10  ;;  %v3842_v35 = vadd.f32 %v3841_v2, %v3835_v1 }
 0x8fa   :  { %v3763_v22 = vsel %vm7797_vm1, %v3760_v54, %v3757_v18  ;;  %v3854_v8 = vadd.f32 %v3853_v9, %v3801_v28  ;;  %v3766_v40 = vmul.f32 0.6931472, %v5310_v3  ;;  %v3797_v41 = vadd.f32 %v3781_v31, %v3669_v37 }
 0x8fb   :  { %v3795_v33 = vadd.f32 %v3763_v22, %v3667_v63  ;;  %v3790_v39 = vsel %vm7809_vm6, %v3787_v59, %v3784_v50  ;;  %v3843_v42 = vadd.f32 %v3842_v35, %v3836_v11 }
 0x8fc   :  { %v3772_v63 = vsel %vm3771_vm7, %v3769_v24, %v3766_v40  ;;  %v3855_v56 = vadd.f32 %v3854_v8, %v3802_v12  ;;  %v3805_v51 = vsel %vm3677_vm9, %v7696_v13, %v3797_v41 }
 0x8fd   :  { %v3803_v36 = vsel %vm3675_vm5, %v7701_v16, %v3795_v33  ;;  %v3796_v61 = vadd.f32 %v3772_v63, %v3668_v29  ;;  %v3798_v16 = vadd.f32 %v3790_v39, %v3670_v45  ;;  %v3844_v37 = vadd.f32 %v3843_v42, %v3837_v7 }
 0x8fe   :  { %v3856_v19 = vadd.f32 %v3855_v56, %v3803_v36 }
 0x8ff   :  { %v3804_v48 = vsel %vm3676_vm8, %v7708_v44, %v3796_v61  ;;  %v3845_v4 = vadd.f32 %v3844_v37, %v3838_v14  ;;  %v3806_v43 = vsel %vm3678_vm2, %v7705_v6, %v3798_v16 }
 0x900   :  { %v3857_v29 = vadd.f32 %v3856_v19, %v3804_v48 }
 0x901   :  { %v3846_v45 = vrot.slane %v3845_v4, 4 }
 0x902   :  { %v3858_v34 = vadd.f32 %v3857_v29, %v3805_v51 }
 0x903   :  { %v3847_v44 = vadd.f32 %v3846_v45, %v3845_v4 }
 0x904   :  { %v3859_v60 = vadd.f32 %v3858_v34, %v3806_v43 }
 0x905   :  { %v3848_v15 = vrot.slane %v3847_v44, 2 }
 0x906   :  { %v3860_v0 = vrot.slane %v3859_v60, 4 }
 0x907   :  { %v3849_v49 = vadd.f32 %v3848_v15, %v3847_v44 }
 0x908   :  { %v3861_v32 = vadd.f32 %v3860_v0, %v3859_v60 }
 0x909   :  { %v3850_v55 = vrot.slane %v3849_v49, 1 }
 0x90a   :  { %v3862_v54 = vrot.slane %v3861_v32, 2 }
 0x90b   :  { %v3851_v62 = vadd.f32 %v3850_v55, %v3849_v49 }
 0x90c   :  { %v3863_v38 = vadd.f32 %v3862_v54, %v3861_v32 }
 0x90d   :  { %v3852_v53 = vmul.f32 0.33333334, %v3851_v62 }
 0x90e   :  { %v3864_v52 = vrot.slane %v3863_v38, 1 }
 0x910   :  { %v3865_v13 = vadd.f32 %v3864_v52, %v3863_v38 }
 0x912   :  { %v3866_v26 = vmul.f32 0.25, %v3865_v13 }
 0x914   :  { %v3867_v30 = vadd.f32 %v3866_v26, %v3852_v53 }
 0x916   :  { %v4754_v25 = vadd.f32 %v7653_v27, %v3867_v30 }
 0x9b6   :  { %v3907_v58 = vpop.f32.mrb[8].mxu1 }
 0x9b7   :  { %v4755_v6 = vadd.f32 %v4754_v25, %v3907_v58  ;;  %v4728_v57 = vpop.f32.mrb[9].mxu1 }
 0x9b8   :  { %v3910_v17 = vpop.f32.mrb[10].mxu1 }
 0x9b9   :  { %vm3914_vm3 = vcmp.ne.f32.partialorder %v4755_v6, %v4755_v6  ;;  %v4729_v10 = vpop.f32.mrb[11].mxu1 }
 0x9ba   :  { %v3915_v5 = vsel %vm3914_vm3, 0.0, %v4755_v6 }
 0x9bb   :  { %3916 = vst [vmem:[#allocation3] sm:$0x1] %v3915_v5 }
 0x9bc   :  { %5367 = shalt.err (!%p5364_p4)
}
 0x9bd   :  { %s5368_s0 = scalar_lea.hbm %s7896_s6, 16 }
 0x9be   :  { %p5369_p5 = scmp.ne.s32.totalorder %s7896_s6, %s5368_s0  ;;  %p5372_p6 = scmp.lt.u32.totalorder %s5368_s0, %s7896_s6 }
 0x9c0   :  { %p5374_p7 = pnand %p5372_p6, %p5369_p5 }
 0x9c2   :  { %5377 = shalt.err (!%p5374_p7)
}
 0x9c3   :  { %3926 = dma.vmem_to_hbm [thread:$0]  %s3924_s1, 16, %s7896_s6, [#allocation4]  }
 0x9c4   :  { %5378 = dma.done.wait [#allocation4], 16  }
 0x9c5   :  { %5379 = vsyncadd [#allocation4], 4294967280 }
 0x9c6   :  { %3930 = vsyncpa [#allocation4], 1 }

</bundles_post_ra>
